<compile_context>
chip_gen: v7x
topology: tpu7x:2x2x1
jax: 0.10.0
libtpu: 0.0.40
codegen_flags: <defaults>
</compile_context>

<pallas_src>
import math

import jax
import jax.numpy as jnp
from jax import lax
from jax.experimental import pallas as pl
from jax.experimental.pallas import tpu as pltpu

_VMEM_LIMIT_BYTES = 48 * 1024 * 1024   # under v7x's 64 MiB physical VMEM


# ----------------------------- Pallas kernels -------------------------------
def make_head_decode_kernel(A, Cin, Cmid, tile_h, W, HW, img_h, img_w, bbox_clip):
    """RPN head (3x3 conv + ReLU + fused 1x1 cls/bbox) + box decode + clip +
    objectness sigmoid + background global-average-pool, tiled over rows."""
    TILE_HW = tile_h * W

    def kernel(xp_ref, anc_ref, wc_ref, bc_ref, wh_ref, bh_ref,
               dec_ref, prob_ref, bg_ref, bg_acc):
        t = pl.program_id(1)
        nt = pl.num_programs(1)
        r0 = t * tile_h

        @pl.when(t == 0)
        def _():
            bg_acc[...] = jnp.zeros_like(bg_acc)

        # ---- 3x3 conv as 9 shifted bf16 matmuls (im2col built in VMEM) ----
        # TODO(synk): the patch reshape is layout-free only when W % 8 == 0;
        # ragged widths fall back to a single spatial tile per image.
        acc = jnp.zeros((TILE_HW, Cmid), jnp.float32)
        for ky in range(3):
            for kx in range(3):
                tap = ky * 3 + kx
                patch = xp_ref[0, pl.ds(r0 + ky, tile_h), pl.ds(kx, W), :]
                patch = patch.reshape(TILE_HW, Cin)
                acc = acc + jnp.dot(patch, wc_ref[tap],
                                    preferred_element_type=jnp.float32)
        shared = jnp.maximum(acc + bc_ref[...], 0.0)          # (TILE_HW, Cmid)

        # ---- background vector: running spatial sum, mean on the last tile ----
        bg_acc[...] += jnp.sum(shared, axis=0, keepdims=True)

        @pl.when(t == nt - 1)
        def _():
            bg_ref[0] = bg_acc[...] * (1.0 / float(HW))

        # ---- fused 1x1 cls + bbox head: single lane-merged matmul ----
        # column layout (coordinate-major): [s0 | s1 | dx | dy | dw | dh], A each
        raw = jnp.dot(shared.astype(jnp.bfloat16), wh_ref[...],
                      preferred_element_type=jnp.float32) + bh_ref[...]
        s0 = raw[:, 0 * A:1 * A]
        s1 = raw[:, 1 * A:2 * A]
        dx = raw[:, 2 * A:3 * A]
        dy = raw[:, 3 * A:4 * A]
        dw = jnp.minimum(raw[:, 4 * A:5 * A], bbox_clip)
        dh = jnp.minimum(raw[:, 5 * A:6 * A], bbox_clip)

        # ---- BoxCoder.decode (weights 1,1,1,1) + clip_boxes_to_image ----
        anc = anc_ref[...]                                    # (TILE_HW, 4A)
        ax0 = anc[:, 0 * A:1 * A]
        ay0 = anc[:, 1 * A:2 * A]
        ax1 = anc[:, 2 * A:3 * A]
        ay1 = anc[:, 3 * A:4 * A]
        aw = ax1 - ax0
        ah = ay1 - ay0
        acx = ax0 + 0.5 * aw
        acy = ay0 + 0.5 * ah

        pcx = dx * aw + acx
        pcy = dy * ah + acy
        pw = jnp.exp(dw) * aw
        ph = jnp.exp(dh) * ah

        x0 = jnp.clip(pcx - 0.5 * pw, 0.0, img_w)
        y0 = jnp.clip(pcy - 0.5 * ph, 0.0, img_h)
        x1 = jnp.clip(pcx + 0.5 * pw, 0.0, img_w)
        y1 = jnp.clip(pcy + 0.5 * ph, 0.0, img_h)

        dec_ref[0] = jnp.concatenate([x0, y0, x1, y1], axis=1)   # (TILE_HW, 4A)
        # softmax over 2 classes, class 1  == sigmoid(s1 - s0)
        prob_ref[0] = 1.0 / (1.0 + jnp.exp(s0 - s1))             # (TILE_HW, A)

    return kernel


def make_nms_kernel(P, thresh):
    """Greedy NMS over score-sorted boxes.  Boxes arrive coordinate-major
    (1, 4, P) so every per-coordinate vector is lane-dense; each IoU row is
    computed on the fly, so the (P, P) matrix never exists in HBM."""
    def kernel(b_ref, valid_ref, keep_ref):
        x0 = b_ref[0, 0:1, :]                                  # (1, P)
        y0 = b_ref[0, 1:2, :]
        x1 = b_ref[0, 2:3, :]
        y1 = b_ref[0, 3:4, :]
        area = (x1 - x0) * (y1 - y0)
        idx = lax.broadcasted_iota(jnp.int32, (1, P), 1)
        valid = valid_ref[0]                                   # (1, P) in {0,1}
        sup0 = 1.0 - valid                                     # invalid => suppressed

        def body(i, sup):
            onehot = (idx == i).astype(jnp.float32)

            def sel(v):   # broadcast element i of a (1, P) vector to (1, 1)
                return jnp.sum(v * onehot, axis=-1, keepdims=True)

            xi0, yi0 = sel(x0), sel(y0)
            xi1, yi1 = sel(x1), sel(y1)
            ai = sel(area)
            si = sel(sup)                                      # suppressed state of i
            iw = jnp.maximum(jnp.minimum(xi1, x1) - jnp.maximum(xi0, x0), 0.0)
            ih = jnp.maximum(jnp.minimum(yi1, y1) - jnp.maximum(yi0, y0), 0.0)
            inter = iw * ih
            iou = inter / (ai + area - inter + 1e-8)           # eps: no 0/0 NaN
            new = jnp.where((si < 0.5) & (iou > thresh) & (idx > i), 1.0, 0.0)
            return jnp.maximum(sup, new)

        sup = lax.fori_loop(0, P, body, sup0)
        keep_ref[0] = (1.0 - sup) * valid
    return kernel


# ----------------------------- plain-JAX glue --------------------------------
def generate_anchors_cm(H, W, stride_y, stride_x, sizes, ratios):
    """Anchors for one level, coordinate-major per position: (H*W, 4*A) with
    column index c*A + a, matching torchvision's per-anchor boxes."""
    scales = jnp.asarray(sizes, jnp.float32)
    ratios_a = jnp.asarray(ratios, jnp.float32)
    h_ratios = jnp.sqrt(ratios_a)
    w_ratios = 1.0 / h_ratios
    ws = (w_ratios[:, None] * scales[None, :]).reshape(-1)
    hs = (h_ratios[:, None] * scales[None, :]).reshape(-1)
    base = jnp.round(jnp.stack([-ws, -hs, ws, hs], axis=1) / 2.0)   # (A, 4)
    sy = jnp.arange(H, dtype=jnp.float32) * stride_y
    sx = jnp.arange(W, dtype=jnp.float32) * stride_x
    shift_y, shift_x = jnp.meshgrid(sy, sx, indexing="ij")
    shifts = jnp.stack([shift_x.reshape(-1), shift_y.reshape(-1),
                        shift_x.reshape(-1), shift_y.reshape(-1)], axis=1)  # (HW, 4)
    anc = shifts[:, :, None] + base.T[None, :, :]                   # (HW, 4, A)
    return anc.reshape(H * W, 4 * len(ratios) * len(sizes))


def run_head_level(x_nchw, kparams, anchors_cm, A, img_h, img_w, bbox_clip,
                   tile_hw=512):
    """One feature-map level through the fused head+decode kernel."""
    N, Cin, H, W = x_nchw.shape
    Cmid = kparams["w_conv3"].shape[2]
    HW = H * W

    # pick a row-tile size: TILE_HW = tile_h*W, divisor of H, multiple of 8
    tile_h = max(1, min(H, tile_hw // max(W, 1)))
    while tile_h > 1 and (H % tile_h or (tile_h * W) % 8):
        tile_h -= 1
    if H % tile_h or (tile_h * W) % 8:
        tile_h = H                      # fallback: one spatial tile per image
    T = H // tile_h
    TILE_HW = tile_h * W

    # NHWC + 1-pixel zero halo, bf16 MXU operands (f32 accumulation in-kernel).
    # TODO(synk): for very large feature maps replace this resident full-image
    # block with a manual halo DMA double-buffer to bound VMEM.
    x = jnp.transpose(x_nchw, (0, 2, 3, 1)).astype(jnp.float32)
    xp = jnp.pad(x, ((0, 0), (1, 1), (1, 1), (0, 0))).astype(jnp.bfloat16)

    kernel = make_head_decode_kernel(A, Cin, Cmid, tile_h, W, HW,
                                     float(img_h), float(img_w), bbox_clip)

    dec_cm, probs, bg = pl.pallas_call(
        kernel,
        grid=(N, T),
        in_specs=[
            pl.BlockSpec((1, H + 2, W + 2, Cin), lambda n, t: (n, 0, 0, 0)),
            pl.BlockSpec((TILE_HW, 4 * A), lambda n, t: (t, 0)),
            pl.BlockSpec((9, Cin, Cmid), lambda n, t: (0, 0, 0)),
            pl.BlockSpec((1, Cmid), lambda n, t: (0, 0)),
            pl.BlockSpec((Cmid, 6 * A), lambda n, t: (0, 0)),
            pl.BlockSpec((1, 6 * A), lambda n, t: (0, 0)),
        ],
        out_specs=[
            pl.BlockSpec((1, TILE_HW, 4 * A), lambda n, t: (n, t, 0)),
            pl.BlockSpec((1, TILE_HW, A), lambda n, t: (n, t, 0)),
            pl.BlockSpec((1, 1, Cmid), lambda n, t: (n, 0, 0)),
        ],
        out_shape=[
            jax.ShapeDtypeStruct((N, HW, 4 * A), jnp.float32),
            jax.ShapeDtypeStruct((N, HW, A), jnp.float32),
            jax.ShapeDtypeStruct((N, 1, Cmid), jnp.float32),
        ],
        scratch_shapes=[pltpu.VMEM((1, Cmid), jnp.float32)],
        compiler_params=pltpu.CompilerParams(
            dimension_semantics=("parallel", "arbitrary"),
            vmem_limit_bytes=_VMEM_LIMIT_BYTES),
    )(xp, anchors_cm, kparams["w_conv3"], kparams["b_conv"],
      kparams["w_head"], kparams["b_head"])
    return dec_cm, probs, bg[:, 0, :]


def background_aware_rpn_forward(feature_maps, params, image_size,
                                 pre_nms_top_n=1000, post_nms_top_n=1000,
                                 nms_thresh=0.7, cls_score_thresh=0.0,
                                 min_bbox_size=0.0,
                                 anchor_sizes=(16.0,),
                                 anchor_ratios=(0.5, 1.0, 2.0),
                                 tile_hw=512):
    img_h, img_w = image_size
    N = feature_maps[0].shape[0]
    A = len(anchor_sizes) * len(anchor_ratios)
    bbox_clip = math.log(1000.0 / 16.0)

    Cmid = params["w_conv"].shape[0]
    Cin = params["w_conv"].shape[1]

    # ---- kernel-layout parameters (from PyTorch-layout params) ----
    # 3x3 conv weight: (Cmid, Cin, 3, 3) -> tap-major (9, Cin, Cmid), bf16.
    w_conv3 = params["w_conv"].transpose(2, 3, 1, 0).reshape(9, Cin, Cmid)
    # Fused 1x1 head, coordinate-major columns [s0|s1|dx|dy|dw|dh], each A wide.
    w_cls_cm = params["w_cls"].reshape(A, 2, Cmid).transpose(1, 0, 2).reshape(2 * A, Cmid)
    w_box_cm = params["w_box"].reshape(A, 4, Cmid).transpose(1, 0, 2).reshape(4 * A, Cmid)
    w_head = jnp.concatenate([w_cls_cm, w_box_cm], axis=0).T            # (Cmid, 6A)
    b_cls_cm = params["b_cls"].reshape(A, 2).T.reshape(2 * A)
    b_box_cm = params["b_box"].reshape(A, 4).T.reshape(4 * A)
    b_head = jnp.concatenate([b_cls_cm, b_box_cm]).reshape(1, 6 * A)
    kparams = {
        "w_conv3": w_conv3.astype(jnp.bfloat16),
        "b_conv": params["b_conv"].reshape(1, Cmid).astype(jnp.float32),
        "w_head": w_head.astype(jnp.bfloat16),
        "b_head": b_head.astype(jnp.float32),
    }

    dec_levels, prob_levels, bg_levels, n_per_level = [], [], [], []
    for x_nchw in feature_maps:
        _, _, H, W = x_nchw.shape
        stride_y = float(img_h) / float(H)
        stride_x = float(img_w) / float(W)
        anc_cm = generate_anchors_cm(H, W, stride_y, stride_x,
                                     anchor_sizes, anchor_ratios)
        dec_cm, probs, bg = run_head_level(
            x_nchw, kparams, anc_cm, A, img_h, img_w, bbox_clip, tile_hw=tile_hw)
        HW = H * W
        # (N, HW, 4, A) -> (N, HW, A, 4) -> (N, HW*A, 4): K ordered (h, w, a)
        props = dec_cm.reshape(N, HW, 4, A).transpose(0, 1, 3, 2).reshape(N, HW * A, 4)
        dec_levels.append(props)
        prob_levels.append(probs.reshape(N, HW * A))
        bg_levels.append(bg)
        n_per_level.append(HW * A)

    proposals = jnp.concatenate(dec_levels, axis=1)          # (N, K, 4) clipped
    obj_prob = jnp.concatenate(prob_levels, axis=1)          # (N, K)

    # ---- per-level top-k (pre-NMS) ----
    sel_scores, sel_boxes, sel_lvls = [], [], []
    offset = 0
    for li, n in enumerate(n_per_level):
        pre_n = min(pre_nms_top_n, n)
        sc_lvl = obj_prob[:, offset:offset + n]
        top_v, top_i = lax.top_k(sc_lvl, pre_n)
        bidx = jnp.arange(N)[:, None]
        sel_scores.append(top_v)
        sel_boxes.append(proposals[:, offset:offset + n][bidx, top_i])
        sel_lvls.append(jnp.full((N, pre_n), li, dtype=jnp.int32))
        offset += n
    scores_sel = jnp.concatenate(sel_scores, axis=1)         # (N, P)
    boxes_sel = jnp.concatenate(sel_boxes, axis=1)           # (N, P, 4)
    lvls_sel = jnp.concatenate(sel_lvls, axis=1)             # (N, P)
    P = scores_sel.shape[1]

    # global per-image score sort (matches batched_nms ordering across levels)
    scores_sel, order = lax.top_k(scores_sel, P)
    bidx = jnp.arange(N)[:, None]
    boxes_sel = boxes_sel[bidx, order]
    lvls_sel = lvls_sel[bidx, order]

    # remove_small_boxes + score threshold (no-ops at the default thresholds)
    ws = boxes_sel[..., 2] - boxes_sel[..., 0]
    hs = boxes_sel[..., 3] - boxes_sel[..., 1]
    valid = (ws >= min_bbox_size) & (hs >= min_bbox_size) & (scores_sel >= cls_score_thresh)

    # batched_nms level-offset trick; NMS kernel wants coordinate-major (N,4,P)
    nms_offset = lvls_sel.astype(jnp.float32) * (max(img_h, img_w) + 1.0)
    boxes_cm = jnp.transpose(boxes_sel + nms_offset[..., None], (0, 2, 1))

    keep_f = pl.pallas_call(
        make_nms_kernel(P, nms_thresh),
        grid=(N,),
        in_specs=[pl.BlockSpec((1, 4, P), lambda n: (n, 0, 0)),
                  pl.BlockSpec((1, 1, P), lambda n: (n, 0, 0))],
        out_specs=pl.BlockSpec((1, 1, P), lambda n: (n, 0, 0)),
        out_shape=jax.ShapeDtypeStruct((N, 1, P), jnp.float32),
        compiler_params=pltpu.CompilerParams(
            dimension_semantics=("parallel",),
            vmem_limit_bytes=_VMEM_LIMIT_BYTES),
    )(boxes_cm, valid.astype(jnp.float32).reshape(N, 1, P))
    keep = keep_f.reshape(N, P) > 0.5
    # keep[:post_nms_top_n] — boxes are globally score-sorted per image
    keep = keep & (jnp.cumsum(keep.astype(jnp.int32), axis=-1) <= post_nms_top_n)

    # TODO(synk): dynamic-shape per-image outputs of filter_proposals cannot be
    # expressed in JAX; boxes are returned fixed-shape (score-sorted) + keep mask.
    # TODO(synk): training branch (Matcher, BalancedPositiveNegativeSampler,
    # smooth_l1 / cross_entropy losses) is not implemented; losses = {}.
    bg_vecs = jnp.stack(bg_levels, axis=0)                   # (levels, N, Cmid)
    losses = {}
    return boxes_sel, scores_sel, keep, bg_vecs, losses


# --------------------------------- main --------------------------------------
if __name__ == "__main__":
    key = jax.random.PRNGKey(0)
    k_feat, k_wc, k_bc, k_wcls, k_bcls, k_wbox, k_bbox = jax.random.split(key, 7)

    N, Cin, H, W = 2, 4, 16, 16
    A = 3                       # 1 size x 3 aspect ratios
    Cmid = Cin                  # RPNHead shared 3x3 conv keeps channel count
    image_size = (64, 64)       # stride 4 feature map

    feat = jax.random.normal(k_feat, (N, Cin, H, W), jnp.float32)

    params = {
        "w_conv": 0.1 * jax.random.normal(k_wc, (Cmid, Cin, 3, 3), jnp.float32),
        "b_conv": 0.1 * jax.random.normal(k_bc, (Cmid,), jnp.float32),
        "w_cls": 0.1 * jax.random.normal(k_wcls, (A * 2, Cmid), jnp.float32),
        "b_cls": 0.1 * jax.random.normal(k_bcls, (A * 2,), jnp.float32),
        "w_box": 0.1 * jax.random.normal(k_wbox, (A * 4, Cmid), jnp.float32),
        "b_box": 0.1 * jax.random.normal(k_bbox, (A * 4,), jnp.float32),
    }

    # tile_hw=128 so the toy 16x16 map exercises the multi-tile (T=2) path;
    # production sizes should use the default 512+ per the tuning guidance.
    boxes, scores, keep, bg_vecs, losses = background_aware_rpn_forward(
        [feat], params, image_size, tile_hw=128)

    jax.block_until_ready((boxes, scores, keep, bg_vecs))
    assert boxes.shape == (N, H * W * A, 4)
    assert scores.shape == (N, H * W * A)
    assert keep.shape == (N, H * W * A)
    assert bg_vecs.shape == (1, N, Cmid)
    print("KERNEL_OK")
</pallas_src>

<mosaic_0001>
module attributes {stable_mosaic.version = 11 : i64} {
  func.func @kernel(%arg0: i32, %arg1: i32, %arg2: memref<1x18x18x4xbf16, #tpu.memory_space<vmem>>, %arg3: memref<128x12xf32, #tpu.memory_space<vmem>>, %arg4: memref<9x4x4xbf16, #tpu.memory_space<vmem>>, %arg5: memref<1x4xf32, #tpu.memory_space<vmem>>, %arg6: memref<4x18xbf16, #tpu.memory_space<vmem>>, %arg7: memref<1x18xf32, #tpu.memory_space<vmem>>, %arg8: memref<1x128x12xf32, #tpu.memory_space<vmem>>, %arg9: memref<1x128x3xf32, #tpu.memory_space<vmem>>, %arg10: memref<1x1x4xf32, #tpu.memory_space<vmem>>, %arg11: memref<1x4xf32, #tpu.memory_space<vmem>>) attributes {dimension_semantics = [#tpu.dimension_semantics<parallel>, #tpu.dimension_semantics<arbitrary>], iteration_bounds = array<i64: 2, 2>, scalar_prefetch = 0 : i64, scratch_operands = 1 : i64, tpu.core_type = #tpu.core_type<tc>, window_params = [{transform_indices = @transform_0, window_bounds = array<i64: 1, 18, 18, 4>}, {transform_indices = @transform_1, window_bounds = array<i64: 128, 12>}, {pipeline_mode = #tpu.pipeline_mode<synchronous>, transform_indices = @transform_2, window_bounds = array<i64: 9, 4, 4>}, {pipeline_mode = #tpu.pipeline_mode<synchronous>, transform_indices = @transform_3, window_bounds = array<i64: 1, 4>}, {pipeline_mode = #tpu.pipeline_mode<synchronous>, transform_indices = @transform_4, window_bounds = array<i64: 4, 18>}, {pipeline_mode = #tpu.pipeline_mode<synchronous>, transform_indices = @transform_5, window_bounds = array<i64: 1, 18>}, {transform_indices = @transform_6, window_bounds = array<i64: 1, 128, 12>}, {transform_indices = @transform_7, window_bounds = array<i64: 1, 128, 3>}, {transform_indices = @transform_8, window_bounds = array<i64: 1, 1, 4>}]} {
    %c8_i32 = arith.constant 8 : i32
    %0 = arith.muli %arg1, %c8_i32 : i32
    %c0_i32 = arith.constant 0 : i32
    %1 = arith.cmpi eq, %arg1, %c0_i32 : i32
    %2 = arith.extui %1 : i1 to i32
    %c0_i32_0 = arith.constant 0 : i32
    %3 = arith.cmpi ne, %2, %c0_i32_0 : i32
    scf.if %3 {
      %cst_103 = arith.constant 0.000000e+00 : f32
      %177 = vector.broadcast %cst_103 : f32 to vector<1x4xf32>
      %c0_104 = arith.constant 0 : index
      %c0_105 = arith.constant 0 : index
      %178 = vector.load %arg11[%c0_104, %c0_105] : memref<1x4xf32, #tpu.memory_space<vmem>>, vector<1x4xf32>
      tpu.vector_store %arg11[%c0_104, %c0_105], %177 {strides = array<i32>} : memref<1x4xf32, #tpu.memory_space<vmem>>, vector<1x4xf32>,
    } else {
    }
    %cst = arith.constant 0.000000e+00 : f32
    %4 = vector.broadcast %cst : f32 to vector<128x4xf32>
    %c0_i32_1 = arith.constant 0 : i32
    %5 = arith.addi %0, %c0_i32_1 : i32
    %c0 = arith.constant 0 : index
    %6 = arith.index_cast %5 : i32 to index
    %c0_2 = arith.constant 0 : index
    %c0_3 = arith.constant 0 : index
    %7 = vector.load %arg2[%c0, %6, %c0_2, %c0_3] : memref<1x18x18x4xbf16, #tpu.memory_space<vmem>>, vector<1x8x16x4xbf16>
    %8 = vector.shape_cast %7 : vector<1x8x16x4xbf16> to vector<8x16x4xbf16>
    %9 = vector.shape_cast %8 : vector<8x16x4xbf16> to vector<128x4xbf16>
    %c0_4 = arith.constant 0 : index
    %c0_5 = arith.constant 0 : index
    %c0_6 = arith.constant 0 : index
    %10 = vector.load %arg4[%c0_4, %c0_5, %c0_6] : memref<9x4x4xbf16, #tpu.memory_space<vmem>>, vector<1x4x4xbf16>
    %11 = vector.shape_cast %10 : vector<1x4x4xbf16> to vector<4x4xbf16>
    %cst_7 = arith.constant dense<0.000000e+00> : vector<128x4xf32>
    %12 = tpu.matmul %9, %11, %cst_7 {dimension_numbers = #tpu.dot_dimension_numbers<[1], [0], [0], [1], [0, 0, 1, 1], [], []>} : vector<128x4xbf16>, vector<4x4xbf16>, vector<128x4xf32> -> vector<128x4xf32>
    %13 = arith.addf %4, %12 : vector<128x4xf32>
    %c0_i32_8 = arith.constant 0 : i32
    %14 = arith.addi %0, %c0_i32_8 : i32
    %c0_9 = arith.constant 0 : index
    %15 = arith.index_cast %14 : i32 to index
    %c1 = arith.constant 1 : index
    %c0_10 = arith.constant 0 : index
    %16 = vector.load %arg2[%c0_9, %15, %c1, %c0_10] : memref<1x18x18x4xbf16, #tpu.memory_space<vmem>>, vector<1x8x16x4xbf16>
    %17 = vector.shape_cast %16 : vector<1x8x16x4xbf16> to vector<8x16x4xbf16>
    %18 = vector.shape_cast %17 : vector<8x16x4xbf16> to vector<128x4xbf16>
    %c1_11 = arith.constant 1 : index
    %c0_12 = arith.constant 0 : index
    %c0_13 = arith.constant 0 : index
    %19 = vector.load %arg4[%c1_11, %c0_12, %c0_13] : memref<9x4x4xbf16, #tpu.memory_space<vmem>>, vector<1x4x4xbf16>
    %20 = vector.shape_cast %19 : vector<1x4x4xbf16> to vector<4x4xbf16>
    %cst_14 = arith.constant dense<0.000000e+00> : vector<128x4xf32>
    %21 = tpu.matmul %18, %20, %cst_14 {dimension_numbers = #tpu.dot_dimension_numbers<[1], [0], [0], [1], [0, 0, 1, 1], [], []>} : vector<128x4xbf16>, vector<4x4xbf16>, vector<128x4xf32> -> vector<128x4xf32>
    %22 = arith.addf %13, %21 : vector<128x4xf32>
    %c0_i32_15 = arith.constant 0 : i32
    %23 = arith.addi %0, %c0_i32_15 : i32
    %c0_16 = arith.constant 0 : index
    %24 = arith.index_cast %23 : i32 to index
    %c2 = arith.constant 2 : index
    %c0_17 = arith.constant 0 : index
    %25 = vector.load %arg2[%c0_16, %24, %c2, %c0_17] : memref<1x18x18x4xbf16, #tpu.memory_space<vmem>>, vector<1x8x16x4xbf16>
    %26 = vector.shape_cast %25 : vector<1x8x16x4xbf16> to vector<8x16x4xbf16>
    %27 = vector.shape_cast %26 : vector<8x16x4xbf16> to vector<128x4xbf16>
    %c2_18 = arith.constant 2 : index
    %c0_19 = arith.constant 0 : index
    %c0_20 = arith.constant 0 : index
    %28 = vector.load %arg4[%c2_18, %c0_19, %c0_20] : memref<9x4x4xbf16, #tpu.memory_space<vmem>>, vector<1x4x4xbf16>
    %29 = vector.shape_cast %28 : vector<1x4x4xbf16> to vector<4x4xbf16>
    %cst_21 = arith.constant dense<0.000000e+00> : vector<128x4xf32>
    %30 = tpu.matmul %27, %29, %cst_21 {dimension_numbers = #tpu.dot_dimension_numbers<[1], [0], [0], [1], [0, 0, 1, 1], [], []>} : vector<128x4xbf16>, vector<4x4xbf16>, vector<128x4xf32> -> vector<128x4xf32>
    %31 = arith.addf %22, %30 : vector<128x4xf32>
    %c1_i32 = arith.constant 1 : i32
    %32 = arith.addi %0, %c1_i32 : i32
    %c0_22 = arith.constant 0 : index
    %33 = arith.index_cast %32 : i32 to index
    %c0_23 = arith.constant 0 : index
    %c0_24 = arith.constant 0 : index
    %34 = vector.load %arg2[%c0_22, %33, %c0_23, %c0_24] : memref<1x18x18x4xbf16, #tpu.memory_space<vmem>>, vector<1x8x16x4xbf16>
    %35 = vector.shape_cast %34 : vector<1x8x16x4xbf16> to vector<8x16x4xbf16>
    %36 = vector.shape_cast %35 : vector<8x16x4xbf16> to vector<128x4xbf16>
    %c3 = arith.constant 3 : index
    %c0_25 = arith.constant 0 : index
    %c0_26 = arith.constant 0 : index
    %37 = vector.load %arg4[%c3, %c0_25, %c0_26] : memref<9x4x4xbf16, #tpu.memory_space<vmem>>, vector<1x4x4xbf16>
    %38 = vector.shape_cast %37 : vector<1x4x4xbf16> to vector<4x4xbf16>
    %cst_27 = arith.constant dense<0.000000e+00> : vector<128x4xf32>
    %39 = tpu.matmul %36, %38, %cst_27 {dimension_numbers = #tpu.dot_dimension_numbers<[1], [0], [0], [1], [0, 0, 1, 1], [], []>} : vector<128x4xbf16>, vector<4x4xbf16>, vector<128x4xf32> -> vector<128x4xf32>
    %40 = arith.addf %31, %39 : vector<128x4xf32>
    %c1_i32_28 = arith.constant 1 : i32
    %41 = arith.addi %0, %c1_i32_28 : i32
    %c0_29 = arith.constant 0 : index
    %42 = arith.index_cast %41 : i32 to index
    %c1_30 = arith.constant 1 : index
    %c0_31 = arith.constant 0 : index
    %43 = vector.load %arg2[%c0_29, %42, %c1_30, %c0_31] : memref<1x18x18x4xbf16, #tpu.memory_space<vmem>>, vector<1x8x16x4xbf16>
    %44 = vector.shape_cast %43 : vector<1x8x16x4xbf16> to vector<8x16x4xbf16>
    %45 = vector.shape_cast %44 : vector<8x16x4xbf16> to vector<128x4xbf16>
    %c4 = arith.constant 4 : index
    %c0_32 = arith.constant 0 : index
    %c0_33 = arith.constant 0 : index
    %46 = vector.load %arg4[%c4, %c0_32, %c0_33] : memref<9x4x4xbf16, #tpu.memory_space<vmem>>, vector<1x4x4xbf16>
    %47 = vector.shape_cast %46 : vector<1x4x4xbf16> to vector<4x4xbf16>
    %cst_34 = arith.constant dense<0.000000e+00> : vector<128x4xf32>
    %48 = tpu.matmul %45, %47, %cst_34 {dimension_numbers = #tpu.dot_dimension_numbers<[1], [0], [0], [1], [0, 0, 1, 1], [], []>} : vector<128x4xbf16>, vector<4x4xbf16>, vector<128x4xf32> -> vector<128x4xf32>
    %49 = arith.addf %40, %48 : vector<128x4xf32>
    %c1_i32_35 = arith.constant 1 : i32
    %50 = arith.addi %0, %c1_i32_35 : i32
    %c0_36 = arith.constant 0 : index
    %51 = arith.index_cast %50 : i32 to index
    %c2_37 = arith.constant 2 : index
    %c0_38 = arith.constant 0 : index
    %52 = vector.load %arg2[%c0_36, %51, %c2_37, %c0_38] : memref<1x18x18x4xbf16, #tpu.memory_space<vmem>>, vector<1x8x16x4xbf16>
    %53 = vector.shape_cast %52 : vector<1x8x16x4xbf16> to vector<8x16x4xbf16>
    %54 = vector.shape_cast %53 : vector<8x16x4xbf16> to vector<128x4xbf16>
    %c5 = arith.constant 5 : index
    %c0_39 = arith.constant 0 : index
    %c0_40 = arith.constant 0 : index
    %55 = vector.load %arg4[%c5, %c0_39, %c0_40] : memref<9x4x4xbf16, #tpu.memory_space<vmem>>, vector<1x4x4xbf16>
    %56 = vector.shape_cast %55 : vector<1x4x4xbf16> to vector<4x4xbf16>
    %cst_41 = arith.constant dense<0.000000e+00> : vector<128x4xf32>
    %57 = tpu.matmul %54, %56, %cst_41 {dimension_numbers = #tpu.dot_dimension_numbers<[1], [0], [0], [1], [0, 0, 1, 1], [], []>} : vector<128x4xbf16>, vector<4x4xbf16>, vector<128x4xf32> -> vector<128x4xf32>
    %58 = arith.addf %49, %57 : vector<128x4xf32>
    %c2_i32 = arith.constant 2 : i32
    %59 = arith.addi %0, %c2_i32 : i32
    %c0_42 = arith.constant 0 : index
    %60 = arith.index_cast %59 : i32 to index
    %c0_43 = arith.constant 0 : index
    %c0_44 = arith.constant 0 : index
    %61 = vector.load %arg2[%c0_42, %60, %c0_43, %c0_44] : memref<1x18x18x4xbf16, #tpu.memory_space<vmem>>, vector<1x8x16x4xbf16>
    %62 = vector.shape_cast %61 : vector<1x8x16x4xbf16> to vector<8x16x4xbf16>
    %63 = vector.shape_cast %62 : vector<8x16x4xbf16> to vector<128x4xbf16>
    %c6 = arith.constant 6 : index
    %c0_45 = arith.constant 0 : index
    %c0_46 = arith.constant 0 : index
    %64 = vector.load %arg4[%c6, %c0_45, %c0_46] : memref<9x4x4xbf16, #tpu.memory_space<vmem>>, vector<1x4x4xbf16>
    %65 = vector.shape_cast %64 : vector<1x4x4xbf16> to vector<4x4xbf16>
    %cst_47 = arith.constant dense<0.000000e+00> : vector<128x4xf32>
    %66 = tpu.matmul %63, %65, %cst_47 {dimension_numbers = #tpu.dot_dimension_numbers<[1], [0], [0], [1], [0, 0, 1, 1], [], []>} : vector<128x4xbf16>, vector<4x4xbf16>, vector<128x4xf32> -> vector<128x4xf32>
    %67 = arith.addf %58, %66 : vector<128x4xf32>
    %c2_i32_48 = arith.constant 2 : i32
    %68 = arith.addi %0, %c2_i32_48 : i32
    %c0_49 = arith.constant 0 : index
    %69 = arith.index_cast %68 : i32 to index
    %c1_50 = arith.constant 1 : index
    %c0_51 = arith.constant 0 : index
    %70 = vector.load %arg2[%c0_49, %69, %c1_50, %c0_51] : memref<1x18x18x4xbf16, #tpu.memory_space<vmem>>, vector<1x8x16x4xbf16>
    %71 = vector.shape_cast %70 : vector<1x8x16x4xbf16> to vector<8x16x4xbf16>
    %72 = vector.shape_cast %71 : vector<8x16x4xbf16> to vector<128x4xbf16>
    %c7 = arith.constant 7 : index
    %c0_52 = arith.constant 0 : index
    %c0_53 = arith.constant 0 : index
    %73 = vector.load %arg4[%c7, %c0_52, %c0_53] : memref<9x4x4xbf16, #tpu.memory_space<vmem>>, vector<1x4x4xbf16>
    %74 = vector.shape_cast %73 : vector<1x4x4xbf16> to vector<4x4xbf16>
    %cst_54 = arith.constant dense<0.000000e+00> : vector<128x4xf32>
    %75 = tpu.matmul %72, %74, %cst_54 {dimension_numbers = #tpu.dot_dimension_numbers<[1], [0], [0], [1], [0, 0, 1, 1], [], []>} : vector<128x4xbf16>, vector<4x4xbf16>, vector<128x4xf32> -> vector<128x4xf32>
    %76 = arith.addf %67, %75 : vector<128x4xf32>
    %c2_i32_55 = arith.constant 2 : i32
    %77 = arith.addi %0, %c2_i32_55 : i32
    %c0_56 = arith.constant 0 : index
    %78 = arith.index_cast %77 : i32 to index
    %c2_57 = arith.constant 2 : index
    %c0_58 = arith.constant 0 : index
    %79 = vector.load %arg2[%c0_56, %78, %c2_57, %c0_58] : memref<1x18x18x4xbf16, #tpu.memory_space<vmem>>, vector<1x8x16x4xbf16>
    %80 = vector.shape_cast %79 : vector<1x8x16x4xbf16> to vector<8x16x4xbf16>
    %81 = vector.shape_cast %80 : vector<8x16x4xbf16> to vector<128x4xbf16>
    %c8 = arith.constant 8 : index
    %c0_59 = arith.constant 0 : index
    %c0_60 = arith.constant 0 : index
    %82 = vector.load %arg4[%c8, %c0_59, %c0_60] : memref<9x4x4xbf16, #tpu.memory_space<vmem>>, vector<1x4x4xbf16>
    %83 = vector.shape_cast %82 : vector<1x4x4xbf16> to vector<4x4xbf16>
    %cst_61 = arith.constant dense<0.000000e+00> : vector<128x4xf32>
    %84 = tpu.matmul %81, %83, %cst_61 {dimension_numbers = #tpu.dot_dimension_numbers<[1], [0], [0], [1], [0, 0, 1, 1], [], []>} : vector<128x4xbf16>, vector<4x4xbf16>, vector<128x4xf32> -> vector<128x4xf32>
    %85 = arith.addf %76, %84 : vector<128x4xf32>
    %c0_62 = arith.constant 0 : index
    %c0_63 = arith.constant 0 : index
    %86 = vector.load %arg5[%c0_62, %c0_63] : memref<1x4xf32, #tpu.memory_space<vmem>>, vector<1x4xf32>
    %87 = vector.broadcast %86 : vector<1x4xf32> to vector<128x4xf32>
    %88 = arith.addf %85, %87 : vector<128x4xf32>
    %cst_64 = arith.constant 0.000000e+00 : f32
    %89 = vector.broadcast %cst_64 : f32 to vector<128x4xf32>
    %90 = arith.maximumf %88, %89 : vector<128x4xf32>
    %c0_65 = arith.constant 0 : index
    %c0_66 = arith.constant 0 : index
    %91 = vector.load %arg11[%c0_65, %c0_66] : memref<1x4xf32, #tpu.memory_space<vmem>>, vector<1x4xf32>
    %cst_67 = arith.constant dense<0.000000e+00> : vector<4xf32>
    %92 = vector.multi_reduction <add>, %90, %cst_67 [0] : vector<128x4xf32> to vector<4xf32>
    %93 = vector.shape_cast %92 : vector<4xf32> to vector<1x4xf32>
    %94 = arith.addf %91, %93 : vector<1x4xf32>
    %c0_68 = arith.constant 0 : index
    %c0_69 = arith.constant 0 : index
    %95 = vector.load %arg11[%c0_68, %c0_69] : memref<1x4xf32, #tpu.memory_space<vmem>>, vector<1x4xf32>
    tpu.vector_store %arg11[%c0_68, %c0_69], %94 {strides = array<i32>} : memref<1x4xf32, #tpu.memory_space<vmem>>, vector<1x4xf32>,
    %c1_i32_70 = arith.constant 1 : i32
    %96 = arith.cmpi eq, %arg1, %c1_i32_70 : i32
    %97 = arith.extui %96 : i1 to i32
    %c0_i32_71 = arith.constant 0 : i32
    %98 = arith.cmpi ne, %97, %c0_i32_71 : i32
    scf.if %98 {
      %c0_103 = arith.constant 0 : index
      %c0_104 = arith.constant 0 : index
      %177 = vector.load %arg11[%c0_103, %c0_104] : memref<1x4xf32, #tpu.memory_space<vmem>>, vector<1x4xf32>
      %cst_105 = arith.constant 3.906250e-03 : f32
      %178 = vector.broadcast %cst_105 : f32 to vector<1x4xf32>
      %179 = arith.mulf %177, %178 : vector<1x4xf32>
      %c0_106 = arith.constant 0 : index
      %c0_107 = arith.constant 0 : index
      %c0_108 = arith.constant 0 : index
      %180 = vector.load %arg10[%c0_106, %c0_107, %c0_108] : memref<1x1x4xf32, #tpu.memory_space<vmem>>, vector<1x1x4xf32>
      %181 = vector.shape_cast %180 : vector<1x1x4xf32> to vector<1x4xf32>
      %182 = vector.shape_cast %179 : vector<1x4xf32> to vector<1x1x4xf32>
      tpu.vector_store %arg10[%c0_106, %c0_107, %c0_108], %182 {strides = array<i32>} : memref<1x1x4xf32, #tpu.memory_space<vmem>>, vector<1x1x4xf32>,
    } else {
    }
    %99 = arith.truncf %90 : vector<128x4xf32> to vector<128x4xbf16>
    %c0_72 = arith.constant 0 : index
    %c0_73 = arith.constant 0 : index
    %100 = vector.load %arg6[%c0_72, %c0_73] : memref<4x18xbf16, #tpu.memory_space<vmem>>, vector<4x18xbf16>
    %cst_74 = arith.constant dense<0.000000e+00> : vector<128x18xf32>
    %101 = tpu.matmul %99, %100, %cst_74 {dimension_numbers = #tpu.dot_dimension_numbers<[1], [0], [0], [1], [0, 0, 1, 1], [], []>} : vector<128x4xbf16>, vector<4x18xbf16>, vector<128x18xf32> -> vector<128x18xf32>
    %c0_75 = arith.constant 0 : index
    %c0_76 = arith.constant 0 : index
    %102 = vector.load %arg7[%c0_75, %c0_76] : memref<1x18xf32, #tpu.memory_space<vmem>>, vector<1x18xf32>
    %103 = vector.broadcast %102 : vector<1x18xf32> to vector<128x18xf32>
    %104 = arith.addf %101, %103 : vector<128x18xf32>
    %105 = vector.extract_strided_slice %104 {offsets = [0, 0], sizes = [128, 3], strides = [1, 1]} : vector<128x18xf32> to vector<128x3xf32>
    %106 = vector.extract_strided_slice %104 {offsets = [0, 3], sizes = [128, 3], strides = [1, 1]} : vector<128x18xf32> to vector<128x3xf32>
    %107 = vector.extract_strided_slice %104 {offsets = [0, 6], sizes = [128, 3], strides = [1, 1]} : vector<128x18xf32> to vector<128x3xf32>
    %108 = vector.extract_strided_slice %104 {offsets = [0, 9], sizes = [128, 3], strides = [1, 1]} : vector<128x18xf32> to vector<128x3xf32>
    %109 = vector.extract_strided_slice %104 {offsets = [0, 12], sizes = [128, 3], strides = [1, 1]} : vector<128x18xf32> to vector<128x3xf32>
    %cst_77 = arith.constant 4.13516665 : f32
    %110 = vector.broadcast %cst_77 : f32 to vector<128x3xf32>
    %111 = arith.minimumf %109, %110 : vector<128x3xf32>
    %112 = vector.extract_strided_slice %104 {offsets = [0, 15], sizes = [128, 3], strides = [1, 1]} : vector<128x18xf32> to vector<128x3xf32>
    %cst_78 = arith.constant 4.13516665 : f32
    %113 = vector.broadcast %cst_78 : f32 to vector<128x3xf32>
    %114 = arith.minimumf %112, %113 : vector<128x3xf32>
    %c0_79 = arith.constant 0 : index
    %c0_80 = arith.constant 0 : index
    %115 = vector.load %arg3[%c0_79, %c0_80] : memref<128x12xf32, #tpu.memory_space<vmem>>, vector<128x12xf32>
    %116 = vector.extract_strided_slice %115 {offsets = [0, 0], sizes = [128, 3], strides = [1, 1]} : vector<128x12xf32> to vector<128x3xf32>
    %117 = vector.extract_strided_slice %115 {offsets = [0, 3], sizes = [128, 3], strides = [1, 1]} : vector<128x12xf32> to vector<128x3xf32>
    %118 = vector.extract_strided_slice %115 {offsets = [0, 6], sizes = [128, 3], strides = [1, 1]} : vector<128x12xf32> to vector<128x3xf32>
    %119 = vector.extract_strided_slice %115 {offsets = [0, 9], sizes = [128, 3], strides = [1, 1]} : vector<128x12xf32> to vector<128x3xf32>
    %120 = arith.subf %118, %116 : vector<128x3xf32>
    %121 = arith.subf %119, %117 : vector<128x3xf32>
    %cst_81 = arith.constant 5.000000e-01 : f32
    %122 = vector.broadcast %cst_81 : f32 to vector<128x3xf32>
    %123 = arith.mulf %122, %120 : vector<128x3xf32>
    %124 = arith.addf %116, %123 : vector<128x3xf32>
    %cst_82 = arith.constant 5.000000e-01 : f32
    %125 = vector.broadcast %cst_82 : f32 to vector<128x3xf32>
    %126 = arith.mulf %125, %121 : vector<128x3xf32>
    %127 = arith.addf %117, %126 : vector<128x3xf32>
    %128 = arith.mulf %107, %120 : vector<128x3xf32>
    %129 = arith.addf %128, %124 : vector<128x3xf32>
    %130 = arith.mulf %108, %121 : vector<128x3xf32>
    %131 = arith.addf %130, %127 : vector<128x3xf32>
    %132 = math.exp %111 : vector<128x3xf32>
    %133 = arith.mulf %132, %120 : vector<128x3xf32>
    %134 = math.exp %114 : vector<128x3xf32>
    %135 = arith.mulf %134, %121 : vector<128x3xf32>
    %cst_83 = arith.constant 5.000000e-01 : f32
    %136 = vector.broadcast %cst_83 : f32 to vector<128x3xf32>
    %137 = arith.mulf %136, %133 : vector<128x3xf32>
    %138 = arith.subf %129, %137 : vector<128x3xf32>
    %cst_84 = arith.constant 0.000000e+00 : f32
    %cst_85 = arith.constant 6.400000e+01 : f32
    %139 = vector.broadcast %cst_84 : f32 to vector<128x3xf32>
    %140 = arith.maximumf %139, %138 : vector<128x3xf32>
    %141 = vector.broadcast %cst_85 : f32 to vector<128x3xf32>
    %142 = arith.minimumf %141, %140 : vector<128x3xf32>
    %cst_86 = arith.constant 5.000000e-01 : f32
    %143 = vector.broadcast %cst_86 : f32 to vector<128x3xf32>
    %144 = arith.mulf %143, %135 : vector<128x3xf32>
    %145 = arith.subf %131, %144 : vector<128x3xf32>
    %cst_87 = arith.constant 0.000000e+00 : f32
    %cst_88 = arith.constant 6.400000e+01 : f32
    %146 = vector.broadcast %cst_87 : f32 to vector<128x3xf32>
    %147 = arith.maximumf %146, %145 : vector<128x3xf32>
    %148 = vector.broadcast %cst_88 : f32 to vector<128x3xf32>
    %149 = arith.minimumf %148, %147 : vector<128x3xf32>
    %cst_89 = arith.constant 5.000000e-01 : f32
    %150 = vector.broadcast %cst_89 : f32 to vector<128x3xf32>
    %151 = arith.mulf %150, %133 : vector<128x3xf32>
    %152 = arith.addf %129, %151 : vector<128x3xf32>
    %cst_90 = arith.constant 0.000000e+00 : f32
    %cst_91 = arith.constant 6.400000e+01 : f32
    %153 = vector.broadcast %cst_90 : f32 to vector<128x3xf32>
    %154 = arith.maximumf %153, %152 : vector<128x3xf32>
    %155 = vector.broadcast %cst_91 : f32 to vector<128x3xf32>
    %156 = arith.minimumf %155, %154 : vector<128x3xf32>
    %cst_92 = arith.constant 5.000000e-01 : f32
    %157 = vector.broadcast %cst_92 : f32 to vector<128x3xf32>
    %158 = arith.mulf %157, %135 : vector<128x3xf32>
    %159 = arith.addf %131, %158 : vector<128x3xf32>
    %cst_93 = arith.constant 0.000000e+00 : f32
    %cst_94 = arith.constant 6.400000e+01 : f32
    %160 = vector.broadcast %cst_93 : f32 to vector<128x3xf32>
    %161 = arith.maximumf %160, %159 : vector<128x3xf32>
    %162 = vector.broadcast %cst_94 : f32 to vector<128x3xf32>
    %163 = arith.minimumf %162, %161 : vector<128x3xf32>
    %164 = tpu.concatenate %142, %149, %156, %163 in 1 : vector<128x3xf32>, vector<128x3xf32>, vector<128x3xf32>, vector<128x3xf32> -> vector<128x12xf32>
    %c0_95 = arith.constant 0 : index
    %c0_96 = arith.constant 0 : index
    %c0_97 = arith.constant 0 : index
    %165 = vector.load %arg8[%c0_95, %c0_96, %c0_97] : memref<1x128x12xf32, #tpu.memory_space<vmem>>, vector<1x128x12xf32>
    %166 = vector.shape_cast %165 : vector<1x128x12xf32> to vector<128x12xf32>
    %167 = vector.shape_cast %164 : vector<128x12xf32> to vector<1x128x12xf32>
    tpu.vector_store %arg8[%c0_95, %c0_96, %c0_97], %167 {strides = array<i32>} : memref<1x128x12xf32, #tpu.memory_space<vmem>>, vector<1x128x12xf32>,
    %168 = arith.subf %105, %106 : vector<128x3xf32>
    %169 = math.exp %168 : vector<128x3xf32>
    %cst_98 = arith.constant 1.000000e+00 : f32
    %170 = vector.broadcast %cst_98 : f32 to vector<128x3xf32>
    %171 = arith.addf %170, %169 : vector<128x3xf32>
    %cst_99 = arith.constant 1.000000e+00 : f32
    %172 = vector.broadcast %cst_99 : f32 to vector<128x3xf32>
    %173 = arith.divf %172, %171 : vector<128x3xf32>
    %c0_100 = arith.constant 0 : index
    %c0_101 = arith.constant 0 : index
    %c0_102 = arith.constant 0 : index
    %174 = vector.load %arg9[%c0_100, %c0_101, %c0_102] : memref<1x128x3xf32, #tpu.memory_space<vmem>>, vector<1x128x3xf32>
    %175 = vector.shape_cast %174 : vector<1x128x3xf32> to vector<128x3xf32>
    %176 = vector.shape_cast %173 : vector<128x3xf32> to vector<1x128x3xf32>
    tpu.vector_store %arg9[%c0_100, %c0_101, %c0_102], %176 {strides = array<i32>} : memref<1x128x3xf32, #tpu.memory_space<vmem>>, vector<1x128x3xf32>,
    return
  }
  func.func @transform_0(%arg0: i32, %arg1: i32) -> (i32, i32, i32, i32) {
    %c0_i32 = arith.constant 0 : i32
    %c0_i32_0 = arith.constant 0 : i32
    %c0_i32_1 = arith.constant 0 : i32
    %c0_i32_2 = arith.constant 0 : i32
    return %arg0, %c0_i32, %c0_i32_0, %c0_i32_1 : i32, i32, i32, i32
  }
  func.func @transform_1(%arg0: i32, %arg1: i32) -> (i32, i32) {
    %c0_i32 = arith.constant 0 : i32
    %c0_i32_0 = arith.constant 0 : i32
    return %arg1, %c0_i32 : i32, i32
  }
  func.func @transform_2(%arg0: i32, %arg1: i32) -> (i32, i32, i32) {
    %c0_i32 = arith.constant 0 : i32
    %c0_i32_0 = arith.constant 0 : i32
    %c0_i32_1 = arith.constant 0 : i32
    %c0_i32_2 = arith.constant 0 : i32
    return %c0_i32, %c0_i32_0, %c0_i32_1 : i32, i32, i32
  }
  func.func @transform_3(%arg0: i32, %arg1: i32) -> (i32, i32) {
    %c0_i32 = arith.constant 0 : i32
    %c0_i32_0 = arith.constant 0 : i32
    %c0_i32_1 = arith.constant 0 : i32
    return %c0_i32, %c0_i32_0 : i32, i32
  }
  func.func @transform_4(%arg0: i32, %arg1: i32) -> (i32, i32) {
    %c0_i32 = arith.constant 0 : i32
    %c0_i32_0 = arith.constant 0 : i32
    %c0_i32_1 = arith.constant 0 : i32
    return %c0_i32, %c0_i32_0 : i32, i32
  }
  func.func @transform_5(%arg0: i32, %arg1: i32) -> (i32, i32) {
    %c0_i32 = arith.constant 0 : i32
    %c0_i32_0 = arith.constant 0 : i32
    %c0_i32_1 = arith.constant 0 : i32
    return %c0_i32, %c0_i32_0 : i32, i32
  }
  func.func @transform_6(%arg0: i32, %arg1: i32) -> (i32, i32, i32) {
    %c0_i32 = arith.constant 0 : i32
    %c0_i32_0 = arith.constant 0 : i32
    return %arg0, %arg1, %c0_i32 : i32, i32, i32
  }
  func.func @transform_7(%arg0: i32, %arg1: i32) -> (i32, i32, i32) {
    %c0_i32 = arith.constant 0 : i32
    %c0_i32_0 = arith.constant 0 : i32
    return %arg0, %arg1, %c0_i32 : i32, i32, i32
  }
  func.func @transform_8(%arg0: i32, %arg1: i32) -> (i32, i32, i32) {
    %c0_i32 = arith.constant 0 : i32
    %c0_i32_0 = arith.constant 0 : i32
    %c0_i32_1 = arith.constant 0 : i32
    return %arg0, %c0_i32, %c0_i32_0 : i32, i32, i32
  }
}

</mosaic_0001>

<bundles_post_ra>
// kernel: tpu_custom_call.1
= control target key start
LH: loop header
LB: loop body
LE: loop exit
PB: predicated region body
PF: predicated region fallthrough
CT: control target
= control target key end

     0   :  { %14 = vsyncpa [#allocation4], 0  ;;  %s7032_s0 = inlined_call_operand.vmem [shape: bf16[2,18,18,4], index: 0, kind: input, shape index: {}]   ;;  %s7033_s1 = inlined_call_operand.vmem [shape: f32[256,12], index: 1, kind: input, shape index: {}]   ;;  %s7034_s2 = inlined_call_operand.vmem [shape: bf16[9,4,4], index: 2, kind: input, shape index: {}]   ;;  %s7035_s3 = inlined_call_operand.vmem [shape: f32[1,4], index: 3, kind: input, shape index: {}]   ;;  %s7036_s4 = inlined_call_operand.vmem [shape: bf16[4,18], index: 4, kind: input, shape index: {}]   ;;  %s7037_s5 = inlined_call_operand.vmem [shape: f32[1,18], index: 5, kind: input, shape index: {}]   ;;  %s7038_s6 = inlined_call_operand.vmem [shape: f32[2,256,12], index: 6, kind: output, shape index: {0}]   ;;  %s7039_s7 = inlined_call_operand.vmem [shape: f32[2,256,3], index: 7, kind: output, shape index: {1}]   ;;  %s7040_s8 = inlined_call_operand.hbm [shape: f32[2,1,4], index: 8, kind: output, shape index: {2}]  }
   0x1   :  { %16 = vsyncpa [#allocation4 + $0x1], 0  ;;  %s5227_s27 = smov 0   ;;  %s5229_s28 = smov 0  }
   0x2   :  { %s5231_s29 = smov 0   ;;  %s5233_s30 = smov 0  }
   0x3   :  { %s5235_s9 = smov 0   ;;  %s5237_s10 = smov 0  }
   0x4   :  { %s5239_s11 = smov 0   ;;  %s5241_s12 = smov 0  }
   0x5 LB: > { %7062 = sst [smem:[#allocation6_spill]] %s5147_s27  ;;  %s4168_s13 = sadd.s32 4294967295, %s5175_s12   ;;  %s5175_s12 = sphi %s5241_s12, %s22_s12   ;;  %s5171_s11 = sphi %s5239_s11, %s7120_s11   ;;  %s5167_s10 = sphi %s5237_s10, %s7119_s10   ;;  %s5163_s9 = sphi %s5235_s9, %s7118_s9   ;;  %s5159_s30 = sphi %s5233_s30, %s7117_s30   ;;  %s5155_s29 = sphi %s5231_s29, %s7123_s29   ;;  %s5151_s28 = sphi %s5229_s28, %s7122_s28   ;;  %s5147_s27 = sphi %s5227_s27, %s7121_s27  }
   0x6   : > { %7063 = sst [smem:[#allocation7_spill]] %s5155_s29  ;;  %s4169_s14 = sadd.s32 4294967294, %s5175_s12  }
   0x7   : > { %7064 = sst [smem:[#allocation8_spill]] %s5167_s10  ;;  %s31_s15 = sadd.s32 1, %s5167_s10 }
   0x8   : > { %7065 = sst [smem:[#allocation9_spill]] %s5171_s11  ;;  %p32_p0 = scmp.ge.s32.totalorder %s31_s15, 2 }
   0x9   : > { %7066 = sst [smem:[#allocation10_spill]] %s5175_s12  ;;  %s34_s16 = sadd.s32 1, %s5171_s11 }
   0xa   : > { %p243_p1 = scmp.ne.s32.totalorder %s5155_s29, %s5151_s28  ;;  %p244_p2 = scmp.eq.s32.totalorder %s4168_s13, 3 }
   0xb   : > { %s7125_s15 = smov (%p32_p0, %s31_s15), 0  ;;  %s7127_s16 = smov (!%p32_p0, %s34_s16), %s5171_s11 }
   0xc   : > { %7067 = sst [smem:[#allocation11_spill]] %s7125_s15  ;;  %p5276_p3 = por %p244_p2, %p243_p1 }
   0xd   : > { %p249_p4 = scmp.ne.s32.totalorder %s5151_s28, %s5147_s27  ;;  %p36_p5 = scmp.ge.s32.totalorder %s7127_s16, 2 }
   0xe   : > { %p250_p6 = scmp.eq.s32.totalorder %s4169_s14, 3  ;;  %p4172_p7 = scmp.ge.s32.totalorder %s5175_s12, 1 }
   0xf   : > { %p297_p8 = scmp.lt.s32.totalorder %s5175_s12, 5  ;;  %s7129_s16 = smov (%p36_p5, %s7127_s16), 0 }
  0x10   : > { %7069 = sst [smem:[#allocation12_spill]] %s7129_s16  ;;  %p5286_p9 = por %p250_p6, %p249_p4 }
  0x11   : > { %p298_p10 = pnand %p4172_p7, %p297_p8  ;;  %s230_s19 = ssub.s32 %s5171_s11, %s7129_s16 }
  0x12   : > { %s7070_s18 = scalar_select %p5286_p9, 1, 0 }
  0x13   : > { %s233_s20 = sadd.s32 1, %s5155_s29  ;;  %p231_p11 = scmp.eq.s32.totalorder %s230_s19, 0 }
  0x14   : > { %7071 = sst [smem:[#allocation13_spill]] %s7070_s18  ;;  %301 = sbr.rel (%p298_p10) target bundleno = 1090 (0x442), region = 44 }
  0x15   : > { %s5294_s21 = scalar_select %p231_p11, %s5155_s29, %s233_s20  }
  0x17   : > { %7072 = sst [smem:[#allocation14_spill]] %s5294_s21 }
  0x1b   : > { %p353_p12 = scmp.lt.s32.totalorder %s5163_s9, 1  ;;  %s4174_s23 = sshll.u32 %s5159_s30, 4 }
  0x1c   : > { %p359_p13 = scmp.lt.s32.totalorder %s4174_s23, 31  ;;  %s7073_s13 = sand.u32 1, %s5151_s28  }
  0x1d   : > { %s354_s24 = scalar_select %p353_p12, %s5163_s9, 1 }
  0x1e   : > { %s7131_s23 = smov (!%p359_p13, %s4174_s23), 31  ;;  %p4183_p0 = scmp.ne.s32.totalorder %s5159_s30, 0 }
  0x1f   : > { %s4885_s25 = smul.u32 216, %s354_s24  ;;  %s4177_s26 = sshll.u32 %s354_s24, 5  ;;  %vm390_vm0 = vcmask (!%p4183_p0), 24576   ;;  %v5177_v0 = vmov (!%p4183_p0), 0.0  }
  0x20   : > { %s4175_s20 = sshll.u32 %s7131_s23, 3  ;;  %s370_s16 = sadd.s32 %s4177_s26, %s7131_s23  ;;  %391 = vst.msk [vmem:[#allocation2] sm:$0x1] (!%p4183_p0), %vm390_vm0, %v5177_v0 }
  0x21   : > { %s357_s19 = scalar_lea.vmem %s7032_s0, %s4885_s25  ;;  %s5306_s10 = scalar_lea.vmem %s7033_s1, %s4175_s20 }
  0x22   : > { %s4178_s21 = sshll.u32 %s370_s16, 3  ;;  %s5320_s25 = scalar_lea.vmem [#allocation3], %s7073_s13 }
  0x23   : > { %s5311_s18 = scalar_lea.vmem %s7038_s6, %s4178_s21  ;;  %s5316_s12 = scalar_lea.vmem %s7039_s7, %s4178_s21 }
  0x24   : > { %389 = sbr.rel (%p4183_p0) target bundleno = 43 (0x2b), region = 48 }
  0x2b PF: > { %vm666_vm1 = vcmask 1041408   ;;  %v4303_v1 = vld [vmem:[%s7034_s2 + $0x8] sm:$0x3]  ;;  %v4186_v2 = vld [vmem:[%s7034_s2 + $0x2] sm:$0x3]  ;;  %s4476_s16 = smul.u32 96, %s5159_s30 }
  0x2c   : > { %4879 = vmatprep.subr.msk.bf16.mxu0 %vm666_vm1, %v4303_v1  ;;  %4875 = vmatprep.subr.msk.bf16.mxu1 %vm666_vm1, %v4186_v2  ;;  %v1649_v3 = vsel %vm666_vm1, %v4303_v1, 0  ;;  %v668_v4 = vsel %vm666_vm1, %v4186_v2, 0  ;;  %vm420_vm2 = vsmask.f32 3328  ;;  %vm421_vm3 = vsmask.f32 7440 }
  0x2d   : > { %4640 = vmatpush3.bf16.msra.mxu0 %v1649_v3  ;;  %4568 = vmatpush3.bf16.msra.mxu1 %v668_v4  ;;  %s5334_s21 = scalar_lea.vmem %s357_s19, %s4476_s16  ;;  %v5339_v5 = vld [vmem:[%s7034_s2 + $0xa] sm:$0x3]  ;;  %v5344_v6 = vld [vmem:[%s7034_s2] sm:$0x3]  ;;  %vm5379_vm4 = vmor %vm420_vm2, %vm421_vm3  ;;  %vm641_vm5 = vcmask 31744   ;;  %vm955_vm6 = vcmask 1042432  }
  0x2e   : > { %v5347_v7 = vld [vmem:[%s5334_s21] sm:$0xf]  ;;  %v5350_v8 = vld [vmem:[%s5334_s21 + $0x4] sm:$0xf]  ;;  %v5353_v9 = vld [vmem:[%s5334_s21 + $0x8] sm:$0x1]  ;;  %4880 = vmatprep.subr.msk.bf16.mxu0 %vm666_vm1, %v5339_v5  ;;  %4876 = vmatprep.subr.msk.bf16.mxu1 %vm666_vm1, %v5344_v6 }
  0x2f   : > { %v424_v10 = vshrl.u32 %v5347_v7, 16  ;;  %v427_v11 = vshll.u32 %v5347_v7, 16  ;;  %v433_v12 = vshll.u32 %v5350_v8, 16  ;;  %v437_v13 = vshrl.u32 %v5350_v8, 16  ;;  %v4279_v14 = vld [vmem:[%s5334_s21 + $0xc] sm:$0xf] }
  0x30   : > { %v443_v15 = vshll.u32 %v5353_v9, 16  ;;  %v5366_v16 = vld [vmem:[%s5334_s21 + $0x10] sm:$0xf]  ;;  %v5369_v17 = vld [vmem:[%s5334_s21 + $0x14] sm:$0x1]  ;;  %v1407_v23 = vshrl.u32 %v4279_v14, 16 }
  0x31   : > { %v426_v18 = vrot.slane %v424_v10, 4  ;;  %v429_v19 = vrot.slane %v427_v11, 5  ;;  %v435_v20 = vrot.slane %v433_v12, 5  ;;  %v439_v21 = vrot.slane %v437_v13, 4  ;;  %v5375_v30 = vld [vmem:[%s5334_s21 + $0xc] sm:$0xf] }
  0x32   : > { %v445_v22 = vrot.slane %v443_v15, 5  ;;  %v1410_v24 = vshll.u32 %v4279_v14, 16  ;;  %v1416_v25 = vshll.u32 %v5366_v16, 16  ;;  %v1420_v28 = vshrl.u32 %v5366_v16, 16  ;;  %v5384_v35 = vld [vmem:[%s5334_s21 + $0x10] sm:$0xf] }
  0x33   : > { %v430_v26 = vor.u32 %v429_v19, %v426_v18  ;;  %v440_v27 = vor.u32 %v439_v21, %v435_v20  ;;  %v1426_v29 = vshll.u32 %v5369_v17, 16  ;;  %v1409_v32 = vrot.slane %v1407_v23, 4  ;;  %v5387_v41 = vld [vmem:[%s5334_s21 + $0x14] sm:$0x1]  ;;  %v4282_v52 = vld [vmem:[%s5334_s21 + $0x18] sm:$0xf] }
  0x34   : > { %v1412_v33 = vrot.slane %v1410_v24, 5  ;;  %v1418_v34 = vrot.slane %v1416_v25, 5  ;;  %v1422_v38 = vrot.slane %v1420_v28, 4  ;;  %v448_v42 = vshrl.u32 %v5375_v30, 16  ;;  %v5400_v57 = vld [vmem:[%s5334_s21 + $0x1c] sm:$0xf] }
  0x35   : > { %v431_v36 = vrot.slane %v430_v26, 4  ;;  %v441_v37 = vrot.slane %v440_v27, 4  ;;  %v1428_v40 = vrot.slane %v1426_v29, 5  ;;  %v451_v43 = vshll.u32 %v5375_v30, 16  ;;  %v5407_v61 = vld [vmem:[%s5334_s21 + $0x20] sm:$0x1] }
  0x36   : > { %v1413_v39 = vor.u32 %v1412_v33, %v1409_v32  ;;  %v1423_v46 = vor.u32 %v1422_v38, %v1418_v34  ;;  %v457_v47 = vshll.u32 %v5384_v35, 16  ;;  %v450_v50 = vrot.slane %v448_v42, 4  ;;  %v5417_v18 = vld [vmem:[%s5334_s21 + $0x18] sm:$0xf]  ;;  %v5424_v23 = vld [vmem:[%s5334_s21 + $0x1c] sm:$0xf] }
  0x37   : > { %v436_v44 = vsel %vm5379_vm4, %v431_v36, %v435_v20  ;;  %v446_v45 = vsel %vm5379_vm4, %v441_v37, %v445_v22  ;;  %v453_v51 = vrot.slane %v451_v43, 5  ;;  %v461_v55 = vshrl.u32 %v5384_v35, 16  ;;  %v5431_v33 = vld [vmem:[%s5334_s21 + $0x20] sm:$0x1]  ;;  %p4463_p1 = scmp.ne.s32.totalorder %s5159_s30, 1 }
  0x38   : > { %v4187_v48 = vcombine.low %v436_v44, %v446_v45  ;;  %v1414_v49 = vrot.slane %v1413_v39, 4  ;;  %v1424_v53 = vrot.slane %v1423_v46, 4  ;;  %v459_v54 = vrot.slane %v457_v47, 5  ;;  %7076 = vst [vmem:[#allocation15_spill] sm:$0xff] %v5431_v33 }
  0x39   : > { %v467_v56 = vshll.u32 %v5387_v41, 16  ;;  %v454_v60 = vor.u32 %v453_v51, %v450_v50  ;;  %v463_v0 = vrot.slane %v461_v55, 4  ;;  %v1431_v2 = vshrl.u32 %v4282_v52, 16 }
  0x3a   : > { %4569 = vmatprep.mubr.msk.bf16.mxu1 %vm641_vm5, %v4187_v48  ;;  %v1419_v58 = vsel %vm5379_vm4, %v1414_v49, %v1418_v34  ;;  %v1429_v63 = vsel %vm5379_vm4, %v1424_v53, %v1428_v40  ;;  %v1434_v10 = vshll.u32 %v4282_v52, 16  ;;  %v1440_v11 = vshll.u32 %v5400_v57, 16  ;;  %v4285_v40 = vld [vmem:[%s5334_s21 + $0x24] sm:$0xf]  ;;  %v5448_v52 = vld [vmem:[%s5334_s21 + $0x2c] sm:$0x1] }
  0x3b   : > { %v469_v1 = vrot.slane %v467_v56, 5  ;;  %v4304_v3 = vcombine.low %v1419_v58, %v1429_v63  ;;  %v455_v4 = vrot.slane %v454_v60, 4  ;;  %v464_v12 = vor.u32 %v463_v0, %v459_v54  ;;  %v5454_v63 = vld [vmem:[%s5334_s21 + $0x24] sm:$0xf] }
  0x3c   : > { %v1433_v13 = vrot.slane %v1431_v2, 4  ;;  %v1444_v14 = vshrl.u32 %v5400_v57, 16  ;;  %v1450_v15 = vshll.u32 %v5407_v61, 16  ;;  %v1436_v21 = vrot.slane %v1434_v10, 5 }
  0x3d   : > { %4641 = vmatprep.mubr.msk.bf16.mxu0 %vm641_vm5, %v4304_v3  ;;  %v460_v20 = vsel %vm5379_vm4, %v455_v4, %v459_v54  ;;  %v1442_v22 = vrot.slane %v1440_v11, 5  ;;  %v465_v24 = vrot.slane %v464_v12, 4  ;;  %v1903_v32 = vsel %vm666_vm1, %v5339_v5, 0  ;;  %v5441_v5 = vld [vmem:[%s5334_s21 + $0x28] sm:$0xf] }
  0x3e   : > { %v1446_v25 = vrot.slane %v1444_v14, 4  ;;  %v1452_v26 = vrot.slane %v1450_v15, 5  ;;  %v1437_v28 = vor.u32 %v1436_v21, %v1433_v13  ;;  %v472_v34 = vshrl.u32 %v5417_v18, 16  ;;  %v5457_v4 = vld [vmem:[%s5334_s21 + $0x28] sm:$0xf] }
  0x3f   : > { %v470_v36 = vsel %vm5379_vm4, %v465_v24, %v469_v1  ;;  %v475_v38 = vshll.u32 %v5417_v18, 16  ;;  %v481_v39 = vshll.u32 %v5424_v23, 16  ;;  %v485_v45 = vshrl.u32 %v5424_v23, 16 }
  0x40   : > { %v1447_v37 = vor.u32 %v1446_v25, %v1442_v22  ;;  %v4188_v42 = vcombine.low %v460_v20, %v470_v36  ;;  %v1438_v43 = vrot.slane %v1437_v28, 4  ;;  %v474_v44 = vrot.slane %v472_v34, 4  ;;  %v5463_v20 = vld [vmem:[%s5334_s21 + $0x2c] sm:$0x1]  ;;  %v4288_v34 = vld [vmem:[%s5334_s21 + $0x30] sm:$0xf] }
  0x41   : > { %v477_v47 = vrot.slane %v475_v38, 5  ;;  %v483_v48 = vrot.slane %v481_v39, 5  ;;  %v491_v49 = vshll.u32 %v5431_v33, 16  ;;  %v487_v51 = vrot.slane %v485_v45, 4 }
  0x42   : > { %v1448_v46 = vrot.slane %v1447_v37, 4  ;;  %4570 = vmatmul.mubr.msk.bf16.vlgmr.msra.gmra.mrb[0].mxu1 %vm641_vm5, %v4188_v42  ;;  %v1443_v50 = vsel %vm5379_vm4, %v1438_v43, %v1442_v22  ;;  %v1455_v53 = vshrl.u32 %v4285_v40, 16  ;;  %v1458_v54 = vshll.u32 %v4285_v40, 16  ;;  %v5474_v40 = vld [vmem:[%s5334_s21 + $0x34] sm:$0xf] }
  0x43   : > { %v478_v56 = vor.u32 %v477_v47, %v474_v44  ;;  %v493_v58 = vrot.slane %v491_v49, 5  ;;  %v1464_v60 = vshll.u32 %v5441_v5, 16  ;;  %v488_v1 = vor.u32 %v487_v51, %v483_v48  ;;  %v5482_v51 = vld [vmem:[%s5334_s21 + $0x38] sm:$0x1] }
  0x44   : > { %v1453_v55 = vsel %vm5379_vm4, %v1448_v46, %v1452_v26  ;;  %v1457_v2 = vrot.slane %v1455_v53, 4  ;;  %v1460_v3 = vrot.slane %v1458_v54, 5  ;;  %v1468_v12 = vshrl.u32 %v5441_v5, 16 }
  0x45   : > { %v4305_v0 = vcombine.low %v1443_v50, %v1453_v55  ;;  %v479_v10 = vrot.slane %v478_v56, 4  ;;  %v1466_v11 = vrot.slane %v1464_v60, 5  ;;  %v1474_v13 = vshll.u32 %v5448_v52, 16 }
  0x46   : > { %v489_v14 = vrot.slane %v488_v1, 4  ;;  %v1461_v15 = vor.u32 %v1460_v3, %v1457_v2  ;;  %v496_v21 = vshrl.u32 %v5454_v63, 16  ;;  %v499_v22 = vshll.u32 %v5454_v63, 16 }
  0x47   : > { %4642 = vmatmul.mubr.msk.bf16.vlgmr.msra.gmra.mrb[0].mxu0 %vm641_vm5, %v4305_v0  ;;  %v484_v24 = vsel %vm5379_vm4, %v479_v10, %v483_v48  ;;  %v1470_v25 = vrot.slane %v1468_v12, 4  ;;  %v1476_v26 = vrot.slane %v1474_v13, 5  ;;  %v505_v28 = vshll.u32 %v5457_v4, 16  ;;  %v5487_v0 = vld [vmem:[%s5334_s21 + $0x30] sm:$0xf] }
  0x48   : > { %4658 = vmatpush3.bf16.msra.mxu0 %v1903_v32  ;;  %v494_v36 = vsel %vm5379_vm4, %v489_v14, %v493_v58  ;;  %v1462_v37 = vrot.slane %v1461_v15, 4  ;;  %v498_v38 = vrot.slane %v496_v21, 4  ;;  %v501_v39 = vrot.slane %v499_v22, 5  ;;  %v5498_v21 = vld [vmem:[%s5334_s21 + $0x38] sm:$0x1] }
  0x49   : > { %v4189_v42 = vcombine.low %v484_v24, %v494_v36  ;;  %v1471_v43 = vor.u32 %v1470_v25, %v1466_v11  ;;  %v507_v32 = vrot.slane %v505_v28, 5  ;;  %v509_v44 = vshrl.u32 %v5457_v4, 16  ;;  %v4291_v28 = vld [vmem:[%s5334_s21 + $0x3c] sm:$0xf] }
  0x4a   : > { %v1467_v45 = vsel %vm5379_vm4, %v1462_v37, %v1466_v11  ;;  %v502_v46 = vor.u32 %v501_v39, %v498_v38  ;;  %v515_v47 = vshll.u32 %v5463_v20, 16  ;;  %v1479_v48 = vshrl.u32 %v4288_v34, 16  ;;  %v5492_v11 = vld [vmem:[%s5334_s21 + $0x34] sm:$0xf]  ;;  %v5509_v39 = vld [vmem:[%s7034_s2 + $0xc] sm:$0x3] }
  0x4b   : > { %4573 = vmatprep.mubr.msk.bf16.mxu1 %vm641_vm5, %v4189_v42  ;;  %v1472_v49 = vrot.slane %v1471_v43, 4  ;;  %v511_v50 = vrot.slane %v509_v44, 4  ;;  %v1482_v53 = vshll.u32 %v4288_v34, 16  ;;  %v1488_v54 = vshll.u32 %v5474_v40, 16  ;;  %4881 = vmatprep.subr.msk.bf16.mxu0 %vm666_vm1, %v5509_v39 }
  0x4c   : > { %v503_v55 = vrot.slane %v502_v46, 4  ;;  %v517_v56 = vrot.slane %v515_v47, 5  ;;  %v1481_v58 = vrot.slane %v1479_v48, 4  ;;  %v1492_v60 = vshrl.u32 %v5474_v40, 16 }
  0x4d   : > { %v1477_v1 = vsel %vm5379_vm4, %v1472_v49, %v1476_v26  ;;  %v512_v2 = vor.u32 %v511_v50, %v507_v32  ;;  %v1484_v3 = vrot.slane %v1482_v53, 5  ;;  %v1490_v10 = vrot.slane %v1488_v54, 5 }
  0x4e   : > { %v4306_v12 = vcombine.low %v1467_v45, %v1477_v1  ;;  %v508_v13 = vsel %vm5379_vm4, %v503_v55, %v507_v32  ;;  %v1494_v14 = vrot.slane %v1492_v60, 4  ;;  %v1498_v15 = vshll.u32 %v5482_v51, 16  ;;  %v5514_v45 = vld [vmem:[%s5334_s21 + $0x40] sm:$0xf]  ;;  %v5525_v60 = vld [vmem:[%s5334_s21 + $0x44] sm:$0x1] }
  0x4f   : > { %v513_v22 = vrot.slane %v512_v2, 4  ;;  %v1485_v24 = vor.u32 %v1484_v3, %v1481_v58  ;;  %v520_v25 = vshrl.u32 %v5487_v0, 16  ;;  %v523_v26 = vshll.u32 %v5487_v0, 16  ;;  %v5529_v3 = vld [vmem:[%s5334_s21 + $0x3c] sm:$0xf] }
  0x50   : > { %4645 = vmatprep.mubr.msk.bf16.mxu0 %vm641_vm5, %v4306_v12  ;;  %v1495_v34 = vor.u32 %v1494_v14, %v1490_v10  ;;  %v1500_v36 = vrot.slane %v1498_v15, 5  ;;  %v529_v37 = vshll.u32 %v5492_v11, 16  ;;  %v533_v38 = vshrl.u32 %v5492_v11, 16  ;;  %v5532_v15 = vld [vmem:[%s5334_s21 + $0x40] sm:$0xf] }
  0x51   : > { %v518_v42 = vsel %vm5379_vm4, %v513_v22, %v517_v56  ;;  %v1486_v43 = vrot.slane %v1485_v24, 4  ;;  %v522_v32 = vrot.slane %v520_v25, 4  ;;  %v525_v44 = vrot.slane %v523_v26, 5 }
  0x52   : > { %v4190_v46 = vcombine.low %v508_v13, %v518_v42  ;;  %v1496_v47 = vrot.slane %v1495_v34, 4  ;;  %v531_v48 = vrot.slane %v529_v37, 5  ;;  %v535_v49 = vrot.slane %v533_v38, 4  ;;  %v5536_v34 = vld [vmem:[%s5334_s21 + $0x44] sm:$0x1] }
  0x53   : > { %v1491_v50 = vsel %vm5379_vm4, %v1486_v43, %v1490_v10  ;;  %v526_v53 = vor.u32 %v525_v44, %v522_v32  ;;  %v539_v54 = vshll.u32 %v5498_v21, 16  ;;  %v1503_v55 = vshrl.u32 %v4291_v28, 16  ;;  %v4294_v42 = vld [vmem:[%s5334_s21 + $0x48] sm:$0xf] }
  0x54   : > { %4574 = vmatmul.mubr.msk.bf16.gmra.mrb[4].mxu1 %vm641_vm5, %v4190_v46  ;;  %v1501_v56 = vsel %vm5379_vm4, %v1496_v47, %v1500_v36  ;;  %v536_v58 = vor.u32 %v535_v49, %v531_v48  ;;  %v1506_v1 = vshll.u32 %v4291_v28, 16  ;;  %v1512_v2 = vshll.u32 %v5514_v45, 16 }
  0x55   : > { %v4307_v10 = vcombine.low %v1491_v50, %v1501_v56  ;;  %v527_v12 = vrot.slane %v526_v53, 4  ;;  %v541_v13 = vrot.slane %v539_v54, 5  ;;  %v1505_v14 = vrot.slane %v1503_v55, 4  ;;  %v5549_v53 = vld [vmem:[%s5334_s21 + $0x4c] sm:$0xf] }
  0x56   : > { %v537_v22 = vrot.slane %v536_v58, 4  ;;  %v1508_v24 = vrot.slane %v1506_v1, 5  ;;  %v1514_v25 = vrot.slane %v1512_v2, 5  ;;  %v1516_v26 = vshrl.u32 %v5514_v45, 16  ;;  %v5553_v1 = vld [vmem:[%s5334_s21 + $0x50] sm:$0x1] }
  0x57   : > { %4646 = vmatmul.mubr.msk.bf16.gmra.mrb[4].mxu0 %vm641_vm5, %v4307_v10  ;;  %v532_v28 = vsel %vm5379_vm4, %v527_v12, %v531_v48  ;;  %v1522_v36 = vshll.u32 %v5525_v60, 16  ;;  %v544_v37 = vshrl.u32 %v5529_v3, 16  ;;  %v547_v38 = vshll.u32 %v5529_v3, 16 }
  0x58   : > { %v542_v43 = vsel %vm5379_vm4, %v537_v22, %v541_v13  ;;  %v1509_v32 = vor.u32 %v1508_v24, %v1505_v14  ;;  %v1518_v44 = vrot.slane %v1516_v26, 4  ;;  %v553_v46 = vshll.u32 %v5532_v15, 16  ;;  %v5558_v14 = vld [vmem:[%s5334_s21 + $0x48] sm:$0xf] }
  0x59   : > { %v4191_v47 = vcombine.low %v532_v28, %v542_v43  ;;  %v1524_v49 = vrot.slane %v1522_v36, 5  ;;  %v546_v50 = vrot.slane %v544_v37, 4  ;;  %v549_v48 = vrot.slane %v547_v38, 5 }
  0x5a   : > { %v1510_v54 = vrot.slane %v1509_v32, 4  ;;  %v1519_v55 = vor.u32 %v1518_v44, %v1514_v25  ;;  %v555_v56 = vrot.slane %v553_v46, 5  ;;  %v557_v58 = vshrl.u32 %v5532_v15, 16  ;;  %v5564_v32 = vld [vmem:[%s5334_s21 + $0x4c] sm:$0xf] }
  0x5b   : > { %4577 = vmatprep.mubr.msk.bf16.mxu1 %vm641_vm5, %v4191_v47  ;;  %v550_v2 = vor.u32 %v549_v48, %v546_v50  ;;  %v563_v10 = vshll.u32 %v5536_v34, 16  ;;  %v1527_v12 = vshrl.u32 %v4294_v42, 16  ;;  %v1530_v13 = vshll.u32 %v4294_v42, 16 }
  0x5c   : > { %v1515_v22 = vsel %vm5379_vm4, %v1510_v54, %v1514_v25  ;;  %v1520_v24 = vrot.slane %v1519_v55, 4  ;;  %v559_v26 = vrot.slane %v557_v58, 4  ;;  %v1536_v28 = vshll.u32 %v5549_v53, 16  ;;  %v5573_v55 = vld [vmem:[%s5334_s21 + $0x50] sm:$0x1] }
  0x5d   : > { %v551_v36 = vrot.slane %v550_v2, 4  ;;  %v565_v37 = vrot.slane %v563_v10, 5  ;;  %v1529_v38 = vrot.slane %v1527_v12, 4  ;;  %v1532_v43 = vrot.slane %v1530_v13, 5  ;;  %v4297_v58 = vld [vmem:[%s5334_s21 + $0x54] sm:$0xf] }
  0x5e   : > { %v1525_v42 = vsel %vm5379_vm4, %v1520_v24, %v1524_v49  ;;  %v560_v44 = vor.u32 %v559_v26, %v555_v56  ;;  %v1538_v46 = vrot.slane %v1536_v28, 5  ;;  %v1540_v47 = vshrl.u32 %v5549_v53, 16  ;;  %v5582_v26 = vld [vmem:[%s5334_s21 + $0x58] sm:$0xf] }
  0x5f   : > { %v4308_v25 = vcombine.low %v1515_v22, %v1525_v42  ;;  %v556_v50 = vsel %vm5379_vm4, %v551_v36, %v555_v56  ;;  %v1533_v48 = vor.u32 %v1532_v43, %v1529_v38  ;;  %v1546_v54 = vshll.u32 %v5553_v1, 16 }
  0x60   : > { %v561_v2 = vrot.slane %v560_v44, 4  ;;  %v1542_v10 = vrot.slane %v1540_v47, 4  ;;  %v568_v12 = vshrl.u32 %v5558_v14, 16  ;;  %v571_v49 = vshll.u32 %v5558_v14, 16 }
  0x61   : > { %4649 = vmatprep.mubr.msk.bf16.mxu0 %vm641_vm5, %v4308_v25  ;;  %v1534_v13 = vrot.slane %v1533_v48, 4  ;;  %v1548_v22 = vrot.slane %v1546_v54, 5  ;;  %v577_v56 = vshll.u32 %v5564_v32, 16  ;;  %v581_v24 = vshrl.u32 %v5564_v32, 16  ;;  %v5589_v48 = vld [vmem:[%s5334_s21 + $0x5c] sm:$0x1] }
  0x62   : > { %v566_v28 = vsel %vm5379_vm4, %v561_v2, %v565_v37  ;;  %v1543_v36 = vor.u32 %v1542_v10, %v1538_v46  ;;  %v570_v38 = vrot.slane %v568_v12, 4  ;;  %v573_v43 = vrot.slane %v571_v49, 5  ;;  %v5592_v54 = vld [vmem:[%s5334_s21 + $0x54] sm:$0xf]  ;;  %v5599_v12 = vld [vmem:[%s5334_s21 + $0x58] sm:$0xf] }
  0x63   : > { %v4192_v42 = vcombine.low %v556_v50, %v566_v28  ;;  %v1539_v44 = vsel %vm5379_vm4, %v1534_v13, %v1538_v46  ;;  %v579_v47 = vrot.slane %v577_v56, 5  ;;  %v583_v25 = vrot.slane %v581_v24, 4  ;;  %7077 = vst [vmem:[#allocation16_spill] sm:$0xff] %v5592_v54 }
  0x64   : > { %v1544_v29 = vrot.slane %v1543_v36, 4  ;;  %v574_v62 = vor.u32 %v573_v43, %v570_v38  ;;  %v587_v19 = vshll.u32 %v5573_v55, 16  ;;  %v1551_v37 = vshrl.u32 %v4297_v58, 16 }
  0x65   : > { %4578 = vmatmul.mubr.msk.bf16.gmra.mrb[8].mxu1 %vm641_vm5, %v4192_v42  ;;  %v584_v2 = vor.u32 %v583_v25, %v579_v47  ;;  %v1554_v10 = vshll.u32 %v4297_v58, 16  ;;  %v1560_v50 = vshll.u32 %v5582_v26, 16  ;;  %v1564_v46 = vshrl.u32 %v5582_v26, 16  ;;  %v5604_v42 = vld [vmem:[%s5334_s21 + $0x5c] sm:$0x1] }
  0x66   : > { %v1549_v49 = vsel %vm5379_vm4, %v1544_v29, %v1548_v22  ;;  %v575_v13 = vrot.slane %v574_v62, 4  ;;  %v589_v56 = vrot.slane %v587_v19, 5  ;;  %v1553_v24 = vrot.slane %v1551_v37, 4  ;;  %7078 = vst [vmem:[#allocation17_spill] sm:$0xff] %v5604_v42  ;;  %v4300_v29 = vld [vmem:[%s5334_s21 + $0x60] sm:$0xf] }
  0x67   : > { %v4309_v28 = vcombine.low %v1539_v44, %v1549_v49  ;;  %v585_v36 = vrot.slane %v584_v2, 4  ;;  %v1556_v38 = vrot.slane %v1554_v10, 5  ;;  %v1562_v43 = vrot.slane %v1560_v50, 5  ;;  %v5617_v50 = vld [vmem:[%s5334_s21 + $0x64] sm:$0xf] }
  0x68   : > { %v580_v58 = vsel %vm5379_vm4, %v575_v13, %v579_v47  ;;  %v1566_v25 = vrot.slane %v1564_v46, 4  ;;  %v1570_v59 = vshll.u32 %v5589_v48, 16  ;;  %v592_v27 = vshrl.u32 %v5592_v54, 16 }
  0x69   : > { %4650 = vmatmul.mubr.msk.bf16.gmra.mrb[8].mxu0 %vm641_vm5, %v4309_v28  ;;  %v590_v62 = vsel %vm5379_vm4, %v585_v36, %v589_v56  ;;  %v1557_v19 = vor.u32 %v1556_v38, %v1553_v24  ;;  %v595_v22 = vshll.u32 %v5592_v54, 16  ;;  %v601_v44 = vshll.u32 %v5599_v12, 16 }
  0x6a   : > { %v4193_v37 = vcombine.low %v580_v58, %v590_v62  ;;  %v1567_v2 = vor.u32 %v1566_v25, %v1562_v43  ;;  %v1572_v47 = vrot.slane %v1570_v59, 5  ;;  %v594_v10 = vrot.slane %v592_v27, 4  ;;  %v5625_v25 = vld [vmem:[%s5334_s21 + $0x68] sm:$0x1] }
  0x6b   : > { %v1558_v46 = vrot.slane %v1557_v19, 4  ;;  %v597_v49 = vrot.slane %v595_v22, 5  ;;  %v603_v13 = vrot.slane %v601_v44, 5  ;;  %v605_v28 = vshrl.u32 %v5599_v12, 16  ;;  %v4320_v19 = vld [vmem:[%s5334_s21 + $0xc] sm:$0xe] }
  0x6c   : > { %4581 = vmatprep.mubr.msk.bf16.mxu1 %vm641_vm5, %v4193_v37  ;;  %v1568_v56 = vrot.slane %v1567_v2, 4  ;;  %v611_v24 = vshll.u32 %v5604_v42, 16  ;;  %v1575_v36 = vshrl.u32 %v4300_v29, 16  ;;  %v1578_v38 = vshll.u32 %v4300_v29, 16  ;;  %v5634_v29 = vld [vmem:[%s7034_s2 + $0x4] sm:$0x3] }
  0x6d   : > { %v1563_v58 = vsel %vm5379_vm4, %v1558_v46, %v1562_v43  ;;  %v598_v59 = vor.u32 %v597_v49, %v594_v10  ;;  %v607_v27 = vrot.slane %v605_v28, 4  ;;  %v1584_v62 = vshll.u32 %v5617_v50, 16  ;;  %v4322_v42 = vld [vmem:[%s5334_s21 + $0x24] sm:$0xe] }
  0x6e   : > { %v1573_v22 = vsel %vm5379_vm4, %v1568_v56, %v1572_v47  ;;  %v613_v44 = vrot.slane %v611_v24, 5  ;;  %v1577_v37 = vrot.slane %v1575_v36, 4  ;;  %v1580_v2 = vrot.slane %v1578_v38, 5  ;;  %v4321_v56 = vld [vmem:[%s5334_s21 + $0x18] sm:$0xe] }
  0x6f   : > { %v4310_v43 = vcombine.low %v1563_v58, %v1573_v22  ;;  %v599_v10 = vrot.slane %v598_v59, 4  ;;  %v608_v46 = vor.u32 %v607_v27, %v603_v13  ;;  %v1586_v49 = vrot.slane %v1584_v62, 5 }
  0x70   : > { %v1581_v28 = vor.u32 %v1580_v2, %v1577_v37  ;;  %v1588_v33 = vshrl.u32 %v5617_v50, 16  ;;  %v1594_v54 = vshll.u32 %v5625_v25, 16  ;;  %v832_v47 = vsel %vm666_vm1, %v5344_v6, 0 }
  0x71   : > { %4653 = vmatprep.mubr.msk.bf16.mxu0 %vm641_vm5, %v4310_v43  ;;  %v604_v24 = vsel %vm5379_vm4, %v599_v10, %v603_v13  ;;  %v609_v36 = vrot.slane %v608_v46, 4  ;;  %4586 = vmatpush3.bf16.msra.mxu1 %v832_v47  ;;  %vm956_vm7 = vcmask 1046532   ;;  %v4328_v38 = vrot.slane %v4320_v19, 9 }
  0x72   : > { %v7079_v58 = vrot.slane %v5400_v57, 5  ;;  %v1582_v27 = vrot.slane %v1581_v28, 4  ;;  %v1590_v62 = vrot.slane %v1588_v33, 4  ;;  %vm5647_vm8 = vmor %vm955_vm6, %vm956_vm7  ;;  %v7082_v6 = vrot.slane %v5366_v16, 5  ;;  %4877 = vmatprep.subr.msk.bf16.mxu1 %vm666_vm1, %v5634_v29 }
  0x73   : > { %v614_v13 = vsel %vm5379_vm4, %v609_v36, %v613_v44  ;;  %v4204_v2 = vcombine.low %v5375_v30, %v5384_v35  ;;  %v4329_v43 = vrot.slane %v4321_v56, 9  ;;  %v1596_v28 = vrot.slane %v1594_v54, 5  ;;  %v4323_v30 = vld [vmem:[%s5334_s21 + $0x30] sm:$0xe] }
  0x74   : > { %v1807_v59 = vrot.slane %v7079_v58, 4  ;;  %v1800_v37 = vrot.slane %v7082_v6, 4  ;;  %v7083_v19 = vmov %v7082_v6  ;;  %v4194_v10 = vcombine.low %v604_v24, %v614_v13 }
  0x75   : > { %v1799_v33 = vsel %vm5647_vm8, %v4328_v38, %v7083_v19  ;;  %v1591_v46 = vor.u32 %v1590_v62, %v1586_v49  ;;  %v7084_v47 = vrot.slane %v5369_v17, 5  ;;  %v1587_v16 = vsel %vm5379_vm4, %v1582_v27, %v1586_v49 }
  0x76   : > { %4582 = vmatmul.mubr.msk.bf16.gmra.mrb[12].mxu1 %vm641_vm5, %v4194_v10  ;;  %v7085_v56 = vcombine.low %v5347_v7, %v5350_v8  ;;  %v7086_v17 = vrot.slane %v5400_v57, 5  ;;  %v1812_v24 = vrot.slane %v5441_v5, 5  ;;  %v7087_v49 = vrot.slane %v5407_v61, 5  ;;  %v4324_v5 = vld [vmem:[%s5334_s21 + $0x3c] sm:$0xe] }
  0x77   : > { %v1802_v58 = vsel %vm5647_vm8, %v1800_v37, %v7084_v47  ;;  %v1592_v44 = vrot.slane %v1591_v46, 4  ;;  %v4330_v27 = vrot.slane %v4322_v42, 9  ;;  %v1819_v7 = vrot.slane %v5474_v40, 5  ;;  %v4326_v10 = vld [vmem:[%s5334_s21 + $0x54] sm:$0xe] }
  0x78   : > { %v4337_v6 = vcombine.low %v1799_v33, %v1802_v58  ;;  %4587 = vmatprep.mubr.msk.bf16.mxu1 %vm641_vm5, %v7085_v56  ;;  %v1806_v54 = vsel %vm5647_vm8, %v4329_v43, %v7086_v17  ;;  %v1809_v38 = vsel %vm5647_vm8, %v1807_v59, %v7087_v49  ;;  %v1814_v37 = vrot.slane %v1812_v24, 4  ;;  %v4325_v43 = vld [vmem:[%s5334_s21 + $0x48] sm:$0xe] }
  0x79   : > { %v1597_v36 = vsel %vm5379_vm4, %v1592_v44, %v1596_v28  ;;  %v1815_v57 = vrot.slane %v5448_v52, 5  ;;  %v4331_v13 = vrot.slane %v4323_v30, 9  ;;  %v1822_v19 = vrot.slane %v5482_v51, 5  ;;  %v932_v28 = vld [vmem:[%s5334_s21 + $0xc] sm:$0xe] }
  0x7a   : > { %v4311_v62 = vcombine.low %v1587_v16, %v1597_v36  ;;  %v1826_v33 = vrot.slane %v5514_v45, 5  ;;  %v4205_v61 = vcombine.low %v5417_v18, %v5424_v23  ;;  %v1821_v42 = vrot.slane %v1819_v7, 4 }
  0x7b   : > { %v1833_v40 = vrot.slane %v5549_v53, 5  ;;  %v967_v59 = vrot.slane %v5384_v35, 5  ;;  %v970_v52 = vrot.slane %v5387_v41, 5  ;;  %v4338_v51 = vcombine.low %v1806_v54, %v1809_v38 }
  0x7c   : > { %4654 = vmatmul.mubr.msk.bf16.gmra.mrb[12].mxu0 %vm641_vm5, %v4311_v62  ;;  %v2105_v45 = vsel %vm666_vm1, %v5509_v39, 0  ;;  %v1813_v46 = vsel %vm5647_vm8, %v4330_v27, %v1812_v24  ;;  %v1816_v18 = vsel %vm5647_vm8, %v1814_v37, %v1815_v57  ;;  %v5709_v53 = vsel %vm5647_vm8, %v4331_v13, %v1819_v7  ;;  %v5760_v62 = vld [vmem:[%s5334_s21 + $0x60] sm:$0xe]  ;;  %v934_v37 = vld [vmem:[%s5334_s21 + $0x24] sm:$0xe] }
  0x7d   : > { %4659 = vmatprep.mubr.msk.bf16.mxu0 %vm641_vm5, %v4337_v6  ;;  %v4332_v35 = vrot.slane %v4324_v5, 9  ;;  %v1828_v41 = vrot.slane %v1826_v33, 4  ;;  %v1829_v47 = vrot.slane %v5525_v60, 5  ;;  %v4333_v58 = vrot.slane %v4325_v43, 9 }
  0x7e   : > { %4588 = vmatmul.mubr.msk.bf16.vlgmr.msra.gmra.mrb[0].mxu1 %vm641_vm5, %v4204_v2  ;;  %v1840_v39 = vrot.slane %v5582_v26, 5  ;;  %v5718_v6 = vsel %vm5647_vm8, %v1821_v42, %v1822_v19  ;;  %v1835_v16 = vrot.slane %v1833_v40, 4  ;;  %v1836_v44 = vrot.slane %v5553_v1, 5  ;;  %v5724_v2 = vld [vmem:[%s7034_s2 + $0x6] sm:$0x3] }
  0x7f   : > { %4591 = vmatprep.mubr.msk.bf16.mxu1 %vm641_vm5, %v4205_v61  ;;  %v4334_v30 = vrot.slane %v4326_v10, 9  ;;  %v4339_v56 = vcombine.low %v1813_v46, %v1816_v18  ;;  %v4206_v60 = vcombine.low %v5454_v63, %v5457_v4  ;;  %v1843_v17 = vrot.slane %v5589_v48, 5  ;;  %v931_v19 = vld [vmem:[%s5334_s21] sm:$0xe]  ;;  %v936_v10 = vld [vmem:[%s5334_s21 + $0x3c] sm:$0xe] }
  0x80   : > { %v1842_v26 = vrot.slane %v1840_v39, 4  ;;  %v4207_v54 = vcombine.low %v5487_v0, %v5492_v11  ;;  %v1827_v1 = vsel %vm5647_vm8, %v4332_v35, %v1826_v33  ;;  %v4208_v24 = vcombine.low %v5529_v3, %v5532_v15  ;;  %v5744_v0 = vld [vmem:[%s7034_s2 + $0xe] sm:$0x3] }
  0x81   : > { %v1065_v36 = vsel %vm666_vm1, %v5634_v29, 0  ;;  %v4340_v63 = vcombine.low %v5709_v53, %v5718_v6  ;;  %v1830_v49 = vsel %vm5647_vm8, %v1828_v41, %v1829_v47  ;;  %v4220_v48 = vrot.slane %v932_v28, 9  ;;  %v937_v47 = vld [vmem:[%s5334_s21 + $0x48] sm:$0xe] }
  0x82   : > { %4604 = vmatpush3.bf16.msra.mxu1 %v1065_v36  ;;  %v969_v38 = vrot.slane %v967_v59, 4  ;;  %v5749_v29 = vsel %vm5647_vm8, %v4333_v58, %v1833_v40  ;;  %v5753_v27 = vsel %vm5647_vm8, %v1835_v16, %v1836_v44  ;;  %v5757_v7 = vsel %vm5647_vm8, %v4334_v30, %v1840_v39 }
  0x83   : > { %4878 = vmatprep.subr.msk.bf16.mxu1 %vm666_vm1, %v5724_v2  ;;  %v963_v57 = vrot.slane %v5353_v9, 5  ;;  %v5769_v13 = vsel %vm5647_vm8, %v1842_v26, %v1843_v17  ;;  %v5774_v5 = vsel %vm5647_vm8, %v4220_v48, %v967_v59  ;;  %v4341_v43 = vcombine.low %v1827_v1, %v1830_v49 }
  0x84   : > { %4660 = vmatmul.mubr.msk.bf16.vlgmr.msra.gmra.mrb[0].mxu0 %vm641_vm5, %v4338_v51  ;;  %v5778_v33 = vsel %vm5647_vm8, %v969_v38, %v970_v52  ;;  %v4209_v61 = vcombine.low %v5558_v14, %v5564_v32  ;;  %v1847_v42 = vrot.slane %v5617_v50, 5  ;;  %v935_v51 = vld [vmem:[%s5334_s21 + $0x30] sm:$0xe]  ;;  %v4342_v59 = vcombine.low %v5749_v29, %v5753_v27 }
  0x85   : > { %4676 = vmatpush3.bf16.msra.mxu0 %v2105_v45  ;;  %4663 = vmatprep.mubr.msk.bf16.mxu0 %vm641_vm5, %v4339_v56  ;;  %v4229_v40 = vcombine.low %v5774_v5, %v5778_v33  ;;  %v4335_v52 = vrot.slane %v5760_v62, 9  ;;  %v960_v45 = vrot.slane %v5350_v8, 5  ;;  %v4222_v14 = vrot.slane %v934_v37, 9  ;;  %v7088_v29 = vld [vmem:[#allocation17_spill] sm:$0xff]  ;;  %v4391_v5 = vld [vmem:[%s5334_s21 + $0x24] sm:$0xf] }
  0x86   : > { %4882 = vmatprep.subr.msk.bf16.mxu0 %vm666_vm1, %v5744_v0  ;;  %4592 = vmatmul.mubr.msk.bf16.gmra.mrb[4].mxu1 %vm641_vm5, %v4206_v60  ;;  %v4343_v50 = vcombine.low %v5757_v7, %v5769_v13  ;;  %v1850_v46 = vrot.slane %v5625_v25, 5  ;;  %v4219_v18 = vrot.slane %v931_v19, 9  ;;  %v981_v53 = vrot.slane %v5457_v4, 5  ;;  %v938_v60 = vld [vmem:[%s5334_s21 + $0x54] sm:$0xe]  ;;  %v7089_v19 = vld [vmem:[#allocation16_spill] sm:$0xff] }
  0x87   : > { %4595 = vmatprep.mubr.msk.bf16.mxu1 %vm641_vm5, %v4207_v54  ;;  %v984_v35 = vrot.slane %v5463_v20, 5  ;;  %v4223_v28 = vrot.slane %v935_v51, 9  ;;  %v988_v41 = vrot.slane %v5492_v11, 5  ;;  %v991_v8 = vrot.slane %v5498_v21, 5  ;;  %v933_v13 = vld [vmem:[%s5334_s21 + $0x18] sm:$0xe] }
  0x88   : > { %v1849_v58 = vrot.slane %v1847_v42, 4  ;;  %v5805_v39 = vsel %vm5647_vm8, %v4222_v14, %v981_v53  ;;  %v983_v6 = vrot.slane %v981_v53, 4  ;;  %v4224_v16 = vrot.slane %v936_v10, 9  ;;  %v7090_v10 = vld [vmem:[#allocation15_spill] sm:$0xff] }
  0x89   : > { %v962_v25 = vrot.slane %v960_v45, 4  ;;  %v5809_v4 = vsel %vm5647_vm8, %v4223_v28, %v988_v41  ;;  %v990_v20 = vrot.slane %v988_v41, 4  ;;  %v995_v44 = vrot.slane %v5532_v15, 5  ;;  %v4970_v28 = vld [vmem:[%s5334_s21 + $0x24] sm:$0xff]   ;;  %v4971_v41 = vld [vmem:[%s5334_s21 + $0x30] sm:$0xff]  }
  0x8a   : > { %v5815_v11 = vsel %vm5647_vm8, %v983_v6, %v984_v35  ;;  %v998_v21 = vrot.slane %v5536_v34, 5  ;;  %v4225_v30 = vrot.slane %v937_v47, 9  ;;  %v1002_v56 = vrot.slane %v5564_v32, 5  ;;  %v4388_v35 = vld [vmem:[%s5334_s21 + $0x18] sm:$0xf] }
  0x8b   : > { %v4231_v26 = vcombine.low %v5805_v39, %v5815_v11  ;;  %v5825_v17 = vsel %vm5647_vm8, %v990_v20, %v991_v8  ;;  %v5829_v54 = vsel %vm5647_vm8, %v4224_v16, %v995_v44  ;;  %v997_v1 = vrot.slane %v995_v44, 4  ;;  %v5904_v8 = vld [vmem:[%s5334_s21 + $0x1c] sm:$0xf]  ;;  %v5915_v33 = vld [vmem:[%s5334_s21 + $0x28] sm:$0xf] }
  0x8c   : > { %4664 = vmatmul.mubr.msk.bf16.gmra.mrb[4].mxu0 %vm641_vm5, %v4340_v63  ;;  %v4232_v34 = vcombine.low %v5809_v4, %v5825_v17  ;;  %v5835_v32 = vsel %vm5647_vm8, %v4225_v30, %v1002_v56  ;;  %v1004_v36 = vrot.slane %v1002_v56, 4  ;;  %v1005_v63 = vrot.slane %v5573_v55, 5  ;;  %v4972_v56 = vld [vmem:[%s5334_s21 + $0x3c] sm:$0xff]   ;;  %v5947_v4 = vld [vmem:[%s5334_s21 + $0x2c] sm:$0x1] }
  0x8d   : > { %4667 = vmatprep.mubr.msk.bf16.mxu0 %vm641_vm5, %v4341_v43  ;;  %v5844_v49 = vsel %vm5647_vm8, %v997_v1, %v998_v21  ;;  %v4226_v48 = vrot.slane %v938_v60, 9  ;;  %v1009_v38 = vrot.slane %v5599_v12, 5  ;;  %v1012_v27 = vrot.slane %v7088_v29, 5 }
  0x8e   : > { %4596 = vmatmul.mubr.msk.bf16.gmra.mrb[8].mxu1 %vm641_vm5, %v4208_v24  ;;  %v961_v7 = vsel %vm5647_vm8, %v4219_v18, %v960_v45  ;;  %v974_v55 = vrot.slane %v5424_v23, 5  ;;  %v4233_v3 = vcombine.low %v5829_v54, %v5844_v49  ;;  %v5856_v15 = vsel %vm5647_vm8, %v1004_v36, %v1005_v63  ;;  %v4973_v36 = vld [vmem:[%s5334_s21 + $0x48] sm:$0xff]   ;;  %v5938_v63 = vld [vmem:[%s5334_s21 + $0x20] sm:$0x1] }
  0x8f   : > { %4599 = vmatprep.mubr.msk.bf16.mxu1 %vm641_vm5, %v4209_v61  ;;  %v964_v24 = vsel %vm5647_vm8, %v962_v25, %v963_v57  ;;  %v4234_v62 = vcombine.low %v5835_v32, %v5856_v15  ;;  %v5866_v37 = vsel %vm5647_vm8, %v4226_v48, %v1009_v38  ;;  %v1011_v23 = vrot.slane %v1009_v38, 4  ;;  %v4394_v38 = vld [vmem:[%s5334_s21 + $0x30] sm:$0xf] }
  0x90   : > { %v4210_v43 = vcombine.low %v7089_v19, %v5599_v12  ;;  %v1848_v9 = vsel %vm5647_vm8, %v4335_v52, %v1847_v42  ;;  %v4228_v57 = vcombine.low %v961_v7, %v964_v24  ;;  %v1851_v45 = vsel %vm5647_vm8, %v1849_v58, %v1850_v46 }
  0x91   : > { %v5873_v61 = vsel %vm5647_vm8, %v1011_v23, %v1012_v27  ;;  %v4221_v12 = vrot.slane %v933_v13, 9  ;;  %v976_v14 = vrot.slane %v974_v55, 4  ;;  %v977_v18 = vrot.slane %v7090_v10, 5  ;;  %v4974_v13 = vld [vmem:[%s5334_s21 + $0x54] sm:$0xff]   ;;  %v5968_v10 = vld [vmem:[%s5334_s21 + $0x40] sm:$0xf] }
  0x92   : > { %v4235_v51 = vcombine.low %v5866_v37, %v5873_v61  ;;  %v4344_v42 = vcombine.low %v1848_v9, %v1851_v45  ;;  %v1267_v53 = vsel %vm666_vm1, %v5724_v2, 0  ;;  %v2245_v47 = vshrl.u32 %v4388_v35, 16  ;;  %v5911_v2 = vld [vmem:[%s7034_s2 + $0x10] sm:$0x3]  ;;  %v4397_v45 = vld [vmem:[%s5334_s21 + $0x3c] sm:$0xf] }
  0x93   : > { %v975_v52 = vsel %vm5647_vm8, %v4221_v12, %v974_v55  ;;  %v2248_v58 = vshll.u32 %v4388_v35, 16  ;;  %v2487_v6 = vsel %vm666_vm1, %v5744_v0, 0  ;;  %v2258_v16 = vshrl.u32 %v5904_v8, 16  ;;  %v4975_v12 = vld [vmem:[%s5334_s21 + $0x60] sm:$0xff]   ;;  %v4403_v61 = vld [vmem:[%s5334_s21 + $0x54] sm:$0xf] }
  0x94   : > { %4668 = vmatmul.mubr.msk.bf16.gmra.mrb[8].mxu0 %vm641_vm5, %v4342_v59  ;;  %v4969_v59 = vld [vmem:[%s5334_s21 + $0x18] sm:$0xff]   ;;  %v2247_v0 = vrot.slane %v2245_v47, 4  ;;  %v2269_v20 = vshrl.u32 %v4391_v5, 16  ;;  %v2272_v44 = vshll.u32 %v4391_v5, 16  ;;  %v2278_v21 = vshll.u32 %v5915_v33, 16 }
  0x95   : > { %4671 = vmatprep.mubr.msk.bf16.mxu0 %vm641_vm5, %v4343_v50  ;;  %v978_v50 = vsel %vm5647_vm8, %v976_v14, %v977_v18  ;;  %v2250_v25 = vrot.slane %v2248_v58, 5  ;;  %v2282_v30 = vshrl.u32 %v5915_v33, 16  ;;  %v2260_v1 = vrot.slane %v2258_v16, 4  ;;  %v5965_v14 = vld [vmem:[%s5334_s21 + $0x38] sm:$0x1] }
  0x96   : > { %4600 = vmatmul.mubr.msk.bf16.gmra.mrb[12].mxu1 %vm641_vm5, %v4210_v43  ;;  %v4230_v46 = vcombine.low %v975_v52, %v978_v50  ;;  %v2271_v29 = vrot.slane %v2269_v20, 4  ;;  %v2274_v27 = vrot.slane %v2272_v44, 5  ;;  %v5941_v39 = vrot.slane %v2278_v21, 5  ;;  %v4400_v50 = vld [vmem:[%s5334_s21 + $0x48] sm:$0xf] }
  0x97   : > { %4605 = vmatprep.mubr.msk.bf16.mxu1 %vm641_vm5, %v4228_v57  ;;  %v2251_v48 = vor.u32 %v2250_v25, %v2247_v0  ;;  %v2284_v11 = vrot.slane %v2282_v30, 4  ;;  %v2293_v7 = vshrl.u32 %v4394_v38, 16  ;;  %v2296_v55 = vshll.u32 %v4394_v38, 16 }
  0x98   : > { %v2275_v43 = vor.u32 %v2274_v27, %v2271_v29  ;;  %v2288_v57 = vshll.u32 %v5947_v4, 16  ;;  %v2317_v49 = vshrl.u32 %v4397_v45, 16  ;;  %v2341_v47 = vshrl.u32 %v4400_v50, 16  ;;  %v4976_v27 = vld [vmem:[%s5334_s21 + $0x6c] sm:$0xff]  }
  0x99   : > { %v2252_v19 = vrot.slane %v2251_v48, 4  ;;  %v2285_v9 = vor.u32 %v2284_v11, %v5941_v39  ;;  %v2298_v52 = vrot.slane %v2296_v55, 5  ;;  %v2344_v58 = vshll.u32 %v4400_v50, 16  ;;  %v6009_v48 = vld [vmem:[%s5334_s21 + $0x50] sm:$0x1] }
  0x9a   : > { %v2276_v32 = vrot.slane %v2275_v43, 4  ;;  %v2319_v44 = vrot.slane %v2317_v49, 4  ;;  %v2343_v38 = vrot.slane %v2341_v47, 4  ;;  %vm2934_vm9 = vcmask 24576  }
  0x9b   : > { %v2286_v15 = vrot.slane %v2285_v9, 4  ;;  %v2346_v29 = vrot.slane %v2344_v58, 5  ;;  %v2360_v9 = vshll.u32 %v6009_v48, 16 }
  0x9c   : > { %4672 = vmatmul.mubr.msk.bf16.gmra.mrb[12].mxu0 %vm641_vm5, %v4344_v42  ;;  %v2281_v30 = vsel %vm5379_vm4, %v2276_v32, %v5941_v39 }
  0x9d   : > { %4677 = vmatprep.mubr.msk.bf16.mxu0 %vm641_vm5, %v4969_v59  ;;  %v2295_v59 = vrot.slane %v2293_v7, 4  ;;  %v2347_v43 = vor.u32 %v2346_v29, %v2343_v38  ;;  %v2362_v58 = vrot.slane %v2360_v9, 5  ;;  %v6049_v38 = vld [vmem:[%s5334_s21 + $0x70] sm:$0xf] }
  0x9e   : > { %4606 = vmatmul.mubr.msk.bf16.vlgmr.msra.gmra.mrb[0].mxu1 %vm641_vm5, %v4229_v40  ;;  %v2254_v40 = vshll.u32 %v5904_v8, 16  ;;  %v4980_v29 = vld [vmem:[%s5334_s21 + $0x30] sm:$0xff]  }
  0x9f   : > { %4609 = vmatprep.mubr.msk.bf16.mxu1 %vm641_vm5, %v4230_v46  ;;  %4622 = vmatpush3.bf16.msra.mxu1 %v1267_v53  ;;  %v5978_v53 = vld [vmem:[%s5334_s21 + $0x4c] sm:$0xf]  ;;  %v2299_v25 = vor.u32 %v2298_v52, %v2295_v59  ;;  %v2368_v59 = vshll.u32 %v4403_v61, 16  ;;  %v2348_v47 = vrot.slane %v2347_v43, 4 }
  0xa0   : > { %v5934_v60 = vrot.slane %v2254_v40, 5  ;;  %v2312_v40 = vshll.u32 %v5965_v14, 16  ;;  %v2350_v16 = vshll.u32 %v5978_v53, 16  ;;  %v2354_v0 = vshrl.u32 %v5978_v53, 16 }
  0xa2   : > { %v2261_v17 = vor.u32 %v2260_v1, %v5934_v60  ;;  %v2257_v35 = vsel %vm5379_vm4, %v2252_v19, %v5934_v60  ;;  %v6000_v60 = vld [vmem:[%s5334_s21 + $0x44] sm:$0x1]  ;;  %v2314_v11 = vrot.slane %v2312_v40, 5  ;;  %v2356_v37 = vrot.slane %v2354_v0, 4 }
  0xa3   : > { %v2336_v55 = vshll.u32 %v6000_v60, 16  ;;  %v2370_v40 = vrot.slane %v2368_v59, 5 }
  0xa4   : > { %4678 = vmatmul.mubr.msk.bf16.vlgmr.msra.gmra.mrb[0].mxu0 %vm641_vm5, %v4970_v28  ;;  %v2262_v18 = vrot.slane %v2261_v17, 4  ;;  %v2326_v28 = vshll.u32 %v5968_v10, 16  ;;  %v6013_v17 = vrot.slane %v2350_v16, 5 }
  0xa5   : > { %4694 = vmatpush3.bf16.msra.mxu0 %v2487_v6  ;;  %4681 = vmatprep.mubr.msk.bf16.mxu0 %vm641_vm5, %v4971_v41  ;;  %v2330_v41 = vshrl.u32 %v5968_v10, 16  ;;  %v4977_v6 = vld [vmem:[%s5334_s21 + $0xc] sm:$0xff]  }
  0xa6   : > { %4883 = vmatprep.subr.msk.bf16.mxu0 %vm666_vm1, %v5911_v2  ;;  %4610 = vmatmul.mubr.msk.bf16.gmra.mrb[4].mxu1 %vm641_vm5, %v4231_v26  ;;  %v5944_v26 = vld [vmem:[%s5334_s21 + $0x34] sm:$0xf]  ;;  %v6006_v1 = vrot.slane %v2326_v28, 5 }
  0xa7   : > { %4613 = vmatprep.mubr.msk.bf16.mxu1 %vm641_vm5, %v4232_v34  ;;  %v2264_v34 = vshll.u32 %v5938_v63, 16  ;;  %v2302_v24 = vshll.u32 %v5944_v26, 16  ;;  %v2306_v23 = vshrl.u32 %v5944_v26, 16 }
  0xa9   : > { %v2266_v42 = vrot.slane %v2264_v34, 5  ;;  %v5975_v46 = vrot.slane %v2302_v24, 5  ;;  %v2308_v54 = vrot.slane %v2306_v23, 4  ;;  %v6018_v24 = vld [vmem:[%s5334_s21 + $0x58] sm:$0xf] }
  0xaa   : > { %v4978_v23 = vld [vmem:[%s5334_s21 + $0x18] sm:$0xff]   ;;  %v2374_v52 = vshll.u32 %v6018_v24, 16  ;;  %v2378_v50 = vshrl.u32 %v6018_v24, 16 }
  0xab   : > { %v2267_v5 = vsel %vm5379_vm4, %v2262_v18, %v2266_v42  ;;  %v2309_v20 = vor.u32 %v2308_v54, %v5975_v46  ;;  %v4979_v18 = vld [vmem:[%s5334_s21 + $0x24] sm:$0xff]   ;;  %v2357_v42 = vor.u32 %v2356_v37, %v6013_v17 }
  0xac   : > { %4682 = vmatmul.mubr.msk.bf16.gmra.mrb[4].mxu0 %vm641_vm5, %v4972_v56  ;;  %v4413_v39 = vcombine.low %v2257_v35, %v2267_v5  ;;  %v2338_v35 = vrot.slane %v2336_v55, 5  ;;  %v6043_v5 = vld [vmem:[%s5334_s21 + $0x5c] sm:$0x1]  ;;  %v2376_v16 = vrot.slane %v2374_v52, 5  ;;  %v2380_v0 = vrot.slane %v2378_v50, 4 }
  0xad   : > { %4685 = vmatprep.mubr.msk.bf16.mxu0 %vm641_vm5, %v4973_v36  ;;  %v2332_v36 = vrot.slane %v2330_v41, 4  ;;  %v2310_v34 = vrot.slane %v2309_v20, 4  ;;  %v6059_v37 = vld [vmem:[%s5334_s21 + $0x68] sm:$0x1] }
  0xae   : > { %4614 = vmatmul.mubr.msk.bf16.gmra.mrb[8].mxu1 %vm641_vm5, %v4233_v3  ;;  %v2320_v3 = vshll.u32 %v4397_v45, 16  ;;  %v4406_v45 = vld [vmem:[%s5334_s21 + $0x60] sm:$0xf]  ;;  %v2408_v9 = vshll.u32 %v6059_v37, 16 }
  0xaf   : > { %4617 = vmatprep.mubr.msk.bf16.mxu1 %vm641_vm5, %v4234_v62  ;;  %v2290_v62 = vrot.slane %v2288_v57, 5  ;;  %v2333_v19 = vor.u32 %v2332_v36, %v6006_v1  ;;  %v2365_v57 = vshrl.u32 %v4403_v61, 16  ;;  %v2315_v49 = vsel %vm5379_vm4, %v2310_v34, %v2314_v11 }
  0xb0   : > { %v2322_v21 = vrot.slane %v2320_v3, 5  ;;  %v2389_v32 = vshrl.u32 %v4406_v45, 16  ;;  %v2384_v11 = vshll.u32 %v6043_v5, 16  ;;  %v2353_v61 = vsel %vm5379_vm4, %v2348_v47, %v6013_v17 }
  0xb1   : > { %v2291_v56 = vsel %vm5379_vm4, %v2286_v15, %v2290_v62  ;;  %v2392_v15 = vshll.u32 %v4406_v45, 16  ;;  %v2334_v41 = vrot.slane %v2333_v19, 4  ;;  %v2426_v19 = vshrl.u32 %v6049_v38, 16 }
  0xb2   : > { %v2323_v7 = vor.u32 %v2322_v21, %v2319_v44  ;;  %v4409_v44 = vld [vmem:[%s5334_s21 + $0x6c] sm:$0xf]  ;;  %v2391_v21 = vrot.slane %v2389_v32, 4  ;;  %v6075_v32 = vld [vmem:[%s5334_s21 + $0x74] sm:$0x1] }
  0xb3   : > { %v2416_v55 = vshll.u32 %v4409_v44, 16 }
  0xb4   : > { %4686 = vmatmul.mubr.msk.bf16.gmra.mrb[8].mxu0 %vm641_vm5, %v4974_v13  ;;  %v4414_v13 = vcombine.low %v2281_v30, %v2291_v56  ;;  %v2324_v3 = vrot.slane %v2323_v7, 4  ;;  %v2394_v30 = vrot.slane %v2392_v15, 5  ;;  %v2381_v7 = vor.u32 %v2380_v0, %v2376_v16  ;;  %v4982_v15 = vld [vmem:[%s5334_s21 + $0x48] sm:$0xff]  }
  0xb5   : > { %4689 = vmatprep.mubr.msk.bf16.mxu0 %vm641_vm5, %v4975_v12  ;;  %v6025_v12 = vld [vmem:[%s5334_s21 + $0x64] sm:$0xf]  ;;  %v2418_v52 = vrot.slane %v2416_v55, 5  ;;  %v2636_v0 = vrot.slane %v5904_v8, 5 }
  0xb6   : > { %4618 = vmatmul.mubr.msk.bf16.gmra.mrb[12].mxu1 %vm641_vm5, %v4235_v51  ;;  %v2300_v51 = vrot.slane %v2299_v25, 4  ;;  %v2398_v62 = vshll.u32 %v6025_v12, 16  ;;  %v2402_v28 = vshrl.u32 %v6025_v12, 16  ;;  %v2741_v25 = vsel %vm666_vm1, %v5911_v2, 0  ;;  %v4981_v2 = vld [vmem:[%s5334_s21 + $0x3c] sm:$0xff]  }
  0xb7   : > { %4623 = vmatprep.mubr.msk.bf16.mxu1 %vm641_vm5, %v4977_v6  ;;  %v2358_v6 = vrot.slane %v2357_v42, 4  ;;  %v2386_v42 = vrot.slane %v2384_v11, 5  ;;  %v2643_v11 = vrot.slane %v5915_v33, 5  ;;  %v2646_v33 = vrot.slane %v5947_v4, 5 }
  0xb8   : > { %v2305_v54 = vsel %vm5379_vm4, %v2300_v51, %v5975_v46  ;;  %v2367_v46 = vrot.slane %v2365_v57, 4  ;;  %v2400_v56 = vrot.slane %v2398_v62, 5  ;;  %v2404_v36 = vrot.slane %v2402_v28, 4  ;;  %v4983_v28 = vld [vmem:[%s5334_s21 + $0x54] sm:$0xff]  }
  0xb9   : > { %v4415_v20 = vcombine.low %v2305_v54, %v2315_v49  ;;  %v2363_v51 = vsel %vm5379_vm4, %v2358_v6, %v2362_v58  ;;  %v2428_v54 = vrot.slane %v2426_v19, 4  ;;  %v2645_v55 = vrot.slane %v2643_v11, 4 }
  0xba   : > { %v2371_v34 = vor.u32 %v2370_v40, %v2367_v46  ;;  %v2405_v43 = vor.u32 %v2404_v36, %v2400_v56  ;;  %v4417_v57 = vcombine.low %v2353_v61, %v2363_v51  ;;  %v2432_v46 = vshll.u32 %v6075_v32, 16 }
  0xbb   : > { %v2650_v51 = vrot.slane %v5944_v26, 5 }
  0xbc   : > { %4690 = vmatmul.mubr.msk.bf16.gmra.mrb[12].mxu0 %vm641_vm5, %v4976_v27  ;;  %v2329_v27 = vsel %vm5379_vm4, %v2324_v3, %v6006_v1  ;;  %v2413_v1 = vshrl.u32 %v4409_v44, 16  ;;  %v2372_v45 = vrot.slane %v2371_v34, 4  ;;  %v2406_v3 = vrot.slane %v2405_v43, 4  ;;  %v4431_v34 = vld [vmem:[%s5334_s21 + $0x30] sm:$0xe] }
  0xbd   : > { %4695 = vmatprep.mubr.msk.bf16.mxu0 %vm641_vm5, %v4413_v39  ;;  %v2339_v39 = vsel %vm5379_vm4, %v2334_v41, %v2338_v35  ;;  %v2410_v35 = vrot.slane %v2408_v9, 5  ;;  %v2652_v19 = vrot.slane %v2650_v51, 4  ;;  %v2647_v43 = vsel %vm5647_vm8, %v2645_v55, %v2646_v33 }
  0xbe   : > { %4624 = vmatmul.mubr.msk.bf16.vlgmr.msra.gmra.mrb[0].mxu1 %vm641_vm5, %v4978_v23  ;;  %v2422_v23 = vshll.u32 %v6049_v38, 16  ;;  %v4416_v17 = vcombine.low %v2329_v27, %v2339_v39  ;;  %v2415_v59 = vrot.slane %v2413_v1, 4  ;;  %v2377_v62 = vsel %vm5379_vm4, %v2372_v45, %v2376_v16  ;;  %v4429_v16 = vld [vmem:[%s5334_s21 + $0x18] sm:$0xe]  ;;  %v4984_v27 = vld [vmem:[%s5334_s21 + $0x60] sm:$0xff]  }
  0xbf   : > { %4627 = vmatprep.mubr.msk.bf16.mxu1 %vm641_vm5, %v4979_v18  ;;  %v2382_v18 = vrot.slane %v2381_v7, 4  ;;  %v2411_v40 = vsel %vm5379_vm4, %v2406_v3, %v2410_v35  ;;  %v4437_v36 = vrot.slane %v4429_v16, 9  ;;  %v2657_v9 = vrot.slane %v5968_v10, 5  ;;  %v4433_v45 = vld [vmem:[%s5334_s21 + $0x48] sm:$0xe] }
  0xc0   : > { %v2424_v50 = vrot.slane %v2422_v23, 5  ;;  %v2419_v47 = vor.u32 %v2418_v52, %v2415_v59  ;;  %v4439_v23 = vrot.slane %v4431_v34, 9  ;;  %v2671_v35 = vrot.slane %v6018_v24, 5 }
  0xc1   : > { %v2387_v41 = vsel %vm5379_vm4, %v2382_v18, %v2386_v42  ;;  %v2659_v52 = vrot.slane %v2657_v9, 4  ;;  %v2681_v24 = vrot.slane %v6059_v37, 5 }
  0xc2   : > { %v2429_v58 = vor.u32 %v2428_v54, %v2424_v50  ;;  %v2420_v44 = vrot.slane %v2419_v47, 4  ;;  %v4441_v54 = vrot.slane %v4433_v45, 9 }
  0xc4   : > { %4696 = vmatmul.mubr.msk.bf16.vlgmr.msra.gmra.mrb[0].mxu0 %vm641_vm5, %v4414_v13  ;;  %v2395_v13 = vor.u32 %v2394_v30, %v2391_v21  ;;  %v2430_v21 = vrot.slane %v2429_v58, 4  ;;  %v2434_v30 = vrot.slane %v2432_v46, 5  ;;  %v2425_v8 = vsel %vm5379_vm4, %v2420_v44, %v2424_v50  ;;  %v4436_v44 = vld [vmem:[%s5334_s21 + $0x6c] sm:$0xe] }
  0xc5   : > { %4712 = vmatpush3.bf16.msra.mxu0 %v2741_v25  ;;  %4699 = vmatprep.mubr.msk.bf16.mxu0 %vm641_vm5, %v4415_v20  ;;  %v4418_v25 = vcombine.low %v2377_v62, %v2387_v41  ;;  %v2660_v50 = vrot.slane %v6000_v60, 5  ;;  %v4434_v62 = vld [vmem:[%s5334_s21 + $0x54] sm:$0xe]  ;;  %v2673_v46 = vrot.slane %v2671_v35, 4 }
  0xc6   : > { %4628 = vmatmul.mubr.msk.bf16.gmra.mrb[4].mxu1 %vm641_vm5, %v4980_v29  ;;  %v2396_v49 = vrot.slane %v2395_v13, 4  ;;  %v2638_v29 = vrot.slane %v2636_v0, 4  ;;  %v2435_v39 = vsel %vm5379_vm4, %v2430_v21, %v2434_v30  ;;  %v2653_v13 = vrot.slane %v5965_v14, 5 }
  0xc7   : > { %4631 = vmatprep.mubr.msk.bf16.mxu1 %vm641_vm5, %v4981_v2  ;;  %v2637_v2 = vsel %vm5647_vm8, %v4437_v36, %v2636_v0  ;;  %v4420_v7 = vcombine.low %v2425_v8, %v2435_v39  ;;  %v2664_v14 = vrot.slane %v5978_v53, 5  ;;  %v2661_v3 = vsel %vm5647_vm8, %v2659_v52, %v2660_v50 }
  0xc8   : > { %v2401_v6 = vsel %vm5379_vm4, %v2396_v49, %v2400_v56  ;;  %v2639_v56 = vrot.slane %v5938_v63, 5  ;;  %v4430_v63 = vld [vmem:[%s5334_s21 + $0x24] sm:$0xe]  ;;  %v2654_v4 = vsel %vm5647_vm8, %v2652_v19, %v2653_v13  ;;  %v2667_v49 = vrot.slane %v6009_v48, 5 }
  0xc9   : > { %v4419_v20 = vcombine.low %v2401_v6, %v2411_v40  ;;  %v4438_v31 = vrot.slane %v4430_v63, 9  ;;  %v2666_v10 = vrot.slane %v2664_v14, 4  ;;  %v2678_v48 = vrot.slane %v6025_v12, 5 }
  0xca   : > { %v2640_v61 = vsel %vm5647_vm8, %v2638_v29, %v2639_v56  ;;  %v4442_v58 = vrot.slane %v4434_v62, 9  ;;  %v2674_v6 = vrot.slane %v6043_v5, 5  ;;  %v4444_v30 = vrot.slane %v4436_v44, 9 }
  0xcb   : > { %v4446_v1 = vcombine.low %v2637_v2, %v2640_v61  ;;  %v2644_v26 = vsel %vm5647_vm8, %v4438_v31, %v2643_v11  ;;  %v2668_v60 = vsel %vm5647_vm8, %v2666_v10, %v2667_v49  ;;  %v2680_v0 = vrot.slane %v2678_v48, 4 }
  0xcc   : > { %4700 = vmatmul.mubr.msk.bf16.gmra.mrb[4].mxu0 %vm641_vm5, %v4416_v17  ;;  %v2651_v17 = vsel %vm5647_vm8, %v4439_v23, %v2650_v51  ;;  %v4447_v18 = vcombine.low %v2644_v26, %v2647_v43  ;;  %v2672_v16 = vsel %vm5647_vm8, %v4442_v58, %v2671_v35  ;;  %v2675_v12 = vsel %vm5647_vm8, %v2673_v46, %v2674_v6  ;;  %v6176_v26 = vld [vmem:[%s7035_s3] ss:$0 sm:$0xff] }
  0xcd   : > { %4703 = vmatprep.mubr.msk.bf16.mxu0 %vm641_vm5, %v4417_v57  ;;  %v4432_v57 = vld [vmem:[%s5334_s21 + $0x3c] sm:$0xe]  ;;  %v4448_v42 = vcombine.low %v2651_v17, %v2654_v4  ;;  %v2682_v5 = vsel %vm5647_vm8, %v2680_v0, %v2681_v24  ;;  %v4451_v37 = vcombine.low %v2672_v16, %v2675_v12  ;;  %v2688_v29 = vrot.slane %v6075_v32, 5 }
  0xce   : > { %4632 = vmatmul.mubr.msk.bf16.gmra.mrb[8].mxu1 %vm641_vm5, %v4982_v15  ;;  %v4440_v59 = vrot.slane %v4432_v57, 9  ;;  %v2665_v15 = vsel %vm5647_vm8, %v4441_v54, %v2664_v14 }
  0xcf   : > { %4635 = vmatprep.mubr.msk.bf16.mxu1 %vm641_vm5, %v4983_v28  ;;  %v4435_v28 = vld [vmem:[%s5334_s21 + $0x60] sm:$0xe]  ;;  %v4450_v47 = vcombine.low %v2665_v15, %v2668_v60 }
  0xd0   : > { %v2658_v53 = vsel %vm5647_vm8, %v4440_v59, %v2657_v9  ;;  %v4443_v40 = vrot.slane %v4435_v28, 9 }
  0xd1   : > { %v4449_v41 = vcombine.low %v2658_v53, %v2661_v3 }
  0xd4   : > { %4704 = vmatmul.mubr.msk.bf16.gmra.mrb[8].mxu0 %vm641_vm5, %v4418_v25  ;;  %v2685_v25 = vrot.slane %v6049_v38, 5 }
  0xd5   : > { %4707 = vmatprep.mubr.msk.bf16.mxu0 %vm641_vm5, %v4419_v20  ;;  %v2679_v20 = vsel %vm5647_vm8, %v4443_v40, %v2678_v48 }
  0xd6   : > { %4636 = vmatmul.mubr.msk.bf16.gmra.mrb[12].mxu1 %vm641_vm5, %v4984_v27  ;;  %v4452_v21 = vcombine.low %v2679_v20, %v2682_v5  ;;  %v2687_v36 = vrot.slane %v2685_v25, 4  ;;  %v2686_v38 = vsel %vm5647_vm8, %v4444_v30, %v2685_v25 }
  0xd8   : > { %v2689_v56 = vsel %vm5647_vm8, %v2687_v36, %v2688_v29 }
  0xd9   : > { %v4453_v27 = vcombine.low %v2686_v38, %v2689_v56 }
  0xdc   : > { %4708 = vmatmul.mubr.msk.bf16.gmra.mrb[12].mxu0 %vm641_vm5, %v4420_v7 }
  0xdd   : > { %4713 = vmatprep.mubr.msk.bf16.mxu0 %vm641_vm5, %v4446_v1 }
  0xe4   : > { %4714 = vmatmul.mubr.msk.bf16.vlgmr.msra.gmra.mrb[0].mxu0 %vm641_vm5, %v4447_v18 }
  0xe5   : > { %4717 = vmatprep.mubr.msk.bf16.mxu0 %vm641_vm5, %v4448_v42 }
  0xec   : > { %4718 = vmatmul.mubr.msk.bf16.gmra.mrb[4].mxu0 %vm641_vm5, %v4449_v41 }
  0xed   : > { %4721 = vmatprep.mubr.msk.bf16.mxu0 %vm641_vm5, %v4450_v47 }
  0xf4   : > { %4722 = vmatmul.mubr.msk.bf16.gmra.mrb[8].mxu0 %vm641_vm5, %v4451_v37 }
  0xf5   : > { %4725 = vmatprep.mubr.msk.bf16.mxu0 %vm641_vm5, %v4452_v21 }
  0xfc   : > { %4726 = vmatmul.mubr.msk.bf16.gmra.mrb[12].mxu0 %vm641_vm5, %v4453_v27 }
 0x191   : > { %v4625_v8 = vpop.f32.mrb[0].mxu1 }
 0x192   : > { %v1303_v39 = vpop.f32.mrb[1].mxu1 }
 0x193   : > { %v4626_v11 = vpop.f32.mrb[2].mxu1 }
 0x194   : > { %v1306_v2 = vpop.f32.mrb[3].mxu1 }
 0x199   : > { %v4629_v61 = vpop.f32.mrb[4].mxu1 }
 0x19a   : > { %v1319_v63 = vpop.f32.mrb[5].mxu1 }
 0x19b   : > { %v4630_v32 = vpop.f32.mrb[6].mxu1 }
 0x19c   : > { %v1322_v51 = vpop.f32.mrb[7].mxu1 }
 0x1a1   : > { %v4633_v34 = vpop.f32.mrb[8].mxu1 }
 0x1a2   : > { %v1335_v7 = vpop.f32.mrb[9].mxu1 }
 0x1a3   : > { %v4634_v1 = vpop.f32.mrb[10].mxu1 }
 0x1a4   : > { %v1338_v31 = vpop.f32.mrb[11].mxu1 }
 0x1a9   : > { %v6165_v55 = vpop.f32.mrb[12].mxu1 }
 0x1aa   : > { %v6167_v33 = vpop.f32.mrb[13].mxu1 }
 0x1ab   : > { %v6169_v22 = vpop.f32.mrb[14].mxu1 }
 0x1ac   : > { %v6171_v23 = vpop.f32.mrb[15].mxu1 }
 0x1b7   : > { %v4715_v19 = vpop.f32.mrb[0].mxu0 }
 0x1b8   : > { %v4747_v13 = vadd.f32 %v4715_v19, %v4625_v8  ;;  %v2777_v43 = vpop.f32.mrb[1].mxu0 }
 0x1b9   : > { %v4748_v9 = vadd.f32 %v2777_v43, %v1303_v39  ;;  %v4716_v17 = vpop.f32.mrb[2].mxu0 }
 0x1ba   : > { %v4749_v4 = vadd.f32 %v4716_v17, %v4626_v11  ;;  %v2780_v57 = vpop.f32.mrb[3].mxu0  ;;  %v6179_v14 = vadd.f32 %v4747_v13, %v6176_v26 }
 0x1bb   : > { %v6182_v45 = vadd.f32 %v4748_v9, %v6176_v26  ;;  %v4750_v18 = vadd.f32 %v2780_v57, %v1306_v2 }
 0x1bc   : > { %v6186_v59 = vadd.f32 %v4749_v4, %v6176_v26  ;;  %v2881_v50 = vmax.f32 %v6179_v14, 0.0 }
 0x1bd   : > { %v2879_v42 = vmax.f32 %v6182_v45, 0.0  ;;  %v6189_v52 = vadd.f32 %v4750_v18, %v6176_v26 }
 0x1be   : > { %v2882_v35 = vmax.f32 %v6186_v59, 0.0  ;;  %v2899_v47 = vsel %vm641_vm5, %v2881_v50, 0.0 }
 0x1bf   : > { %v2880_v54 = vmax.f32 %v6189_v52, 0.0  ;;  %v4719_v10 = vpop.f32.mrb[4].mxu0  ;;  %v2896_v3 = vsel %vm641_vm5, %v2879_v42, 0.0 }
 0x1c0   : > { %v4751_v49 = vadd.f32 %v4719_v10, %v4629_v61  ;;  %v2793_v53 = vpop.f32.mrb[5].mxu0  ;;  %v2901_v0 = vsel %vm641_vm5, %v2882_v35, 0.0 }
 0x1c1   : > { %v2897_v15 = vsel %vm641_vm5, %v2880_v54, 0.0  ;;  %v4752_v60 = vadd.f32 %v2793_v53, %v1319_v63  ;;  %v4720_v62 = vpop.f32.mrb[6].mxu0 }
 0x1c2   : > { %v2898_v48 = vadd.f32 %v2897_v15, %v2896_v3  ;;  %v4753_v28 = vadd.f32 %v4720_v62, %v4630_v32  ;;  %v2796_v41 = vpop.f32.mrb[7].mxu0  ;;  %v6204_v58 = vadd.f32 %v4751_v49, %v6176_v26 }
 0x1c3   : > { %v6207_v46 = vadd.f32 %v4752_v60, %v6176_v26  ;;  %v4754_v6 = vadd.f32 %v2796_v41, %v1322_v51 }
 0x1c4   : > { %v2900_v40 = vadd.f32 %v2899_v47, %v2898_v48  ;;  %v6214_v16 = vadd.f32 %v4753_v28, %v6176_v26  ;;  %v2885_v20 = vmax.f32 %v6204_v58, 0.0 }
 0x1c5   : > { %v2883_v24 = vmax.f32 %v6207_v46, 0.0  ;;  %v6217_v12 = vadd.f32 %v4754_v6, %v6176_v26 }
 0x1c6   : > { %v2902_v25 = vadd.f32 %v2901_v0, %v2900_v40  ;;  %v2886_v29 = vmax.f32 %v6214_v16, 0.0  ;;  %v2907_v2 = vsel %vm641_vm5, %v2885_v20, 0.0 }
 0x1c7   : > { %v2903_v5 = vsel %vm641_vm5, %v2883_v24, 0.0  ;;  %v2884_v44 = vmax.f32 %v6217_v12, 0.0  ;;  %v4723_v37 = vpop.f32.mrb[8].mxu0 }
 0x1c8   : > { %v2904_v21 = vadd.f32 %v2903_v5, %v2902_v25  ;;  %v4755_v30 = vadd.f32 %v4723_v37, %v4633_v34  ;;  %v2809_v36 = vpop.f32.mrb[9].mxu0  ;;  %v2909_v34 = vsel %vm641_vm5, %v2886_v29, 0.0 }
 0x1c9   : > { %v2905_v38 = vsel %vm641_vm5, %v2884_v44, 0.0  ;;  %v4756_v56 = vadd.f32 %v2809_v36, %v1335_v7  ;;  %v4724_v27 = vpop.f32.mrb[10].mxu0 }
 0x1ca   : > { %v2906_v8 = vadd.f32 %v2905_v38, %v2904_v21  ;;  %v4757_v39 = vadd.f32 %v4724_v27, %v4634_v1  ;;  %v2812_v11 = vpop.f32.mrb[11].mxu0  ;;  %v6232_v61 = vadd.f32 %v4755_v30, %v6176_v26 }
 0x1cb   : > { %v6235_v63 = vadd.f32 %v4756_v56, %v6176_v26  ;;  %v4758_v32 = vadd.f32 %v2812_v11, %v1338_v31 }
 0x1cc   : > { %v2908_v51 = vadd.f32 %v2907_v2, %v2906_v8  ;;  %v6242_v1 = vadd.f32 %v4757_v39, %v6176_v26  ;;  %v2889_v43 = vmax.f32 %v6232_v61, 0.0 }
 0x1cd   : > { %v2887_v7 = vmax.f32 %v6235_v63, 0.0  ;;  %v6245_v19 = vadd.f32 %v4758_v32, %v6176_v26 }
 0x1ce   : > { %v2910_v13 = vadd.f32 %v2909_v34, %v2908_v51  ;;  %v2890_v10 = vmax.f32 %v6242_v1, 0.0  ;;  %v2915_v48 = vsel %vm641_vm5, %v2889_v43, 0.0  ;;  %v2895_v51 = vld [vmem:[#allocation2] sm:$0x1] }
 0x1cf   : > { %v2911_v31 = vsel %vm641_vm5, %v2887_v7, 0.0  ;;  %v2888_v9 = vmax.f32 %v6245_v19, 0.0  ;;  %v4727_v17 = vpop.f32.mrb[12].mxu0 }
 0x1d0   : > { %v2912_v4 = vadd.f32 %v2911_v31, %v2910_v13  ;;  %v4759_v57 = vadd.f32 %v4727_v17, %v6165_v55  ;;  %v2825_v18 = vpop.f32.mrb[13].mxu0 }
 0x1d1   : > { %v2913_v49 = vsel %vm641_vm5, %v2888_v9, 0.0  ;;  %v4760_v53 = vadd.f32 %v2825_v18, %v6167_v33  ;;  %v4728_v3 = vpop.f32.mrb[14].mxu0  ;;  %v2917_v33 = vsel %vm641_vm5, %v2890_v10, 0.0 }
 0x1d2   : > { %v2914_v15 = vadd.f32 %v2913_v49, %v2912_v4  ;;  %v4761_v60 = vadd.f32 %v4728_v3, %v6169_v22  ;;  %v2828_v62 = vpop.f32.mrb[15].mxu0  ;;  %v6263_v55 = vadd.f32 %v4759_v57, %v6176_v26 }
 0x1d3   : > { %v6266_v28 = vadd.f32 %v4760_v53, %v6176_v26  ;;  %v4762_v41 = vadd.f32 %v2828_v62, %v6171_v23 }
 0x1d4   : > { %v2916_v47 = vadd.f32 %v2915_v48, %v2914_v15  ;;  %v6274_v6 = vadd.f32 %v4761_v60, %v6176_v26  ;;  %v2893_v25 = vmax.f32 %v6263_v55, 0.0 }
 0x1d5   : > { %v2891_v22 = vmax.f32 %v6266_v28, 0.0  ;;  %v6277_v40 = vadd.f32 %v4762_v41, %v6176_v26 }
 0x1d6   : > { %v2918_v0 = vadd.f32 %v2917_v33, %v2916_v47  ;;  %v2894_v21 = vmax.f32 %v6274_v6, 0.0  ;;  %v2923_v26 = vsel %vm641_vm5, %v2893_v25, 0.0 }
 0x1d7   : > { %v2919_v23 = vsel %vm641_vm5, %v2891_v22, 0.0  ;;  %v2892_v5 = vmax.f32 %v6277_v40, 0.0 }
 0x1d8   : > { %v2920_v37 = vadd.f32 %v2919_v23, %v2918_v0  ;;  %v2925_v56 = vsel %vm641_vm5, %v2894_v21, 0.0 }
 0x1d9   : > { %v2921_v30 = vsel %vm641_vm5, %v2892_v5, 0.0 }
 0x1da   : > { %v2922_v36 = vadd.f32 %v2921_v30, %v2920_v37 }
 0x1dc   : > { %v2924_v38 = vadd.f32 %v2923_v26, %v2922_v36 }
 0x1de   : > { %v2926_v27 = vadd.f32 %v2925_v56, %v2924_v38 }
 0x1e0   : > { %v2927_v8 = vrot.slane %v2926_v27, 4 }
 0x1e2   : > { %v2928_v39 = vadd.f32 %v2927_v8, %v2926_v27 }
 0x1e4   : > { %v2929_v11 = vrot.slane %v2928_v39, 2 }
 0x1e6   : > { %v2930_v2 = vadd.f32 %v2929_v11, %v2928_v39 }
 0x1e8   : > { %v2931_v32 = vrot.slane %v2930_v2, 1  ;;  %2939 = sbr.rel (%p4463_p1) target bundleno = 505 (0x1f9), region = 52 }
 0x1ea   : > { %v2932_v34 = vadd.f32 %v2931_v32, %v2930_v2 }
 0x1ec   : > { %v2933_v13 = vadd.f32 %v2932_v34, %v2895_v51 }
 0x1ee   : > { %2935 = vst.msk [vmem:[#allocation2] sm:$0x1] %vm2934_vm9, %v2933_v13 }
 0x1f5   : > { %v2940_v31 = vld [vmem:[#allocation2] sm:$0x1] }
 0x1f6   : > { %v2941_v17 = vmul.f32 0.00390625, %v2940_v31 }
 0x1f8   : > { %2942 = vst.msk [vmem:[%s5320_s25] sm:$0x1] %vm2934_vm9, %v2941_v17 }
 0x1f9 PF: > { %v6295_v4 = vld [vmem:[%s5306_s10] sm:$0xff]  ;;  %v2943_v18 = vpack.c.bf16 %v2880_v54, %v2879_v42  ;;  %v6305_v49 = vld [vmem:[%s5306_s10 + $0x10] sm:$0xff]  ;;  %s5178_s30 = smov 6   ;;  %v2944_v45 = vpack.c.bf16 %v2882_v35, %v2881_v50  ;;  %v6317_v42 = vld [vmem:[%s5306_s10 + $0x8] sm:$0xff]  ;;  %v2945_v52 = vpack.c.bf16 %v2884_v44, %v2883_v24  ;;  %v2946_v54 = vpack.c.bf16 %v2886_v29, %v2885_v20  ;;  %s5180_s24 = smov 125  }
 0x1fa   : > { %v2951_v57 = vld [vmem:[%s7036_s4] sm:$0x3]  ;;  %3131 = vrot.lane.b32.xlu0 %v6295_v4, %s5178_s30  ;;  %3135 = vrot.lane.b32.xlu1 %v6305_v49, %s5178_s30  ;;  %v6326_v14 = vld [vmem:[%s5306_s10 + $0x18] sm:$0xff]  ;;  %v2947_v46 = vpack.c.bf16 %v2888_v9, %v2887_v7  ;;  %v2948_v12 = vpack.c.bf16 %v2890_v10, %v2889_v43  ;;  %v2949_v44 = vpack.c.bf16 %v2892_v5, %v2891_v22  ;;  %s4473_s13 = sshll.u32 %s5163_s9, 4  ;;  %s4006_s27 = sshll.u32 %s5320_s25, 4  ;;  %s6848_s27 = int_to_ptr.vmem [resolvable:$true] %s4006_s27 }
 0x1fb   : > { %4884 = vmatprep.subr.msk.bf16.mxu1 %vm666_vm1, %v2951_v57  ;;  %v2984_v53 = vsel %vm666_vm1, %v2951_v57, 0  ;;  %4731 = vmatprep.mubr.msk.bf16.mxu1 %vm641_vm5, %v2943_v18  ;;  %v6332_v59 = vld [vmem:[%s5306_s10 + $0x20] sm:$0xff]  ;;  %v6338_v50 = vld [vmem:[%s5306_s10 + $0x28] sm:$0xff]  ;;  %v6347_v35 = vld [vmem:[%s5306_s10 + $0x30] sm:$0xff]  ;;  %v2950_v7 = vpack.c.bf16 %v2894_v21, %v2893_v25  ;;  %s6844_s15 = scalar_lea.hbm %s7040_s8, %s4473_s13  ;;  %s7111_s9 = sand.u32 1, %s5151_s28  }
 0x1fc   : > { %4730 = vmatpush3.bf16.msra.mxu1 %v2984_v53  ;;  %v6356_v24 = vld [vmem:[%s5306_s10 + $0x38] sm:$0xff]  ;;  %v6362_v58 = vld [vmem:[%s5306_s10 + $0x40] sm:$0xff]  ;;  %v6368_v16 = vld [vmem:[%s5306_s10 + $0x48] sm:$0xff]  ;;  %s3986_s16 = scalar_lea.sflag [#allocation4], %s7111_s9  ;;  %s5081_s22 = scalar_lea.vmem %s6848_s27, 16 }
 0x1fd   : > { %v6377_v20 = vld [vmem:[%s5306_s10 + $0x50] sm:$0xff]  ;;  %v6384_v29 = vld [vmem:[%s5306_s10 + $0x58] sm:$0xff]  ;;  %v6390_v61 = vld [vmem:[%s5306_s10 + $0x60] sm:$0xff]  ;;  %p5082_p2 = scmp.ne.s32.totalorder %s6848_s27, %s5081_s22  ;;  %s5181_s21 = smov [#allocation3]  }
 0x1fe   : > { %3133 = vrot.lane.b32.xlu0 %v6317_v42, %s5178_s30  ;;  %3137 = vrot.lane.b32.xlu1 %v6326_v14, %s5178_s30  ;;  %v6396_v63 = vld [vmem:[%s5306_s10 + $0x68] sm:$0xff]  ;;  %v6405_v1 = vld [vmem:[%s5306_s10 + $0x70] sm:$0xff]  ;;  %s5085_s23 = sshll.u32 %s5181_s21, 4  ;;  %s5086_s23 = int_to_ptr.vmem [resolvable:$false] %s5085_s23 }
 0x1ff   : > { %4732 = vmatmul.mubr.msk.bf16.vlgmr.msra.gmra.mrb[16].mxu1 %vm641_vm5, %v2944_v45  ;;  %v6410_v19 = vld [vmem:[%s5306_s10 + $0x78] sm:$0xff]  ;;  %s5179_s10 = smov 122   ;;  %p5083_p4 = pnand %p5082_p2, %p5276_p3 }
 0x200   : > { %4735 = vmatprep.mubr.msk.bf16.mxu1 %vm641_vm5, %v2945_v52  ;;  %s5087_s25 = scalar_lea.vmem %s5086_s23, 32  ;;  %p5088_p6 = scmp.lt.s32.totalorder %s6848_s27, %s5086_s23 }
 0x201   : > { %p5084_p5 = pneg %p5083_p4  ;;  %p5089_p7 = scmp.lt.s32.totalorder %s5087_s25, %s5081_s22 }
 0x202   : > { %3139 = vrot.lane.b32.xlu0 %v6332_v59, %s5178_s30  ;;  %3141 = vrot.lane.b32.xlu1 %v6338_v50, %s5178_s30 }
 0x203   : > { %p5090_p8 = por %p5089_p7, %p5088_p6 }
 0x205   : > { %p5091_p10 = pnand %p5090_p8, %p5084_p5 }
 0x206   : > { %3143 = vrot.lane.b32.xlu0 %v6347_v35, %s5178_s30  ;;  %3145 = vrot.lane.b32.xlu1 %v6356_v24, %s5178_s30 }
 0x207   : > { %4736 = vmatmul.mubr.msk.bf16.gmra.mrb[20].mxu1 %vm641_vm5, %v2946_v54 }
 0x208   : > { %4739 = vmatprep.mubr.msk.bf16.mxu1 %vm641_vm5, %v2947_v46 }
 0x20a   : > { %3147 = vrot.lane.b32.xlu0 %v6362_v58, %s5178_s30  ;;  %3149 = vrot.lane.b32.xlu1 %v6368_v16, %s5178_s30 }
 0x20e   : > { %3151 = vrot.lane.b32.xlu0 %v6377_v20, %s5178_s30  ;;  %3153 = vrot.lane.b32.xlu1 %v6384_v29, %s5178_s30 }
 0x20f   : > { %4740 = vmatmul.mubr.msk.bf16.gmra.mrb[24].mxu1 %vm641_vm5, %v2948_v12 }
 0x210   : > { %4743 = vmatprep.mubr.msk.bf16.mxu1 %vm641_vm5, %v2949_v44 }
 0x212   : > { %3155 = vrot.lane.b32.xlu0 %v6390_v61, %s5178_s30  ;;  %3157 = vrot.lane.b32.xlu1 %v6396_v63, %s5178_s30 }
 0x216   : > { %3159 = vrot.lane.b32.xlu0 %v6405_v1, %s5178_s30  ;;  %3161 = vrot.lane.b32.xlu1 %v6410_v19, %s5178_s30 }
 0x217   : > { %4744 = vmatmul.mubr.msk.bf16.gmra.mrb[28].mxu1 %vm641_vm5, %v2950_v7 }
 0x26c   : > { %v3132_v43 = vpop.permute.xlu0 %3131  ;;  %v3136_v10 = vpop.permute.xlu1 %3135 }
 0x26d   : > { %v6418_v9 = vsub.f32 %v6295_v4, %v3132_v43  ;;  %v6423_v3 = vsub.f32 %v6305_v49, %v3136_v10 }
 0x26f   : > { %3435 = vrot.lane.b32.xlu0 %v6418_v9, %s5178_s30  ;;  %v3195_v32 = vmul.f32 0.5, %v6418_v9  ;;  %v3197_v34 = vmul.f32 0.5, %v6423_v3 }
 0x270   : > { %v3134_v15 = vpop.permute.xlu0 %3133  ;;  %v3138_v62 = vpop.permute.xlu1 %3137 }
 0x271   : > { %v6426_v60 = vsub.f32 %v6317_v42, %v3134_v15  ;;  %v6433_v48 = vsub.f32 %v6326_v14, %v3138_v62 }
 0x273   : > { %3439 = vrot.lane.b32.xlu0 %v6423_v3, %s5178_s30  ;;  %3437 = vrot.lane.b32.xlu1 %v6426_v60, %s5178_s30  ;;  %v3196_v51 = vmul.f32 0.5, %v6426_v60  ;;  %v3198_v13 = vmul.f32 0.5, %v6433_v48 }
 0x274   : > { %v3140_v55 = vpop.permute.xlu0 %3139  ;;  %v3142_v41 = vpop.permute.xlu1 %3141 }
 0x275   : > { %v6436_v28 = vsub.f32 %v6332_v59, %v3140_v55  ;;  %v6443_v47 = vsub.f32 %v6338_v50, %v3142_v41 }
 0x277   : > { %3441 = vrot.lane.b32.xlu1 %v6433_v48, %s5178_s30  ;;  %3443 = vrot.lane.b32.xlu0 %v6436_v28, %s5178_s30  ;;  %7091 = vst [vmem:[#allocation17_spill] sm:$0xff] %v6443_v47  ;;  %v3199_v31 = vmul.f32 0.5, %v6436_v28  ;;  %v3200_v17 = vmul.f32 0.5, %v6443_v47 }
 0x278   : > { %v3144_v33 = vpop.permute.xlu0 %3143  ;;  %v3146_v6 = vpop.permute.xlu1 %3145 }
 0x279   : > { %v6446_v22 = vsub.f32 %v6347_v35, %v3144_v33  ;;  %v6453_v40 = vsub.f32 %v6356_v24, %v3146_v6 }
 0x27b   : > { %3445 = vrot.lane.b32.xlu1 %v6443_v47, %s5178_s30  ;;  %3447 = vrot.lane.b32.xlu0 %v6446_v22, %s5178_s30  ;;  %7092 = vst [vmem:[#allocation16_spill] sm:$0xff] %v6453_v40  ;;  %v3201_v57 = vmul.f32 0.5, %v6446_v22  ;;  %v3202_v18 = vmul.f32 0.5, %v6453_v40 }
 0x27c   : > { %v3148_v0 = vpop.permute.xlu0 %3147  ;;  %v3150_v23 = vpop.permute.xlu1 %3149 }
 0x27d   : > { %v6456_v25 = vsub.f32 %v6362_v58, %v3148_v0  ;;  %v6463_v5 = vsub.f32 %v6368_v16, %v3150_v23 }
 0x27f   : > { %7093 = vst [vmem:[#allocation15_spill] sm:$0xff] %v6456_v25  ;;  %3449 = vrot.lane.b32.xlu1 %v6453_v40, %s5178_s30  ;;  %3451 = vrot.lane.b32.xlu0 %v6456_v25, %s5178_s30  ;;  %7094 = vst [vmem:[#allocation18_spill] sm:$0xff] %v6463_v5  ;;  %v3203_v53 = vmul.f32 0.5, %v6456_v25  ;;  %v3204_v45 = vmul.f32 0.5, %v6463_v5 }
 0x280   : > { %v3152_v37 = vpop.permute.xlu0 %3151  ;;  %v3154_v30 = vpop.permute.xlu1 %3153 }
 0x281   : > { %v6466_v21 = vsub.f32 %v6377_v20, %v3152_v37  ;;  %v6473_v36 = vsub.f32 %v6384_v29, %v3154_v30 }
 0x283   : > { %7095 = vst [vmem:[#allocation19_spill] sm:$0xff] %v6466_v21  ;;  %3453 = vrot.lane.b32.xlu1 %v6463_v5, %s5178_s30  ;;  %3455 = vrot.lane.b32.xlu0 %v6466_v21, %s5178_s30  ;;  %7096 = vst [vmem:[#allocation20_spill] sm:$0xff] %v6473_v36  ;;  %v3205_v52 = vmul.f32 0.5, %v6466_v21  ;;  %v3206_v54 = vmul.f32 0.5, %v6473_v36 }
 0x284   : > { %v3156_v26 = vpop.permute.xlu0 %3155  ;;  %v3158_v56 = vpop.permute.xlu1 %3157 }
 0x285   : > { %v6476_v38 = vsub.f32 %v6390_v61, %v3156_v26  ;;  %v6483_v27 = vsub.f32 %v6396_v63, %v3158_v56 }
 0x287   : > { %7097 = vst [vmem:[#allocation21_spill] sm:$0xff] %v6476_v38  ;;  %3457 = vrot.lane.b32.xlu1 %v6473_v36, %s5178_s30  ;;  %3459 = vrot.lane.b32.xlu0 %v6476_v38, %s5178_s30  ;;  %7098 = vst [vmem:[#allocation22_spill] sm:$0xff] %v6483_v27  ;;  %v3207_v46 = vmul.f32 0.5, %v6476_v38  ;;  %v3208_v12 = vmul.f32 0.5, %v6483_v27 }
 0x288   : > { %v3160_v8 = vpop.permute.xlu0 %3159  ;;  %v3162_v11 = vpop.permute.xlu1 %3161 }
 0x289   : > { %v6486_v39 = vsub.f32 %v6405_v1, %v3160_v8  ;;  %v6493_v2 = vsub.f32 %v6410_v19, %v3162_v11 }
 0x28b   : > { %7099 = vst [vmem:[#allocation23_spill] sm:$0xff] %v6486_v39  ;;  %3461 = vrot.lane.b32.xlu1 %v6483_v27, %s5178_s30  ;;  %3463 = vrot.lane.b32.xlu0 %v6486_v39, %s5178_s30  ;;  %7100 = vst [vmem:[#allocation24_spill] sm:$0xff] %v6493_v2  ;;  %v3209_v44 = vmul.f32 0.5, %v6486_v39  ;;  %v3210_v7 = vmul.f32 0.5, %v6493_v2 }
 0x28f   : > { %3465 = vrot.lane.b32.xlu1 %v6493_v2, %s5178_s30  ;;  %3227 = vrot.lane.b32.xlu0 %v3195_v32, %s5179_s10  ;;  %v6587_v2 = vld [vmem:[%s7037_s5] ss:$0 sm:$0xff] }
 0x293   : > { %3229 = vrot.lane.b32.xlu1 %v3196_v51, %s5179_s10  ;;  %3231 = vrot.lane.b32.xlu0 %v3197_v34, %s5179_s10 }
 0x297   : > { %3233 = vrot.lane.b32.xlu1 %v3198_v13, %s5179_s10  ;;  %3235 = vrot.lane.b32.xlu0 %v3199_v31, %s5179_s10 }
 0x29b   : > { %3237 = vrot.lane.b32.xlu1 %v3200_v17, %s5179_s10  ;;  %3239 = vrot.lane.b32.xlu0 %v3201_v57, %s5179_s10 }
 0x29f   : > { %3241 = vrot.lane.b32.xlu1 %v3202_v18, %s5179_s10  ;;  %3243 = vrot.lane.b32.xlu0 %v3203_v53, %s5179_s10 }
 0x2a3   : > { %3245 = vrot.lane.b32.xlu1 %v3204_v45, %s5179_s10  ;;  %3247 = vrot.lane.b32.xlu0 %v3205_v52, %s5179_s10 }
 0x2a7   : > { %3249 = vrot.lane.b32.xlu1 %v3206_v54, %s5179_s10  ;;  %3251 = vrot.lane.b32.xlu0 %v3207_v46, %s5179_s10 }
 0x2ab   : > { %3253 = vrot.lane.b32.xlu1 %v3208_v12, %s5179_s10  ;;  %3255 = vrot.lane.b32.xlu0 %v3209_v44, %s5179_s10 }
 0x2af   : > { %3257 = vrot.lane.b32.xlu1 %v3210_v7, %s5179_s10 }
 0x2d2   : > { %v4733_v43 = vpop.f32.mrb[16].mxu1 }
 0x2d3   : > { %v3020_v10 = vpop.f32.mrb[17].mxu1  ;;  %v6593_v21 = vadd.f32 %v4733_v43, %v6587_v2 }
 0x2d4   : > { %v4734_v15 = vpop.f32.mrb[18].mxu1  ;;  %v6599_v47 = vadd.f32 %v6587_v2, %v3020_v10 }
 0x2d5   : > { %v3023_v62 = vpop.f32.mrb[19].mxu1 }
 0x2d6   : > { %v3083_v43 = vmin.f32 %v6599_v47, 4.1351666 }
 0x2da   : > { %v4737_v55 = vpop.f32.mrb[20].mxu1 }
 0x2db   : > { %v6529_v41 = vpop.f32.mrb[21].mxu1 }
 0x2dc   : > { %v6531_v33 = vpop.f32.mrb[22].mxu1 }
 0x2dd   : > { %v6533_v6 = vpop.f32.mrb[23].mxu1 }
 0x2e1   : > { %v6535_v0 = vpop.permute.xlu0 %3435 }
 0x2e2   : > { %v6537_v23 = vpop.f32.mrb[24].mxu1 }
 0x2e3   : > { %v6539_v37 = vpop.f32.mrb[25].mxu1 }
 0x2e4   : > { %v6541_v30 = vpop.f32.mrb[26].mxu1 }
 0x2e5   : > { %v6543_v26 = vpop.f32.mrb[27].mxu1  ;;  %v6545_v56 = vpop.permute.xlu1 %3437 }
 0x2e6   : > { %v6547_v8 = vpop.permute.xlu0 %3439 }
 0x2e9   : > { %v6549_v11 = vpop.permute.xlu1 %3441 }
 0x2ea   : > { %v6551_v32 = vpop.permute.xlu0 %3443  ;;  %v6553_v51 = vpop.f32.mrb[28].mxu1 }
 0x2eb   : > { %v6555_v34 = vpop.f32.mrb[29].mxu1 }
 0x2ec   : > { %v6557_v13 = vpop.f32.mrb[30].mxu1 }
 0x2ed   : > { %v6559_v31 = vpop.f32.mrb[31].mxu1  ;;  %v6561_v17 = vpop.permute.xlu1 %3445 }
 0x2ee   : > { %v6563_v57 = vpop.permute.xlu0 %3447 }
 0x2f1   : > { %v6565_v18 = vpop.permute.xlu1 %3449 }
 0x2f2   : > { %v6567_v53 = vpop.permute.xlu0 %3451 }
 0x2f5   : > { %v6569_v45 = vpop.permute.xlu1 %3453 }
 0x2f6   : > { %v6571_v52 = vpop.permute.xlu0 %3455 }
 0x2f9   : > { %v6573_v54 = vpop.permute.xlu1 %3457 }
 0x2fa   : > { %v6575_v46 = vpop.permute.xlu0 %3459 }
 0x2fd   : > { %v6577_v12 = vpop.permute.xlu1 %3461 }
 0x2fe   : > { %v6579_v44 = vpop.permute.xlu0 %3463 }
 0x301   : > { %v6581_v7 = vpop.permute.xlu1 %3465 }
 0x302   : > { %v3228_v27 = vpop.permute.xlu0 %3227 }
 0x303   : > { %v3275_v38 = vadd.f32 %v3228_v27, %v6295_v4  ;;  %v3085_v27 = vmin.f32 %v6593_v21, 4.1351666 }
 0x305   : > { %3323 = vrot.lane.b32.xlu0 %v3275_v38, %s5178_s30  ;;  %v3230_v39 = vpop.permute.xlu1 %3229 }
 0x306   : > { %v3276_v5 = vadd.f32 %v3230_v39, %v6317_v42  ;;  %v3232_v36 = vpop.permute.xlu0 %3231  ;;  %v6603_v42 = vadd.f32 %v4734_v15, %v6587_v2  ;;  %v3391_v39 = vmul.f32 1.442695, %v3085_v27  ;;  %v3387_v27 = vmul.f32 1.442695, %v3083_v43 }
 0x307   : > { %v3277_v25 = vadd.f32 %v3232_v36, %v6305_v49  ;;  %v6606_v49 = vadd.f32 %v6587_v2, %v3023_v62 }
 0x308   : > { %3325 = vrot.lane.b32.xlu1 %v3276_v5, %s5178_s30  ;;  %4985 = vpow2.f32 %v3391_v39  ;;  %v6634_v39 = vadd.f32 %v6587_v2, %v6533_v6 }
 0x309   : > { %3327 = vrot.lane.b32.xlu0 %v3277_v25, %s5178_s30  ;;  %v3234_v4 = vpop.permute.xlu1 %3233  ;;  %v3086_v25 = vmin.f32 %v6603_v42, 4.1351666  ;;  %v3084_v15 = vmin.f32 %v6606_v49, 4.1351666 }
 0x30a   : > { %v3278_v38 = vadd.f32 %v3234_v4, %v6326_v14  ;;  %v3236_v40 = vpop.permute.xlu0 %3235  ;;  %v6617_v4 = vadd.f32 %v4737_v55, %v6587_v2  ;;  %v3088_v6 = vmin.f32 %v6634_v39, 4.1351666 }
 0x30b   : > { %v3279_v36 = vadd.f32 %v3236_v40, %v6332_v59  ;;  %v3393_v59 = vmul.f32 1.442695, %v3086_v25  ;;  %v6630_v25 = vadd.f32 %v6587_v2, %v6529_v41 }
 0x30c   : > { %3329 = vrot.lane.b32.xlu1 %v3278_v38, %s5178_s30  ;;  %v3089_v38 = vmin.f32 %v6617_v4, 4.1351666 }
 0x30d   : > { %3331 = vrot.lane.b32.xlu0 %v3279_v36, %s5178_s30  ;;  %v3238_v5 = vpop.permute.xlu1 %3237  ;;  %4987 = vpow2.f32 %v3393_v59 }
 0x30e   : > { %v3280_v14 = vadd.f32 %v3238_v5, %v6338_v50  ;;  %v3240_v10 = vpop.permute.xlu0 %3239  ;;  %v3389_v5 = vmul.f32 1.442695, %v3084_v15  ;;  %4989 = vpow2.f32 %v3387_v27  ;;  %v6645_v15 = vadd.f32 %v6537_v23, %v6587_v2 }
 0x30f   : > { %v3281_v62 = vadd.f32 %v3240_v10, %v6347_v35  ;;  %v6625_v35 = vadd.f32 %v6531_v33, %v6587_v2  ;;  %v3399_v33 = vmul.f32 1.442695, %v3089_v38  ;;  %v6657_v23 = vadd.f32 %v6541_v30, %v6587_v2 }
 0x310   : > { %3333 = vrot.lane.b32.xlu1 %v3280_v14, %s5178_s30  ;;  %4991 = vpow2.f32 %v3389_v5  ;;  %v3397_v5 = vmul.f32 1.442695, %v3088_v6 }
 0x311   : > { %3335 = vrot.lane.b32.xlu0 %v3281_v62, %s5178_s30  ;;  %v3242_v40 = vpop.permute.xlu1 %3241  ;;  %4993 = vpow2.f32 %v3399_v33 }
 0x312   : > { %v3282_v50 = vadd.f32 %v3242_v40, %v6356_v24  ;;  %v3244_v36 = vpop.permute.xlu0 %3243  ;;  %v3090_v24 = vmin.f32 %v6625_v35, 4.1351666 }
 0x313   : > { %v3283_v55 = vadd.f32 %v3244_v36, %v6362_v58  ;;  %v3087_v58 = vmin.f32 %v6630_v25, 4.1351666  ;;  %v4986_v36 = vpop.eup %4985 }
 0x314   : > { %3337 = vrot.lane.b32.xlu1 %v3282_v50, %s5178_s30  ;;  %v3401_v62 = vmul.f32 1.442695, %v3090_v24  ;;  %v6665_v24 = vadd.f32 %v6587_v2, %v6543_v26 }
 0x315   : > { %3339 = vrot.lane.b32.xlu0 %v3283_v55, %s5178_s30  ;;  %v3246_v43 = vpop.permute.xlu1 %3245  ;;  %v3395_v40 = vmul.f32 1.442695, %v3087_v58  ;;  %v3485_v58 = vmul.f32 %v4986_v36, %v6547_v8  ;;  %v6689_v36 = vadd.f32 %v6587_v2, %v6555_v34 }
 0x316   : > { %v3284_v14 = vadd.f32 %v3246_v43, %v6368_v16  ;;  %v3248_v41 = vpop.permute.xlu0 %3247  ;;  %v3093_v16 = vmin.f32 %v6645_v15, 4.1351666  ;;  %4995 = vpow2.f32 %v3401_v62 }
 0x317   : > { %v3285_v10 = vadd.f32 %v3248_v41, %v6377_v20  ;;  %v6653_v20 = vadd.f32 %v6587_v2, %v6539_v37  ;;  %4997 = vpow2.f32 %v3395_v40  ;;  %v4988_v33 = vpop.eup %4987 }
 0x318   : > { %3341 = vrot.lane.b32.xlu1 %v3284_v14, %s5178_s30  ;;  %v3407_v30 = vmul.f32 1.442695, %v3093_v16  ;;  %v4990_v41 = vpop.eup %4989  ;;  %4999 = vpow2.f32 %v3397_v5  ;;  %v3486_v8 = vmul.f32 %v4988_v33, %v6549_v11  ;;  %v3501_v16 = vmul.f32 0.5, %v3485_v58 }
 0x319   : > { %3343 = vrot.lane.b32.xlu0 %v3285_v10, %s5178_s30  ;;  %v3250_v59 = vpop.permute.xlu1 %3249  ;;  %v3091_v55 = vmin.f32 %v6653_v20, 4.1351666  ;;  %v6673_v10 = vadd.f32 %v6553_v51, %v6587_v2  ;;  %v3483_v51 = vmul.f32 %v4990_v41, %v6535_v0  ;;  %v6695_v0 = vadd.f32 %v6587_v2, %v6559_v31 }
 0x31a   : > { %v3286_v27 = vadd.f32 %v3250_v59, %v6384_v29  ;;  %v3252_v38 = vpop.permute.xlu0 %3251  ;;  %v3094_v29 = vmin.f32 %v6657_v23, 4.1351666  ;;  %v4992_v26 = vpop.eup %4991  ;;  %v3092_v59 = vmin.f32 %v6665_v24, 4.1351666  ;;  %5001 = vpow2.f32 %v3407_v30 }
 0x31b   : > { %v3287_v50 = vadd.f32 %v3252_v38, %v6390_v61  ;;  %v3403_v6 = vmul.f32 1.442695, %v3091_v55  ;;  %v4994_v38 = vpop.eup %4993  ;;  %v3499_v34 = vmul.f32 0.5, %v3483_v51 }
 0x31c   : > { %3345 = vrot.lane.b32.xlu1 %v3286_v27, %s5178_s30  ;;  %v3409_v62 = vmul.f32 1.442695, %v3094_v29  ;;  %v6684_v27 = vadd.f32 %v6557_v13, %v6587_v2  ;;  %v3405_v11 = vmul.f32 1.442695, %v3092_v59  ;;  %v3502_v13 = vmul.f32 0.5, %v3486_v8 }
 0x31d   : > { %3347 = vrot.lane.b32.xlu0 %v3287_v50, %s5178_s30  ;;  %v3254_v37 = vpop.permute.xlu1 %3253  ;;  %v3484_v50 = vmul.f32 %v4992_v26, %v6545_v56  ;;  %v3095_v56 = vmin.f32 %v6689_v36, 4.1351666  ;;  %v3489_v29 = vmul.f32 %v4994_v38, %v6563_v57 }
 0x31e   : > { %v3288_v61 = vadd.f32 %v3254_v37, %v6396_v63  ;;  %v3256_v43 = vpop.permute.xlu0 %3255  ;;  %5003 = vpow2.f32 %v3409_v62 }
 0x31f   : > { %v3289_v14 = vadd.f32 %v3256_v43, %v6405_v1  ;;  %v3097_v1 = vmin.f32 %v6673_v10, 4.1351666  ;;  %5005 = vpow2.f32 %v3403_v6  ;;  %v3500_v2 = vmul.f32 0.5, %v3484_v50 }
 0x320   : > { %3349 = vrot.lane.b32.xlu1 %v3288_v61, %s5178_s30  ;;  %v4996_v55 = vpop.eup %4995  ;;  %5007 = vpow2.f32 %v3405_v11  ;;  %v3096_v61 = vmin.f32 %v6695_v0, 4.1351666  ;;  %v3411_v31 = vmul.f32 1.442695, %v3095_v56 }
 0x321   : > { %3351 = vrot.lane.b32.xlu0 %v3289_v14, %s5178_s30  ;;  %v3258_v63 = vpop.permute.xlu1 %3257  ;;  %v3415_v5 = vmul.f32 1.442695, %v3097_v1  ;;  %v4998_v37 = vpop.eup %4997  ;;  %v3490_v43 = vmul.f32 %v4996_v55, %v6565_v18  ;;  %v3505_v14 = vmul.f32 0.5, %v3489_v29 }
 0x322   : > { %v3290_v40 = vadd.f32 %v3258_v63, %v6410_v19  ;;  %v3098_v19 = vmin.f32 %v6684_v27, 4.1351666  ;;  %v5000_v33 = vpop.eup %4999  ;;  %v3487_v58 = vmul.f32 %v4998_v37, %v6551_v32  ;;  %v3413_v57 = vmul.f32 1.442695, %v3096_v61 }
 0x323   : > { %5009 = vpow2.f32 %v3415_v5  ;;  %v3488_v26 = vmul.f32 %v5000_v33, %v6561_v17  ;;  %v3506_v6 = vmul.f32 0.5, %v3490_v43 }
 0x324   : > { %3353 = vrot.lane.b32.xlu1 %v3290_v40, %s5178_s30  ;;  %v3417_v30 = vmul.f32 1.442695, %v3098_v19  ;;  %v5002_v41 = vpop.eup %5001  ;;  %v3503_v59 = vmul.f32 0.5, %v3487_v58 }
 0x325   : > { %3535 = vrot.lane.b32.xlu0 %v3501_v16, %s5179_s10  ;;  %v3493_v63 = vmul.f32 %v5002_v41, %v6571_v52  ;;  %v3504_v32 = vmul.f32 0.5, %v3488_v26  ;;  %v3293_v26 = vmul.f32 %v6423_v3, %v6593_v21 }
 0x326   : > { %5011 = vpow2.f32 %v3417_v30 }
 0x327   : > { %5013 = vpow2.f32 %v3411_v31  ;;  %v3509_v51 = vmul.f32 0.5, %v3493_v63 }
 0x328   : > { %3537 = vrot.lane.b32.xlu1 %v3502_v13, %s5179_s10  ;;  %v5004_v62 = vpop.eup %5003  ;;  %5015 = vpow2.f32 %v3413_v57 }
 0x329   : > { %3531 = vrot.lane.b32.xlu0 %v3499_v34, %s5179_s10  ;;  %v5006_v18 = vpop.eup %5005  ;;  %v3494_v8 = vmul.f32 %v5004_v62, %v6573_v54 }
 0x32a   : > { %v5008_v1 = vpop.eup %5007  ;;  %v3491_v40 = vmul.f32 %v5006_v18, %v6567_v53  ;;  %v3291_v18 = vmul.f32 %v6418_v9, %v6599_v47 }
 0x32b   : > { %v3492_v17 = vmul.f32 %v5008_v1, %v6569_v45  ;;  %v3510_v52 = vmul.f32 0.5, %v3494_v8 }
 0x32c   : > { %3533 = vrot.lane.b32.xlu1 %v3500_v2, %s5179_s10  ;;  %v3507_v50 = vmul.f32 0.5, %v3491_v40 }
 0x32d   : > { %3543 = vrot.lane.b32.xlu0 %v3505_v14, %s5179_s10  ;;  %v5010_v16 = vpop.eup %5009  ;;  %v3508_v54 = vmul.f32 0.5, %v3492_v17 }
 0x32e   : > { %v3497_v11 = vmul.f32 %v5010_v16, %v6579_v44 }
 0x330   : > { %3545 = vrot.lane.b32.xlu1 %v3506_v6, %s5179_s10  ;;  %v5012_v38 = vpop.eup %5011  ;;  %v3513_v56 = vmul.f32 0.5, %v3497_v11 }
 0x331   : > { %3539 = vrot.lane.b32.xlu0 %v3503_v59, %s5179_s10  ;;  %v5014_v19 = vpop.eup %5013  ;;  %v3498_v53 = vmul.f32 %v5012_v38, %v6581_v7  ;;  %v3294_v59 = vmul.f32 %v6433_v48, %v6603_v42 }
 0x332   : > { %v5016_v13 = vpop.eup %5015  ;;  %v3495_v5 = vmul.f32 %v5014_v19, %v6575_v46  ;;  %v3295_v19 = vmul.f32 %v6436_v28, %v6630_v25 }
 0x333   : > { %v3496_v45 = vmul.f32 %v5016_v13, %v6577_v12  ;;  %v3514_v55 = vmul.f32 0.5, %v3498_v53 }
 0x334   : > { %3541 = vrot.lane.b32.xlu1 %v3504_v32, %s5179_s10  ;;  %v3511_v44 = vmul.f32 0.5, %v3495_v5 }
 0x335   : > { %3551 = vrot.lane.b32.xlu0 %v3509_v51, %s5179_s10  ;;  %v3512_v34 = vmul.f32 0.5, %v3496_v45  ;;  %v3292_v51 = vmul.f32 %v6426_v60, %v6606_v49  ;;  %v7101_v60 = vld [vmem:[#allocation16_spill] sm:$0xff] }
 0x336   : > { %v3298_v5 = vmul.f32 %v7101_v60, %v6625_v35 }
 0x338   : > { %3553 = vrot.lane.b32.xlu1 %v3510_v52, %s5179_s10  ;;  %v3297_v52 = vmul.f32 %v6446_v22, %v6617_v4 }
 0x339   : > { %3547 = vrot.lane.b32.xlu0 %v3507_v50, %s5179_s10 }
 0x33c   : > { %3549 = vrot.lane.b32.xlu1 %v3508_v54, %s5179_s10 }
 0x33d   : > { %3559 = vrot.lane.b32.xlu0 %v3513_v56, %s5179_s10 }
 0x340   : > { %3561 = vrot.lane.b32.xlu1 %v3514_v55, %s5179_s10 }
 0x341   : > { %3555 = vrot.lane.b32.xlu0 %v3511_v44, %s5179_s10 }
 0x344   : > { %3557 = vrot.lane.b32.xlu1 %v3512_v34, %s5179_s10 }
 0x345   : > { %3807 = vrot.lane.b32.xlu0 %v6599_v47, %s5180_s24 }
 0x348   : > { %3809 = vrot.lane.b32.xlu1 %v6606_v49, %s5180_s24 }
 0x349   : > { %3811 = vrot.lane.b32.xlu0 %v6593_v21, %s5180_s24 }
 0x34c   : > { %3813 = vrot.lane.b32.xlu1 %v6603_v42, %s5180_s24 }
 0x34d   : > { %3815 = vrot.lane.b32.xlu0 %v6630_v25, %s5180_s24 }
 0x350   : > { %3817 = vrot.lane.b32.xlu1 %v6634_v39, %s5180_s24 }
 0x351   : > { %3819 = vrot.lane.b32.xlu0 %v6617_v4, %s5180_s24 }
 0x354   : > { %3821 = vrot.lane.b32.xlu1 %v6625_v35, %s5180_s24 }
 0x355   : > { %3823 = vrot.lane.b32.xlu0 %v6653_v20, %s5180_s24 }
 0x358   : > { %3825 = vrot.lane.b32.xlu1 %v6665_v24, %s5180_s24 }
 0x359   : > { %3827 = vrot.lane.b32.xlu0 %v6645_v15, %s5180_s24 }
 0x35c   : > { %3829 = vrot.lane.b32.xlu1 %v6657_v23, %s5180_s24 }
 0x35d   : > { %3831 = vrot.lane.b32.xlu0 %v6689_v36, %s5180_s24 }
 0x360   : > { %3833 = vrot.lane.b32.xlu1 %v6695_v0, %s5180_s24 }
 0x361   : > { %3835 = vrot.lane.b32.xlu0 %v6673_v10, %s5180_s24 }
 0x364   : > { %3837 = vrot.lane.b32.xlu1 %v6684_v27, %s5180_s24 }
 0x377   : > { %v3324_v46 = vpop.permute.xlu0 %3323 }
 0x378   : > { %v3371_v1 = vadd.f32 %v3324_v46, %v3291_v18 }
 0x37a   : > { %v3326_v12 = vpop.permute.xlu1 %3325 }
 0x37b   : > { %v3328_v7 = vpop.permute.xlu0 %3327  ;;  %v3372_v9 = vadd.f32 %v3326_v12, %v3292_v51 }
 0x37c   : > { %v3373_v6 = vadd.f32 %v3328_v7, %v3293_v26 }
 0x37e   : > { %v3330_v29 = vpop.permute.xlu1 %3329 }
 0x37f   : > { %v3332_v37 = vpop.permute.xlu0 %3331  ;;  %v3374_v8 = vadd.f32 %v3330_v29, %v3294_v59  ;;  %v7103_v59 = vld [vmem:[#allocation19_spill] sm:$0xff] }
 0x380   : > { %v3375_v28 = vadd.f32 %v3332_v37, %v3295_v19  ;;  %v7105_v19 = vld [vmem:[#allocation20_spill] sm:$0xff] }
 0x382   : > { %v3334_v30 = vpop.permute.xlu1 %3333 }
 0x383   : > { %v3336_v61 = vpop.permute.xlu0 %3335 }
 0x384   : > { %v3377_v54 = vadd.f32 %v3336_v61, %v3297_v52  ;;  %v7102_v61 = vld [vmem:[#allocation17_spill] sm:$0xff] }
 0x385   : > { %v3296_v26 = vmul.f32 %v7102_v61, %v6634_v39 }
 0x386   : > { %v3338_v2 = vpop.permute.xlu1 %3337 }
 0x387   : > { %v6743_v31 = vpop.permute.xlu0 %3339  ;;  %v3378_v12 = vadd.f32 %v3338_v2, %v3298_v5  ;;  %v3376_v37 = vadd.f32 %v3334_v30, %v3296_v26 }
 0x38a   : > { %v6745_v43 = vpop.permute.xlu1 %3341 }
 0x38b   : > { %v3344_v33 = vpop.permute.xlu0 %3343 }
 0x38e   : > { %v6747_v58 = vpop.permute.xlu1 %3345 }
 0x38f   : > { %v6749_v14 = vpop.permute.xlu0 %3347 }
 0x392   : > { %v6751_v41 = vpop.permute.xlu1 %3349 }
 0x393   : > { %v6753_v57 = vpop.permute.xlu0 %3351 }
 0x396   : > { %v6757_v62 = vpop.permute.xlu1 %3353 }
 0x397   : > { %v3536_v63 = vpop.permute.xlu0 %3535 }
 0x398   : > { %v6763_v32 = vadd.f32 %v3536_v63, %v3373_v6  ;;  %v3581_v48 = vsub.f32 %v3373_v6, %v3536_v63  ;;  %v3301_v63 = vmul.f32 %v7103_v59, %v6645_v15 }
 0x39a   : > { %v3538_v40 = vpop.permute.xlu1 %3537  ;;  %v3597_v44 = vmax.f32 %v3581_v48, 0.0  ;;  %v7104_v48 = vld [vmem:[#allocation15_spill] sm:$0xff] }
 0x39b   : > { %v3582_v16 = vsub.f32 %v3374_v8, %v3538_v40  ;;  %v6767_v3 = vadd.f32 %v3538_v40, %v3374_v8  ;;  %v3532_v17 = vpop.permute.xlu0 %3531 }
 0x39c   : > { %v3579_v38 = vsub.f32 %v3371_v1, %v3532_v17  ;;  %v6771_v50 = vadd.f32 %v3532_v17, %v3371_v1  ;;  %v3613_v51 = vmin.f32 %v3597_v44, 64.0 }
 0x39d   : > { %v3598_v11 = vmax.f32 %v3582_v16, 0.0 }
 0x39e   : > { %v3595_v53 = vmax.f32 %v3579_v38, 0.0  ;;  %v3534_v13 = vpop.permute.xlu1 %3533  ;;  %v3299_v38 = vmul.f32 %v7104_v48, %v6653_v20 }
 0x39f   : > { %v3614_v56 = vmin.f32 %v3598_v11, 64.0  ;;  %v3580_v45 = vsub.f32 %v3372_v9, %v3534_v13  ;;  %v6777_v55 = vadd.f32 %v3534_v13, %v3372_v9  ;;  %v3544_v22 = vpop.permute.xlu0 %3543  ;;  %v3381_v9 = vadd.f32 %v3344_v33, %v3301_v63 }
 0x3a0   : > { %v3611_v34 = vmin.f32 %v3595_v53, 64.0  ;;  %v3585_v46 = vsub.f32 %v3377_v54, %v3544_v22  ;;  %v6779_v7 = vadd.f32 %v3544_v22, %v3377_v54  ;;  %v3302_v54 = vmul.f32 %v7105_v19, %v6657_v23  ;;  %v7109_v19 = vld [vmem:[#allocation21_spill] sm:$0xff] }
 0x3a1   : > { %v3596_v29 = vmax.f32 %v3580_v45, 0.0  ;;  %3697 = vrot.lane.b32.xlu1 %v3614_v56, %s5179_s10  ;;  %v3379_v33 = vadd.f32 %v6743_v31, %v3299_v38 }
 0x3a2   : > { %3691 = vrot.lane.b32.xlu0 %v3611_v34, %s5179_s10  ;;  %v3546_v6 = vpop.permute.xlu1 %3545  ;;  %v3601_v2 = vmax.f32 %v3585_v46, 0.0  ;;  %v3382_v44 = vadd.f32 %v6747_v58, %v3302_v54  ;;  %v7106_v46 = vld [vmem:[#allocation18_spill] sm:$0xff]  ;;  %v3303_v54 = vmul.f32 %v7109_v19, %v6689_v36 }
 0x3a3   : > { %v3612_v18 = vmin.f32 %v3596_v29, 64.0  ;;  %v3586_v8 = vsub.f32 %v3378_v12, %v3546_v6  ;;  %v6787_v1 = vadd.f32 %v3546_v6, %v3378_v12  ;;  %v3540_v40 = vpop.permute.xlu0 %3539  ;;  %v3300_v12 = vmul.f32 %v7106_v46, %v6665_v24 }
 0x3a4   : > { %v3583_v16 = vsub.f32 %v3375_v28, %v3540_v40  ;;  %v6789_v17 = vadd.f32 %v3540_v40, %v3375_v28  ;;  %v3617_v56 = vmin.f32 %v3601_v2, 64.0  ;;  %v7107_v28 = vld [vmem:[#allocation23_spill] sm:$0xff] }
 0x3a5   : > { %v3602_v52 = vmax.f32 %v3586_v8, 0.0  ;;  %3693 = vrot.lane.b32.xlu1 %v3612_v18, %s5179_s10  ;;  %v3305_v61 = vmul.f32 %v7107_v28, %v6673_v10  ;;  %v3380_v31 = vadd.f32 %v6745_v43, %v3300_v12 }
 0x3a6   : > { %3695 = vrot.lane.b32.xlu0 %v3613_v51, %s5179_s10  ;;  %v3542_v11 = vpop.permute.xlu1 %3541  ;;  %v3599_v30 = vmax.f32 %v3583_v16, 0.0 }
 0x3a7   : > { %v3618_v53 = vmin.f32 %v3602_v52, 64.0  ;;  %v3584_v13 = vsub.f32 %v3376_v37, %v3542_v11  ;;  %v6797_v60 = vadd.f32 %v3542_v11, %v3376_v37  ;;  %v3552_v5 = vpop.permute.xlu0 %3551  ;;  %v3385_v2 = vadd.f32 %v6753_v57, %v3305_v61  ;;  %v7108_v37 = vld [vmem:[#allocation24_spill] sm:$0xff] }
 0x3a8   : > { %v3589_v45 = vsub.f32 %v3381_v9, %v3552_v5  ;;  %v6799_v22 = vadd.f32 %v3552_v5, %v3381_v9  ;;  %v3615_v58 = vmin.f32 %v3599_v30, 64.0  ;;  %v3306_v52 = vmul.f32 %v7108_v37, %v6684_v27 }
 0x3a9   : > { %v3600_v34 = vmax.f32 %v3584_v13, 0.0  ;;  %3705 = vrot.lane.b32.xlu1 %v3618_v53, %s5179_s10 }
 0x3aa   : > { %3703 = vrot.lane.b32.xlu0 %v3617_v56, %s5179_s10  ;;  %v3554_v29 = vpop.permute.xlu1 %3553  ;;  %v3605_v18 = vmax.f32 %v3589_v45, 0.0  ;;  %v3386_v57 = vadd.f32 %v6757_v62, %v3306_v52  ;;  %v3383_v56 = vadd.f32 %v6749_v14, %v3303_v54  ;;  %v7110_v45 = vld [vmem:[#allocation22_spill] sm:$0xff] }
 0x3ab   : > { %v3616_v26 = vmin.f32 %v3600_v34, 64.0  ;;  %v3590_v6 = vsub.f32 %v3382_v44, %v3554_v29  ;;  %v6809_v59 = vadd.f32 %v3554_v29, %v3382_v44  ;;  %v3548_v63 = vpop.permute.xlu0 %3547  ;;  %v3304_v44 = vmul.f32 %v7110_v45, %v6695_v0 }
 0x3ac   : > { %v3587_v8 = vsub.f32 %v3379_v33, %v3548_v63  ;;  %v6811_v40 = vadd.f32 %v3548_v63, %v3379_v33  ;;  %v3621_v43 = vmin.f32 %v3605_v18, 64.0 }
 0x3ad   : > { %v3606_v51 = vmax.f32 %v3590_v6, 0.0  ;;  %3701 = vrot.lane.b32.xlu1 %v3616_v26, %s5179_s10  ;;  %v3384_v61 = vadd.f32 %v6751_v41, %v3304_v44 }
 0x3ae   : > { %3699 = vrot.lane.b32.xlu0 %v3615_v58, %s5179_s10  ;;  %v3550_v16 = vpop.permute.xlu1 %3549  ;;  %v3603_v53 = vmax.f32 %v3587_v8, 0.0 }
 0x3af   : > { %v3622_v48 = vmin.f32 %v3606_v51, 64.0  ;;  %v3588_v38 = vsub.f32 %v3380_v31, %v3550_v16  ;;  %v6819_v9 = vadd.f32 %v3550_v16, %v3380_v31  ;;  %v3560_v11 = vpop.permute.xlu0 %3559 }
 0x3b0   : > { %v6823_v13 = vadd.f32 %v3560_v11, %v3385_v2  ;;  %v3619_v12 = vmin.f32 %v3603_v53, 64.0  ;;  %v3593_v29 = vsub.f32 %v3385_v2, %v3560_v11 }
 0x3b1   : > { %v3604_v5 = vmax.f32 %v3588_v38, 0.0  ;;  %3713 = vrot.lane.b32.xlu1 %v3622_v48, %s5179_s10 }
 0x3b2   : > { %3711 = vrot.lane.b32.xlu0 %v3621_v43, %s5179_s10  ;;  %v3562_v30 = vpop.permute.xlu1 %3561  ;;  %v3609_v41 = vmax.f32 %v3593_v29, 0.0 }
 0x3b3   : > { %v3620_v34 = vmin.f32 %v3604_v5, 64.0  ;;  %v6831_v33 = vadd.f32 %v3562_v30, %v3386_v57  ;;  %v3556_v46 = vpop.permute.xlu0 %3555  ;;  %v3594_v6 = vsub.f32 %v3386_v57, %v3562_v30 }
 0x3b4   : > { %v3591_v62 = vsub.f32 %v3383_v56, %v3556_v46  ;;  %v6833_v28 = vadd.f32 %v3556_v46, %v3383_v56 }
 0x3b5   : > { %3709 = vrot.lane.b32.xlu1 %v3620_v34, %s5179_s10 }
 0x3b6   : > { %v3607_v14 = vmax.f32 %v3591_v62, 0.0  ;;  %3707 = vrot.lane.b32.xlu0 %v3619_v12, %s5179_s10  ;;  %v3558_v26 = vpop.permute.xlu1 %3557 }
 0x3b7   : > { %v3592_v63 = vsub.f32 %v3384_v61, %v3558_v26  ;;  %v6839_v58 = vadd.f32 %v3558_v26, %v3384_v61  ;;  %v3808_v18 = vpop.permute.xlu0 %3807 }
 0x3b8   : > { %v3623_v8 = vmin.f32 %v3607_v14, 64.0  ;;  %v3855_v31 = vsub.f32 %v6599_v47, %v3808_v18 }
 0x3b9   : > { %v3608_v51 = vmax.f32 %v3592_v63, 0.0 }
 0x3ba   : > { %5094 = shalt.err (!%p5091_p10)
}
 0x3bb   : > { %s5095_s26 = scalar_lea.hbm %s6844_s15, 16  ;;  %s5099_s19 = scalar_lea.hbm %s7040_s8, 32 }
 0x3bc   : > { %p5096_p11 = scmp.ne.s32.totalorder %s6844_s15, %s5095_s26  ;;  %p5100_p0 = scmp.lt.u32.totalorder %s6844_s15, %s7040_s8 }
 0x3bd   : > { %p5101_p1 = scmp.lt.u32.totalorder %s5099_s19, %s5095_s26  ;;  %p5103_p4 = scmp.lt.u32.totalorder %s5095_s26, %s6844_s15 }
 0x3be   : > { %p5097_p12 = pnand %p5096_p11, %p5276_p3 }
 0x3bf   : > { %p5102_p2 = por %p5101_p1, %p5100_p0 }
 0x3c0   : > { %p5098_p13 = pneg %p5097_p12 }
 0x3c1   : > { %p5104_p5 = por %p5103_p4, %p5102_p2 }
 0x3c3   : > { %p5105_p6 = pnand %p5104_p5, %p5098_p13 }
 0x3c5   : > { %5108 = shalt.err (!%p5105_p6)
}
 0x3c6   : > { %4886 = dma.vmem_to_hbm [thread:$0]  (%p5276_p3), %s6848_s27, 16, %s6844_s15, %s3986_s16   ;;  %v3871_v47 = vmul.f32 1.442695, %v3855_v31  ;;  %3715 = vrot.lane.b32.xlu0 %v3623_v8, %s5179_s10  ;;  %v3810_v2 = vpop.permute.xlu1 %3809  ;;  %v3610_v16 = vmax.f32 %v3594_v6, 0.0  ;;  %v3624_v37 = vmin.f32 %v3608_v51, 64.0  ;;  %v3812_v48 = vpop.permute.xlu0 %3811  ;;  %v3625_v38 = vmin.f32 %v3609_v41, 64.0 }
 0x3c7   : > { %v3856_v52 = vsub.f32 %v6606_v49, %v3810_v2  ;;  %v3857_v11 = vsub.f32 %v6593_v21, %v3812_v48  ;;  %vm3739_vm10 = vcmask 23552   ;;  %vm3740_vm11 = vcmask 48128  }
 0x3c8   : > { %5017 = vpow2.f32 %v3871_v47  ;;  %3717 = vrot.lane.b32.xlu1 %v3624_v37, %s5179_s10  ;;  %v3626_v53 = vmin.f32 %v3610_v16, 64.0  ;;  %vm3757_vm12 = vcmask 72704   ;;  %vm3774_vm13 = vcmask 97280  }
 0x3c9   : > { %v3873_v19 = vmul.f32 1.442695, %v3856_v52  ;;  %v3875_v54 = vmul.f32 1.442695, %v3857_v11 }
 0x3ca   : > { %3719 = vrot.lane.b32.xlu0 %v3625_v38, %s5179_s10  ;;  %v3814_v43 = vpop.permute.xlu1 %3813  ;;  %v3816_v5 = vpop.permute.xlu0 %3815 }
 0x3cb   : > { %5019 = vpow2.f32 %v3873_v19  ;;  %v3858_v57 = vsub.f32 %v6603_v42, %v3814_v43  ;;  %v3859_v49 = vsub.f32 %v6630_v25, %v3816_v5 }
 0x3cc   : > { %5021 = vpow2.f32 %v3875_v54  ;;  %3721 = vrot.lane.b32.xlu1 %v3626_v53, %s5179_s10 }
 0x3cd   : > { %v3877_v56 = vmul.f32 1.442695, %v3858_v57  ;;  %v3879_v30 = vmul.f32 1.442695, %v3859_v49 }
 0x3ce   : > { %v3818_v21 = vpop.permute.xlu1 %3817  ;;  %v3820_v44 = vpop.permute.xlu0 %3819 }
 0x3cf   : > { %5023 = vpow2.f32 %v3877_v56  ;;  %v3860_v45 = vsub.f32 %v6634_v39, %v3818_v21  ;;  %v3861_v34 = vsub.f32 %v6617_v4, %v3820_v44 }
 0x3d0   : > { %5025 = vpow2.f32 %v3879_v30 }
 0x3d1   : > { %v3881_v46 = vmul.f32 1.442695, %v3860_v45  ;;  %v3883_v29 = vmul.f32 1.442695, %v3861_v34 }
 0x3d2   : > { %v5018_v12 = vpop.eup %5017  ;;  %v3822_v42 = vpop.permute.xlu1 %3821 }
 0x3d3   : > { %v3903_v62 = vadd.f32 1.0, %v5018_v12  ;;  %5027 = vpow2.f32 %v3881_v46  ;;  %v3862_v25 = vsub.f32 %v6625_v35, %v3822_v42  ;;  %v3824_v61 = vpop.permute.xlu0 %3823 }
 0x3d4   : > { %5029 = vpow2.f32 %v3883_v29  ;;  %v3863_v14 = vsub.f32 %v6653_v20, %v3824_v61 }
 0x3d5   : > { %v5020_v26 = vpop.eup %5019  ;;  %5031 = vrcp.f32 %v3903_v62  ;;  %v3885_v6 = vmul.f32 1.442695, %v3862_v25 }
 0x3d6   : > { %v5022_v39 = vpop.eup %5021  ;;  %v3904_v63 = vadd.f32 1.0, %v5020_v26  ;;  %v3887_v18 = vmul.f32 1.442695, %v3863_v14  ;;  %v3826_v41 = vpop.permute.xlu1 %3825 }
 0x3d7   : > { %v3905_v4 = vadd.f32 1.0, %v5022_v39  ;;  %5033 = vpow2.f32 %v3885_v6  ;;  %v3864_v8 = vsub.f32 %v6665_v24, %v3826_v41  ;;  %v3828_v31 = vpop.permute.xlu0 %3827 }
 0x3d8   : > { %5035 = vrcp.f32 %v3904_v63  ;;  %v3865_v51 = vsub.f32 %v6645_v15, %v3828_v31 }
 0x3d9   : > { %v5024_v35 = vpop.eup %5023  ;;  %5037 = vrcp.f32 %v3905_v4  ;;  %v3889_v47 = vmul.f32 1.442695, %v3864_v8 }
 0x3da   : > { %v5026_v2 = vpop.eup %5025  ;;  %v3906_v20 = vadd.f32 1.0, %v5024_v35  ;;  %5039 = vpow2.f32 %v3887_v18  ;;  %v3891_v16 = vmul.f32 1.442695, %v3865_v51  ;;  %v3830_v37 = vpop.permute.xlu1 %3829 }
 0x3db   : > { %v3907_v52 = vadd.f32 1.0, %v5026_v2  ;;  %5041 = vpow2.f32 %v3889_v47  ;;  %v3866_v48 = vsub.f32 %v6657_v23, %v3830_v37  ;;  %v3832_v38 = vpop.permute.xlu0 %3831 }
 0x3dc   : > { %5043 = vrcp.f32 %v3906_v20  ;;  %v3867_v24 = vsub.f32 %v6689_v36, %v3832_v38 }
 0x3dd   : > { %v5028_v11 = vpop.eup %5027  ;;  %5045 = vrcp.f32 %v3907_v52  ;;  %v3893_v15 = vmul.f32 1.442695, %v3866_v48 }
 0x3de   : > { %v5030_v19 = vpop.eup %5029  ;;  %v3908_v54 = vadd.f32 1.0, %v5028_v11  ;;  %5047 = vpow2.f32 %v3891_v16  ;;  %v3895_v43 = vmul.f32 1.442695, %v3867_v24  ;;  %v3834_v53 = vpop.permute.xlu1 %3833 }
 0x3df   : > { %v5032_v57 = vpop.eup %5031  ;;  %v3909_v5 = vadd.f32 1.0, %v5030_v19  ;;  %5049 = vpow2.f32 %v3893_v15  ;;  %v3868_v23 = vsub.f32 %v6695_v0, %v3834_v53  ;;  %v3836_v49 = vpop.permute.xlu0 %3835  ;;  %v3646_v15 = vmax.f32 %v6767_v3, 0.0 }
 0x3e0   : > { %3951 = vst.msk [vmem:[%s5316_s12] sm:$0xff] %vm3739_vm10, %v5032_v57  ;;  %5051 = vrcp.f32 %v3908_v54  ;;  %v3869_v36 = vsub.f32 %v6673_v10, %v3836_v49  ;;  %v3643_v19 = vmax.f32 %v6771_v50, 0.0  ;;  %v3645_v53 = vmax.f32 %v6763_v32, 0.0 }
 0x3e1   : > { %v5034_v56 = vpop.eup %5033  ;;  %5053 = vrcp.f32 %v3909_v5  ;;  %v3897_v30 = vmul.f32 1.442695, %v3868_v23  ;;  %v3662_v54 = vmin.f32 %v3646_v15, 64.0  ;;  %v3656_v15 = vmax.f32 %v6839_v58, 0.0 }
 0x3e2   : > { %v5036_v21 = vpop.eup %5035  ;;  %v3910_v45 = vadd.f32 1.0, %v5034_v56  ;;  %5055 = vpow2.f32 %v3895_v43  ;;  %v3899_v44 = vmul.f32 1.442695, %v3869_v36  ;;  %v3838_v34 = vpop.permute.xlu1 %3837  ;;  %v3644_v43 = vmax.f32 %v6777_v55, 0.0 }
 0x3e3   : > { %v5038_v46 = vpop.eup %5037  ;;  %3952 = vst.msk [vmem:[%s5316_s12 + $0x8] sm:$0xff] %vm3739_vm10, %v5036_v21  ;;  %5057 = vpow2.f32 %v3897_v30  ;;  %v3870_v0 = vsub.f32 %v6684_v27, %v3838_v34  ;;  %v3659_v57 = vmin.f32 %v3643_v19, 64.0  ;;  %v3650_v56 = vmax.f32 %v6787_v1, 0.0 }
 0x3e4   : > { %v5040_v12 = vpop.eup %5039  ;;  %3953 = vst.msk [vmem:[%s5316_s12 + $0x10] sm:$0xff] %vm3739_vm10, %v5038_v46  ;;  %5059 = vrcp.f32 %v3910_v45  ;;  %v3660_v50 = vmin.f32 %v3644_v43, 64.0  ;;  %v3661_v32 = vmin.f32 %v3645_v53, 64.0  ;;  %v3649_v30 = vmax.f32 %v6779_v7, 0.0 }
 0x3e5   : > { %v5042_v10 = vpop.eup %5041  ;;  %v3911_v29 = vadd.f32 1.0, %v5040_v12  ;;  %5061 = vpow2.f32 %v3899_v44  ;;  %v3901_v42 = vmul.f32 1.442695, %v3870_v0  ;;  %v3666_v1 = vmin.f32 %v3650_v56, 64.0 }
 0x3e6   : > { %v5044_v62 = vpop.eup %5043  ;;  %v3912_v25 = vadd.f32 1.0, %v5042_v10  ;;  %v3648_v0 = vmax.f32 %v6797_v60, 0.0  ;;  %v3665_v7 = vmin.f32 %v3649_v30, 64.0  ;;  %v3647_v10 = vmax.f32 %v6789_v17, 0.0 }
 0x3e7   : > { %v5046_v61 = vpop.eup %5045  ;;  %3954 = vst.msk [vmem:[%s5316_s12 + $0x18] sm:$0xff] %vm3739_vm10, %v5044_v62  ;;  %5063 = vrcp.f32 %v3911_v29 }
 0x3e8   : > { %v5048_v14 = vpop.eup %5047  ;;  %3955 = vst.msk [vmem:[%s5316_s12 + $0x20] sm:$0xff] %vm3739_vm10, %v5046_v61  ;;  %5065 = vrcp.f32 %v3912_v25  ;;  %v3664_v60 = vmin.f32 %v3648_v0, 64.0  ;;  %v3663_v17 = vmin.f32 %v3647_v10, 64.0 }
 0x3e9   : > { %v5050_v27 = vpop.eup %5049  ;;  %v3913_v26 = vadd.f32 1.0, %v5048_v14  ;;  %5067 = vpow2.f32 %v3901_v42  ;;  %v3654_v14 = vmax.f32 %v6809_v59, 0.0 }
 0x3ea   : > { %v5052_v6 = vpop.eup %5051  ;;  %v3914_v39 = vadd.f32 1.0, %v5050_v27 }
 0x3eb   : > { %v5054_v63 = vpop.eup %5053  ;;  %3956 = vst.msk [vmem:[%s5316_s12 + $0x28] sm:$0xff] %vm3739_vm10, %v5052_v6  ;;  %5069 = vrcp.f32 %v3913_v26  ;;  %v3653_v26 = vmax.f32 %v6799_v22, 0.0  ;;  %v3670_v59 = vmin.f32 %v3654_v14, 64.0 }
 0x3ec   : > { %v5056_v18 = vpop.eup %5055  ;;  %3957 = vst.msk [vmem:[%s5316_s12 + $0x30] sm:$0xff] %vm3739_vm10, %v5054_v63  ;;  %5071 = vrcp.f32 %v3914_v39 }
 0x3ed   : > { %v5058_v41 = vpop.eup %5057  ;;  %v3915_v4 = vadd.f32 1.0, %v5056_v18  ;;  %v3669_v22 = vmin.f32 %v3653_v26, 64.0 }
 0x3ee   : > { %v5060_v8 = vpop.eup %5059  ;;  %v3916_v31 = vadd.f32 1.0, %v5058_v41 }
 0x3ef   : > { %v5062_v51 = vpop.eup %5061  ;;  %3958 = vst.msk [vmem:[%s5316_s12 + $0x38] sm:$0xff] %vm3739_vm10, %v5060_v8  ;;  %5073 = vrcp.f32 %v3915_v4  ;;  %v3652_v4 = vmax.f32 %v6819_v9, 0.0 }
 0x3f0   : > { %5075 = vrcp.f32 %v3916_v31  ;;  %v3917_v35 = vadd.f32 1.0, %v5062_v51  ;;  %v3651_v31 = vmax.f32 %v6811_v40, 0.0  ;;  %v3655_v40 = vmax.f32 %v6833_v28, 0.0 }
 0x3f1   : > { %v5064_v47 = vpop.eup %5063  ;;  %v3668_v9 = vmin.f32 %v3652_v4, 64.0 }
 0x3f2   : > { %v5066_v2 = vpop.eup %5065  ;;  %3959 = vst.msk [vmem:[%s5316_s12 + $0x40] sm:$0xff] %vm3739_vm10, %v5064_v47  ;;  %5077 = vrcp.f32 %v3917_v35  ;;  %v3671_v28 = vmin.f32 %v3655_v40, 64.0 }
 0x3f3   : > { %v5068_v20 = vpop.eup %5067  ;;  %3960 = vst.msk [vmem:[%s5316_s12 + $0x48] sm:$0xff] %vm3739_vm10, %v5066_v2 }
 0x3f4   : > { %v3918_v16 = vadd.f32 1.0, %v5068_v20 }
 0x3f5   : > { %v5070_v37 = vpop.eup %5069 }
 0x3f6   : > { %v5072_v52 = vpop.eup %5071  ;;  %3961 = vst.msk [vmem:[%s5316_s12 + $0x50] sm:$0xff] %vm3739_vm10, %v5070_v37  ;;  %5079 = vrcp.f32 %v3918_v16  ;;  %v3667_v37 = vmin.f32 %v3651_v31, 64.0 }
 0x3f7   : > { %3962 = vst.msk [vmem:[%s5316_s12 + $0x58] sm:$0xff] %vm3739_vm10, %v5072_v52 }
 0x3f9   : > { %v5074_v48 = vpop.eup %5073 }
 0x3fa   : > { %v5076_v38 = vpop.eup %5075  ;;  %3963 = vst.msk [vmem:[%s5316_s12 + $0x60] sm:$0xff] %vm3739_vm10, %v5074_v48 }
 0x3fb   : > { %3964 = vst.msk [vmem:[%s5316_s12 + $0x68] sm:$0xff] %vm3739_vm10, %v5076_v38 }
 0x3fc   : > { %v5078_v24 = vpop.eup %5077 }
 0x3fd   : > { %3965 = vst.msk [vmem:[%s5316_s12 + $0x70] sm:$0xff] %vm3739_vm10, %v5078_v24 }
 0x400   : > { %v5080_v11 = vpop.eup %5079 }
 0x401   : > { %3966 = vst.msk [vmem:[%s5316_s12 + $0x78] sm:$0xff] %vm3739_vm10, %v5080_v11 }
 0x413   : > { %v3698_v5 = vpop.permute.xlu1 %3697 }
 0x414   : > { %v3744_v23 = vsel %vm3740_vm11, %v3698_v5, %v3662_v54  ;;  %v3692_v49 = vpop.permute.xlu0 %3691  ;;  %v3672_v5 = vmin.f32 %v3656_v15, 64.0 }
 0x415   : > { %v3761_v36 = vsel %vm3757_vm12, %v3744_v23, %v3662_v54  ;;  %v3741_v3 = vsel %vm3740_vm11, %v3692_v49, %v3659_v57  ;;  %v3657_v54 = vmax.f32 %v6823_v13, 0.0 }
 0x416   : > { %3778 = vst.msk [vmem:[%s5311_s18 + $0x18] sm:$0xff] %vm3774_vm13, %v3761_v36  ;;  %v3758_v55 = vsel %vm3757_vm12, %v3741_v3, %v3659_v57  ;;  %v3658_v57 = vmax.f32 %v6831_v33, 0.0 }
 0x417   : > { %3775 = vst.msk [vmem:[%s5311_s18] sm:$0xff] %vm3774_vm13, %v3758_v55  ;;  %v3694_v21 = vpop.permute.xlu1 %3693  ;;  %v3673_v23 = vmin.f32 %v3657_v54, 64.0 }
 0x418   : > { %v3742_v45 = vsel %vm3740_vm11, %v3694_v21, %v3660_v50  ;;  %v3696_v44 = vpop.permute.xlu0 %3695  ;;  %v3674_v56 = vmin.f32 %v3658_v57, 64.0 }
 0x419   : > { %v3759_v34 = vsel %vm3757_vm12, %v3742_v45, %v3660_v50  ;;  %v3743_v46 = vsel %vm3740_vm11, %v3696_v44, %v3661_v32 }
 0x41a   : > { %3776 = vst.msk [vmem:[%s5311_s18 + $0x8] sm:$0xff] %vm3774_vm13, %v3759_v34  ;;  %v3760_v12 = vsel %vm3757_vm12, %v3743_v46, %v3661_v32 }
 0x41b   : > { %3777 = vst.msk [vmem:[%s5311_s18 + $0x10] sm:$0xff] %vm3774_vm13, %v3760_v12  ;;  %v3706_v29 = vpop.permute.xlu1 %3705 }
 0x41c   : > { %v3748_v42 = vsel %vm3740_vm11, %v3706_v29, %v3666_v1  ;;  %v3704_v62 = vpop.permute.xlu0 %3703 }
 0x41d   : > { %v3765_v25 = vsel %vm3757_vm12, %v3748_v42, %v3666_v1  ;;  %v3747_v61 = vsel %vm3740_vm11, %v3704_v62, %v3665_v7 }
 0x41e   : > { %3782 = vst.msk [vmem:[%s5311_s18 + $0x38] sm:$0xff] %vm3774_vm13, %v3765_v25  ;;  %v3764_v27 = vsel %vm3757_vm12, %v3747_v61, %v3665_v7 }
 0x41f   : > { %3781 = vst.msk [vmem:[%s5311_s18 + $0x30] sm:$0xff] %vm3774_vm13, %v3764_v27  ;;  %v3702_v6 = vpop.permute.xlu1 %3701 }
 0x420   : > { %v3746_v39 = vsel %vm3740_vm11, %v3702_v6, %v3664_v60  ;;  %v3700_v63 = vpop.permute.xlu0 %3699 }
 0x421   : > { %v3763_v18 = vsel %vm3757_vm12, %v3746_v39, %v3664_v60  ;;  %v3745_v41 = vsel %vm3740_vm11, %v3700_v63, %v3663_v17 }
 0x422   : > { %3780 = vst.msk [vmem:[%s5311_s18 + $0x28] sm:$0xff] %vm3774_vm13, %v3763_v18  ;;  %v3762_v8 = vsel %vm3757_vm12, %v3745_v41, %v3663_v17 }
 0x423   : > { %3779 = vst.msk [vmem:[%s5311_s18 + $0x20] sm:$0xff] %vm3774_vm13, %v3762_v8  ;;  %v3714_v51 = vpop.permute.xlu1 %3713 }
 0x424   : > { %v3752_v35 = vsel %vm3740_vm11, %v3714_v51, %v3670_v59  ;;  %v3712_v47 = vpop.permute.xlu0 %3711 }
 0x425   : > { %v3769_v2 = vsel %vm3757_vm12, %v3752_v35, %v3670_v59  ;;  %v3751_v20 = vsel %vm3740_vm11, %v3712_v47, %v3669_v22 }
 0x426   : > { %3786 = vst.msk [vmem:[%s5311_s18 + $0x58] sm:$0xff] %vm3774_vm13, %v3769_v2  ;;  %v3768_v16 = vsel %vm3757_vm12, %v3751_v20, %v3669_v22 }
 0x427   : > { %3785 = vst.msk [vmem:[%s5311_s18 + $0x50] sm:$0xff] %vm3774_vm13, %v3768_v16  ;;  %v3710_v52 = vpop.permute.xlu1 %3709 }
 0x428   : > { %v3750_v48 = vsel %vm3740_vm11, %v3710_v52, %v3668_v9  ;;  %v3708_v38 = vpop.permute.xlu0 %3707 }
 0x429   : > { %v3767_v24 = vsel %vm3757_vm12, %v3750_v48, %v3668_v9  ;;  %v3749_v11 = vsel %vm3740_vm11, %v3708_v38, %v3667_v37 }
 0x42a   : > { %3784 = vst.msk [vmem:[%s5311_s18 + $0x48] sm:$0xff] %vm3774_vm13, %v3767_v24  ;;  %v3766_v19 = vsel %vm3757_vm12, %v3749_v11, %v3667_v37 }
 0x42b   : > { %3783 = vst.msk [vmem:[%s5311_s18 + $0x40] sm:$0xff] %vm3774_vm13, %v3766_v19 }
 0x438   : > { %v3716_v43 = vpop.permute.xlu0 %3715 }
 0x439   : > { %v3753_v53 = vsel %vm3740_vm11, %v3716_v43, %v3671_v28 }
 0x43a   : > { %v3770_v58 = vsel %vm3757_vm12, %v3753_v53, %v3671_v28  ;;  %v3718_v49 = vpop.permute.xlu1 %3717 }
 0x43b   : > { %3787 = vst.msk [vmem:[%s5311_s18 + $0x60] sm:$0xff] %vm3774_vm13, %v3770_v58  ;;  %v3754_v13 = vsel %vm3740_vm11, %v3718_v49, %v3672_v5 }
 0x43c   : > { %v3720_v36 = vpop.permute.xlu0 %3719  ;;  %v3771_v3 = vsel %vm3757_vm12, %v3754_v13, %v3672_v5 }
 0x43d   : > { %v3755_v50 = vsel %vm3740_vm11, %v3720_v36, %v3673_v23  ;;  %3788 = vst.msk [vmem:[%s5311_s18 + $0x68] sm:$0xff] %vm3774_vm13, %v3771_v3 }
 0x43e   : > { %v3772_v33 = vsel %vm3757_vm12, %v3755_v50, %v3673_v23  ;;  %v3722_v55 = vpop.permute.xlu1 %3721 }
 0x43f   : > { %3789 = vst.msk [vmem:[%s5311_s18 + $0x70] sm:$0xff] %vm3774_vm13, %v3772_v33  ;;  %v3756_v32 = vsel %vm3740_vm11, %v3722_v55, %v3674_v56 }
 0x440   : > { %v3773_v30 = vsel %vm3757_vm12, %v3756_v32, %v3674_v56 }
 0x441   : > { %3790 = vst.msk [vmem:[%s5311_s18 + $0x78] sm:$0xff] %vm3774_vm13, %v3773_v30 }
 0x442 PF: > { %s7112_s12 = sld [smem:[#allocation10_spill]]  ;;  %s7113_s17 = sld [smem:[#allocation6_spill]] }
 0x448   : > { %p4892_p3 = scmp.ge.s32.totalorder %s7112_s12, 2  ;;  %s4042_s13 = sand.u32 1, %s7113_s17  }
 0x449   : > { %s4043_s11 = scalar_lea.sflag [#allocation4], %s4042_s13 }
 0x44a   : > { %p4889_p7 = pnand %p4892_p3, %p5286_p9 }
 0x44c   : > { %5142 = dma.done.wait (!%p4889_p7), %s4043_s11, 16  }
 0x44d   : > { %5144 = vsyncadd (!%p4889_p7), %s4043_s11, 4294967280  ;;  %s22_s12 = sadd.s32 1, %s7112_s12   ;;  %s7115_s29 = sld [smem:[#allocation7_spill]] }
 0x44e   : > { %p19_p8 = scmp.ge.s32.totalorder %s22_s12, 6   ;;  %s7116_s15 = sld [smem:[#allocation14_spill]] }
 0x44f   : > { %s7117_s30 = sld [smem:[#allocation8_spill]]  ;;  %s7118_s9 = sld [smem:[#allocation9_spill]] }
 0x450   : > { %s7119_s10 = sld [smem:[#allocation11_spill]]  ;;  %s7120_s11 = sld [smem:[#allocation12_spill]] }
 0x451   : > { %s7121_s27 = smov %s5151_s28  ;;  %21 = sbr.rel (!%p19_p8) target bundleno = 5 (0x5), region = 125 }
 0x453   : > { %s7122_s28 = smov %s7115_s29 }
 0x454   : > { %s7123_s29 = smov %s7116_s15 }
 0x458   :  { %4047 = vsyncpa [#allocation4], 1 }
 0x459   :  { %4049 = vsyncpa [#allocation4 + $0x1], 1 }

</bundles_post_ra>
